<compile_context>
chip_gen: v7x
topology: tpu7x:2x2x1
jax: 0.10.0
libtpu: 0.0.40
codegen_flags: <defaults>
</compile_context>

<pallas_src>
import functools

import jax
import jax.numpy as jnp
from jax.experimental import pallas as pl
from jax.experimental.pallas import tpu as pltpu


def _conv_swish_kernel(xph_ref, w_ref, b_ref, o_ref, *, kh, kw):
    # xph_ref: (N, Cin, 2, 2, H//2, W//2) f32 VMEM, phase-decomposed input
    # w_ref:   (Cout*Cin*kh*kw,)          f32 SMEM, torch-order flattened weight
    # b_ref:   (Cout,)                    f32 SMEM
    # o_ref:   (N, Cout, OH, OW)          f32 VMEM  (NCHW, no post-processing)
    n, cout, oh, ow = o_ref.shape
    cin = xph_ref.shape[1]

    # Per-output-channel accumulators, initialized with the bias (bias folded
    # into the init -> no separate broadcast/add epilogue, no extra operand).
    acc = [jnp.full((n, oh, ow), b_ref[co], dtype=jnp.float32)
           for co in range(cout)]

    # Fully unrolled over the 3x3 window and input channels:
    # 45 contiguous (N, OH, OW) VMEM loads + 225 scalar-broadcast FMAs (VPU).
    # x[n, ci, 2y+i, 2x+j] == x_ph[n, ci, i%2, j%2, y + i//2, x + j//2]
    for i in range(kh):
        r, di = i % 2, i // 2
        for j in range(kw):
            s, dj = j % 2, j // 2
            for ci in range(cin):
                slab = xph_ref[:, ci, r, s, di:di + oh, dj:dj + ow]  # (N,OH,OW)
                for co in range(cout):
                    w = w_ref[((co * cin + ci) * kh + i) * kw + j]
                    acc[co] = acc[co] + w * slab

    # Swish epilogue (EUP sigmoid), stored straight into NCHW layout.
    for co in range(cout):
        v = acc[co]
        o_ref[:, co, :, :] = v * jax.nn.sigmoid(v)   # v1 * sigmoid(v1)


@jax.jit
def model2_forward(x, weight, bias):
    """x: (N, Cin, H, W); weight: (Cout, Cin, KH, KW); bias: (Cout,)."""
    N, Cin, H, W = x.shape
    Cout, _, KH, KW = weight.shape
    stride = 2
    assert H % 2 == 0 and W % 2 == 0, "phase decomposition assumes even H, W"
    OH = (H - KH) // stride + 1
    OW = (W - KW) // stride + 1

    # Phase decomposition of the stride-2 input:
    #   x_ph[n, c, r, s, a, b] = x[n, c, 2a + r, 2b + s]
    x_ph = x.reshape(N, Cin, H // 2, 2, W // 2, 2).transpose(0, 1, 3, 5, 2, 4)
    w_flat = weight.reshape(-1)          # torch row-major flatten order

    kernel = functools.partial(_conv_swish_kernel, kh=KH, kw=KW)
    out = pl.pallas_call(
        kernel,
        out_shape=jax.ShapeDtypeStruct((N, Cout, OH, OW), jnp.float32),
        in_specs=[
            pl.BlockSpec(memory_space=pltpu.MemorySpace.VMEM),   # x_ph (whole array)
            pl.BlockSpec(memory_space=pltpu.MemorySpace.SMEM),   # weights (scalars)
            pl.BlockSpec(memory_space=pltpu.MemorySpace.SMEM),   # bias (scalars)
        ],
        out_specs=pl.BlockSpec(memory_space=pltpu.MemorySpace.VMEM),
        cost_estimate=pl.CostEstimate(
            flops=2 * N * OH * OW * Cin * KH * KW * Cout,
            transcendentals=N * OH * OW * Cout,
            bytes_accessed=4 * (x_ph.size + w_flat.size + bias.size
                                + N * Cout * OH * OW),
        ),
    )(x_ph, w_flat, bias)
    return out


def _reference(x, weight, bias, stride=2):
    y = jax.lax.conv_general_dilated(
        x, weight, window_strides=(stride, stride), padding="VALID",
        dimension_numbers=("NCHW", "OIHW", "NCHW"))
    y = y + bias.reshape(1, -1, 1, 1)
    return y * jax.nn.sigmoid(y)


if __name__ == "__main__":
    key = jax.random.PRNGKey(0)
    k_x, k_w, k_b = jax.random.split(key, 3)

    # Small shapes consistent with Conv2d(5, 5, 3, stride=2): batch=2, C=5, 16x16.
    N, Cin, H, W = 2, 5, 16, 16
    Cout, KH, KW = 5, 3, 3

    x = jax.random.normal(k_x, (N, Cin, H, W), dtype=jnp.float32)
    fan_in = Cin * KH * KW
    bound = 1.0 / (fan_in ** 0.5)  # PyTorch default conv init range
    weight = jax.random.uniform(k_w, (Cout, Cin, KH, KW), jnp.float32, -bound, bound)
    bias = jax.random.uniform(k_b, (Cout,), jnp.float32, -bound, bound)

    out = jax.block_until_ready(model2_forward(x, weight, bias))
    ref = jax.block_until_ready(_reference(x, weight, bias))

    assert out.shape == ref.shape == (N, Cout, 7, 7)
    assert jnp.allclose(out, ref, atol=1e-5, rtol=1e-5)

    print("KERNEL_OK")
</pallas_src>

<mosaic_0001>
module attributes {stable_mosaic.version = 11 : i64} {
  func.func @_conv_swish_kernel(%arg0: memref<2x5x2x2x8x8xf32, #tpu.memory_space<vmem>>, %arg1: memref<225xf32, #tpu.memory_space<smem>>, %arg2: memref<5xf32, #tpu.memory_space<smem>>, %arg3: memref<2x5x7x7xf32, #tpu.memory_space<vmem>>) attributes {dimension_semantics = [], scalar_prefetch = 0 : i64, scratch_operands = 0 : i64, tpu.core_type = #tpu.core_type<tc>} {
    %c0 = arith.constant 0 : index
    %0 = memref.load %arg2[%c0] : memref<5xf32, #tpu.memory_space<smem>>
    %1 = vector.broadcast %0 : f32 to vector<2x7x7xf32>
    %c1 = arith.constant 1 : index
    %2 = memref.load %arg2[%c1] : memref<5xf32, #tpu.memory_space<smem>>
    %3 = vector.broadcast %2 : f32 to vector<2x7x7xf32>
    %c2 = arith.constant 2 : index
    %4 = memref.load %arg2[%c2] : memref<5xf32, #tpu.memory_space<smem>>
    %5 = vector.broadcast %4 : f32 to vector<2x7x7xf32>
    %c3 = arith.constant 3 : index
    %6 = memref.load %arg2[%c3] : memref<5xf32, #tpu.memory_space<smem>>
    %7 = vector.broadcast %6 : f32 to vector<2x7x7xf32>
    %c4 = arith.constant 4 : index
    %8 = memref.load %arg2[%c4] : memref<5xf32, #tpu.memory_space<smem>>
    %9 = vector.broadcast %8 : f32 to vector<2x7x7xf32>
    %c0_0 = arith.constant 0 : index
    %c0_1 = arith.constant 0 : index
    %c0_2 = arith.constant 0 : index
    %c0_3 = arith.constant 0 : index
    %c0_4 = arith.constant 0 : index
    %c0_5 = arith.constant 0 : index
    %10 = vector.load %arg0[%c0_0, %c0_1, %c0_2, %c0_3, %c0_4, %c0_5] : memref<2x5x2x2x8x8xf32, #tpu.memory_space<vmem>>, vector<2x1x1x1x7x7xf32>
    %11 = vector.shape_cast %10 : vector<2x1x1x1x7x7xf32> to vector<2x7x7xf32>
    %c0_6 = arith.constant 0 : index
    %12 = memref.load %arg1[%c0_6] : memref<225xf32, #tpu.memory_space<smem>>
    %13 = vector.broadcast %12 : f32 to vector<2x7x7xf32>
    %14 = arith.mulf %13, %11 : vector<2x7x7xf32>
    %15 = arith.addf %1, %14 : vector<2x7x7xf32>
    %c45 = arith.constant 45 : index
    %16 = memref.load %arg1[%c45] : memref<225xf32, #tpu.memory_space<smem>>
    %17 = vector.broadcast %16 : f32 to vector<2x7x7xf32>
    %18 = arith.mulf %17, %11 : vector<2x7x7xf32>
    %19 = arith.addf %3, %18 : vector<2x7x7xf32>
    %c90 = arith.constant 90 : index
    %20 = memref.load %arg1[%c90] : memref<225xf32, #tpu.memory_space<smem>>
    %21 = vector.broadcast %20 : f32 to vector<2x7x7xf32>
    %22 = arith.mulf %21, %11 : vector<2x7x7xf32>
    %23 = arith.addf %5, %22 : vector<2x7x7xf32>
    %c135 = arith.constant 135 : index
    %24 = memref.load %arg1[%c135] : memref<225xf32, #tpu.memory_space<smem>>
    %25 = vector.broadcast %24 : f32 to vector<2x7x7xf32>
    %26 = arith.mulf %25, %11 : vector<2x7x7xf32>
    %27 = arith.addf %7, %26 : vector<2x7x7xf32>
    %c180 = arith.constant 180 : index
    %28 = memref.load %arg1[%c180] : memref<225xf32, #tpu.memory_space<smem>>
    %29 = vector.broadcast %28 : f32 to vector<2x7x7xf32>
    %30 = arith.mulf %29, %11 : vector<2x7x7xf32>
    %31 = arith.addf %9, %30 : vector<2x7x7xf32>
    %c0_7 = arith.constant 0 : index
    %c1_8 = arith.constant 1 : index
    %c0_9 = arith.constant 0 : index
    %c0_10 = arith.constant 0 : index
    %c0_11 = arith.constant 0 : index
    %c0_12 = arith.constant 0 : index
    %32 = vector.load %arg0[%c0_7, %c1_8, %c0_9, %c0_10, %c0_11, %c0_12] : memref<2x5x2x2x8x8xf32, #tpu.memory_space<vmem>>, vector<2x1x1x1x7x7xf32>
    %33 = vector.shape_cast %32 : vector<2x1x1x1x7x7xf32> to vector<2x7x7xf32>
    %c9 = arith.constant 9 : index
    %34 = memref.load %arg1[%c9] : memref<225xf32, #tpu.memory_space<smem>>
    %35 = vector.broadcast %34 : f32 to vector<2x7x7xf32>
    %36 = arith.mulf %35, %33 : vector<2x7x7xf32>
    %37 = arith.addf %15, %36 : vector<2x7x7xf32>
    %c54 = arith.constant 54 : index
    %38 = memref.load %arg1[%c54] : memref<225xf32, #tpu.memory_space<smem>>
    %39 = vector.broadcast %38 : f32 to vector<2x7x7xf32>
    %40 = arith.mulf %39, %33 : vector<2x7x7xf32>
    %41 = arith.addf %19, %40 : vector<2x7x7xf32>
    %c99 = arith.constant 99 : index
    %42 = memref.load %arg1[%c99] : memref<225xf32, #tpu.memory_space<smem>>
    %43 = vector.broadcast %42 : f32 to vector<2x7x7xf32>
    %44 = arith.mulf %43, %33 : vector<2x7x7xf32>
    %45 = arith.addf %23, %44 : vector<2x7x7xf32>
    %c144 = arith.constant 144 : index
    %46 = memref.load %arg1[%c144] : memref<225xf32, #tpu.memory_space<smem>>
    %47 = vector.broadcast %46 : f32 to vector<2x7x7xf32>
    %48 = arith.mulf %47, %33 : vector<2x7x7xf32>
    %49 = arith.addf %27, %48 : vector<2x7x7xf32>
    %c189 = arith.constant 189 : index
    %50 = memref.load %arg1[%c189] : memref<225xf32, #tpu.memory_space<smem>>
    %51 = vector.broadcast %50 : f32 to vector<2x7x7xf32>
    %52 = arith.mulf %51, %33 : vector<2x7x7xf32>
    %53 = arith.addf %31, %52 : vector<2x7x7xf32>
    %c0_13 = arith.constant 0 : index
    %c2_14 = arith.constant 2 : index
    %c0_15 = arith.constant 0 : index
    %c0_16 = arith.constant 0 : index
    %c0_17 = arith.constant 0 : index
    %c0_18 = arith.constant 0 : index
    %54 = vector.load %arg0[%c0_13, %c2_14, %c0_15, %c0_16, %c0_17, %c0_18] : memref<2x5x2x2x8x8xf32, #tpu.memory_space<vmem>>, vector<2x1x1x1x7x7xf32>
    %55 = vector.shape_cast %54 : vector<2x1x1x1x7x7xf32> to vector<2x7x7xf32>
    %c18 = arith.constant 18 : index
    %56 = memref.load %arg1[%c18] : memref<225xf32, #tpu.memory_space<smem>>
    %57 = vector.broadcast %56 : f32 to vector<2x7x7xf32>
    %58 = arith.mulf %57, %55 : vector<2x7x7xf32>
    %59 = arith.addf %37, %58 : vector<2x7x7xf32>
    %c63 = arith.constant 63 : index
    %60 = memref.load %arg1[%c63] : memref<225xf32, #tpu.memory_space<smem>>
    %61 = vector.broadcast %60 : f32 to vector<2x7x7xf32>
    %62 = arith.mulf %61, %55 : vector<2x7x7xf32>
    %63 = arith.addf %41, %62 : vector<2x7x7xf32>
    %c108 = arith.constant 108 : index
    %64 = memref.load %arg1[%c108] : memref<225xf32, #tpu.memory_space<smem>>
    %65 = vector.broadcast %64 : f32 to vector<2x7x7xf32>
    %66 = arith.mulf %65, %55 : vector<2x7x7xf32>
    %67 = arith.addf %45, %66 : vector<2x7x7xf32>
    %c153 = arith.constant 153 : index
    %68 = memref.load %arg1[%c153] : memref<225xf32, #tpu.memory_space<smem>>
    %69 = vector.broadcast %68 : f32 to vector<2x7x7xf32>
    %70 = arith.mulf %69, %55 : vector<2x7x7xf32>
    %71 = arith.addf %49, %70 : vector<2x7x7xf32>
    %c198 = arith.constant 198 : index
    %72 = memref.load %arg1[%c198] : memref<225xf32, #tpu.memory_space<smem>>
    %73 = vector.broadcast %72 : f32 to vector<2x7x7xf32>
    %74 = arith.mulf %73, %55 : vector<2x7x7xf32>
    %75 = arith.addf %53, %74 : vector<2x7x7xf32>
    %c0_19 = arith.constant 0 : index
    %c3_20 = arith.constant 3 : index
    %c0_21 = arith.constant 0 : index
    %c0_22 = arith.constant 0 : index
    %c0_23 = arith.constant 0 : index
    %c0_24 = arith.constant 0 : index
    %76 = vector.load %arg0[%c0_19, %c3_20, %c0_21, %c0_22, %c0_23, %c0_24] : memref<2x5x2x2x8x8xf32, #tpu.memory_space<vmem>>, vector<2x1x1x1x7x7xf32>
    %77 = vector.shape_cast %76 : vector<2x1x1x1x7x7xf32> to vector<2x7x7xf32>
    %c27 = arith.constant 27 : index
    %78 = memref.load %arg1[%c27] : memref<225xf32, #tpu.memory_space<smem>>
    %79 = vector.broadcast %78 : f32 to vector<2x7x7xf32>
    %80 = arith.mulf %79, %77 : vector<2x7x7xf32>
    %81 = arith.addf %59, %80 : vector<2x7x7xf32>
    %c72 = arith.constant 72 : index
    %82 = memref.load %arg1[%c72] : memref<225xf32, #tpu.memory_space<smem>>
    %83 = vector.broadcast %82 : f32 to vector<2x7x7xf32>
    %84 = arith.mulf %83, %77 : vector<2x7x7xf32>
    %85 = arith.addf %63, %84 : vector<2x7x7xf32>
    %c117 = arith.constant 117 : index
    %86 = memref.load %arg1[%c117] : memref<225xf32, #tpu.memory_space<smem>>
    %87 = vector.broadcast %86 : f32 to vector<2x7x7xf32>
    %88 = arith.mulf %87, %77 : vector<2x7x7xf32>
    %89 = arith.addf %67, %88 : vector<2x7x7xf32>
    %c162 = arith.constant 162 : index
    %90 = memref.load %arg1[%c162] : memref<225xf32, #tpu.memory_space<smem>>
    %91 = vector.broadcast %90 : f32 to vector<2x7x7xf32>
    %92 = arith.mulf %91, %77 : vector<2x7x7xf32>
    %93 = arith.addf %71, %92 : vector<2x7x7xf32>
    %c207 = arith.constant 207 : index
    %94 = memref.load %arg1[%c207] : memref<225xf32, #tpu.memory_space<smem>>
    %95 = vector.broadcast %94 : f32 to vector<2x7x7xf32>
    %96 = arith.mulf %95, %77 : vector<2x7x7xf32>
    %97 = arith.addf %75, %96 : vector<2x7x7xf32>
    %c0_25 = arith.constant 0 : index
    %c4_26 = arith.constant 4 : index
    %c0_27 = arith.constant 0 : index
    %c0_28 = arith.constant 0 : index
    %c0_29 = arith.constant 0 : index
    %c0_30 = arith.constant 0 : index
    %98 = vector.load %arg0[%c0_25, %c4_26, %c0_27, %c0_28, %c0_29, %c0_30] : memref<2x5x2x2x8x8xf32, #tpu.memory_space<vmem>>, vector<2x1x1x1x7x7xf32>
    %99 = vector.shape_cast %98 : vector<2x1x1x1x7x7xf32> to vector<2x7x7xf32>
    %c36 = arith.constant 36 : index
    %100 = memref.load %arg1[%c36] : memref<225xf32, #tpu.memory_space<smem>>
    %101 = vector.broadcast %100 : f32 to vector<2x7x7xf32>
    %102 = arith.mulf %101, %99 : vector<2x7x7xf32>
    %103 = arith.addf %81, %102 : vector<2x7x7xf32>
    %c81 = arith.constant 81 : index
    %104 = memref.load %arg1[%c81] : memref<225xf32, #tpu.memory_space<smem>>
    %105 = vector.broadcast %104 : f32 to vector<2x7x7xf32>
    %106 = arith.mulf %105, %99 : vector<2x7x7xf32>
    %107 = arith.addf %85, %106 : vector<2x7x7xf32>
    %c126 = arith.constant 126 : index
    %108 = memref.load %arg1[%c126] : memref<225xf32, #tpu.memory_space<smem>>
    %109 = vector.broadcast %108 : f32 to vector<2x7x7xf32>
    %110 = arith.mulf %109, %99 : vector<2x7x7xf32>
    %111 = arith.addf %89, %110 : vector<2x7x7xf32>
    %c171 = arith.constant 171 : index
    %112 = memref.load %arg1[%c171] : memref<225xf32, #tpu.memory_space<smem>>
    %113 = vector.broadcast %112 : f32 to vector<2x7x7xf32>
    %114 = arith.mulf %113, %99 : vector<2x7x7xf32>
    %115 = arith.addf %93, %114 : vector<2x7x7xf32>
    %c216 = arith.constant 216 : index
    %116 = memref.load %arg1[%c216] : memref<225xf32, #tpu.memory_space<smem>>
    %117 = vector.broadcast %116 : f32 to vector<2x7x7xf32>
    %118 = arith.mulf %117, %99 : vector<2x7x7xf32>
    %119 = arith.addf %97, %118 : vector<2x7x7xf32>
    %c0_31 = arith.constant 0 : index
    %c0_32 = arith.constant 0 : index
    %c0_33 = arith.constant 0 : index
    %c1_34 = arith.constant 1 : index
    %c0_35 = arith.constant 0 : index
    %c0_36 = arith.constant 0 : index
    %120 = vector.load %arg0[%c0_31, %c0_32, %c0_33, %c1_34, %c0_35, %c0_36] : memref<2x5x2x2x8x8xf32, #tpu.memory_space<vmem>>, vector<2x1x1x1x7x7xf32>
    %121 = vector.shape_cast %120 : vector<2x1x1x1x7x7xf32> to vector<2x7x7xf32>
    %c1_37 = arith.constant 1 : index
    %122 = memref.load %arg1[%c1_37] : memref<225xf32, #tpu.memory_space<smem>>
    %123 = vector.broadcast %122 : f32 to vector<2x7x7xf32>
    %124 = arith.mulf %123, %121 : vector<2x7x7xf32>
    %125 = arith.addf %103, %124 : vector<2x7x7xf32>
    %c46 = arith.constant 46 : index
    %126 = memref.load %arg1[%c46] : memref<225xf32, #tpu.memory_space<smem>>
    %127 = vector.broadcast %126 : f32 to vector<2x7x7xf32>
    %128 = arith.mulf %127, %121 : vector<2x7x7xf32>
    %129 = arith.addf %107, %128 : vector<2x7x7xf32>
    %c91 = arith.constant 91 : index
    %130 = memref.load %arg1[%c91] : memref<225xf32, #tpu.memory_space<smem>>
    %131 = vector.broadcast %130 : f32 to vector<2x7x7xf32>
    %132 = arith.mulf %131, %121 : vector<2x7x7xf32>
    %133 = arith.addf %111, %132 : vector<2x7x7xf32>
    %c136 = arith.constant 136 : index
    %134 = memref.load %arg1[%c136] : memref<225xf32, #tpu.memory_space<smem>>
    %135 = vector.broadcast %134 : f32 to vector<2x7x7xf32>
    %136 = arith.mulf %135, %121 : vector<2x7x7xf32>
    %137 = arith.addf %115, %136 : vector<2x7x7xf32>
    %c181 = arith.constant 181 : index
    %138 = memref.load %arg1[%c181] : memref<225xf32, #tpu.memory_space<smem>>
    %139 = vector.broadcast %138 : f32 to vector<2x7x7xf32>
    %140 = arith.mulf %139, %121 : vector<2x7x7xf32>
    %141 = arith.addf %119, %140 : vector<2x7x7xf32>
    %c0_38 = arith.constant 0 : index
    %c1_39 = arith.constant 1 : index
    %c0_40 = arith.constant 0 : index
    %c1_41 = arith.constant 1 : index
    %c0_42 = arith.constant 0 : index
    %c0_43 = arith.constant 0 : index
    %142 = vector.load %arg0[%c0_38, %c1_39, %c0_40, %c1_41, %c0_42, %c0_43] : memref<2x5x2x2x8x8xf32, #tpu.memory_space<vmem>>, vector<2x1x1x1x7x7xf32>
    %143 = vector.shape_cast %142 : vector<2x1x1x1x7x7xf32> to vector<2x7x7xf32>
    %c10 = arith.constant 10 : index
    %144 = memref.load %arg1[%c10] : memref<225xf32, #tpu.memory_space<smem>>
    %145 = vector.broadcast %144 : f32 to vector<2x7x7xf32>
    %146 = arith.mulf %145, %143 : vector<2x7x7xf32>
    %147 = arith.addf %125, %146 : vector<2x7x7xf32>
    %c55 = arith.constant 55 : index
    %148 = memref.load %arg1[%c55] : memref<225xf32, #tpu.memory_space<smem>>
    %149 = vector.broadcast %148 : f32 to vector<2x7x7xf32>
    %150 = arith.mulf %149, %143 : vector<2x7x7xf32>
    %151 = arith.addf %129, %150 : vector<2x7x7xf32>
    %c100 = arith.constant 100 : index
    %152 = memref.load %arg1[%c100] : memref<225xf32, #tpu.memory_space<smem>>
    %153 = vector.broadcast %152 : f32 to vector<2x7x7xf32>
    %154 = arith.mulf %153, %143 : vector<2x7x7xf32>
    %155 = arith.addf %133, %154 : vector<2x7x7xf32>
    %c145 = arith.constant 145 : index
    %156 = memref.load %arg1[%c145] : memref<225xf32, #tpu.memory_space<smem>>
    %157 = vector.broadcast %156 : f32 to vector<2x7x7xf32>
    %158 = arith.mulf %157, %143 : vector<2x7x7xf32>
    %159 = arith.addf %137, %158 : vector<2x7x7xf32>
    %c190 = arith.constant 190 : index
    %160 = memref.load %arg1[%c190] : memref<225xf32, #tpu.memory_space<smem>>
    %161 = vector.broadcast %160 : f32 to vector<2x7x7xf32>
    %162 = arith.mulf %161, %143 : vector<2x7x7xf32>
    %163 = arith.addf %141, %162 : vector<2x7x7xf32>
    %c0_44 = arith.constant 0 : index
    %c2_45 = arith.constant 2 : index
    %c0_46 = arith.constant 0 : index
    %c1_47 = arith.constant 1 : index
    %c0_48 = arith.constant 0 : index
    %c0_49 = arith.constant 0 : index
    %164 = vector.load %arg0[%c0_44, %c2_45, %c0_46, %c1_47, %c0_48, %c0_49] : memref<2x5x2x2x8x8xf32, #tpu.memory_space<vmem>>, vector<2x1x1x1x7x7xf32>
    %165 = vector.shape_cast %164 : vector<2x1x1x1x7x7xf32> to vector<2x7x7xf32>
    %c19 = arith.constant 19 : index
    %166 = memref.load %arg1[%c19] : memref<225xf32, #tpu.memory_space<smem>>
    %167 = vector.broadcast %166 : f32 to vector<2x7x7xf32>
    %168 = arith.mulf %167, %165 : vector<2x7x7xf32>
    %169 = arith.addf %147, %168 : vector<2x7x7xf32>
    %c64 = arith.constant 64 : index
    %170 = memref.load %arg1[%c64] : memref<225xf32, #tpu.memory_space<smem>>
    %171 = vector.broadcast %170 : f32 to vector<2x7x7xf32>
    %172 = arith.mulf %171, %165 : vector<2x7x7xf32>
    %173 = arith.addf %151, %172 : vector<2x7x7xf32>
    %c109 = arith.constant 109 : index
    %174 = memref.load %arg1[%c109] : memref<225xf32, #tpu.memory_space<smem>>
    %175 = vector.broadcast %174 : f32 to vector<2x7x7xf32>
    %176 = arith.mulf %175, %165 : vector<2x7x7xf32>
    %177 = arith.addf %155, %176 : vector<2x7x7xf32>
    %c154 = arith.constant 154 : index
    %178 = memref.load %arg1[%c154] : memref<225xf32, #tpu.memory_space<smem>>
    %179 = vector.broadcast %178 : f32 to vector<2x7x7xf32>
    %180 = arith.mulf %179, %165 : vector<2x7x7xf32>
    %181 = arith.addf %159, %180 : vector<2x7x7xf32>
    %c199 = arith.constant 199 : index
    %182 = memref.load %arg1[%c199] : memref<225xf32, #tpu.memory_space<smem>>
    %183 = vector.broadcast %182 : f32 to vector<2x7x7xf32>
    %184 = arith.mulf %183, %165 : vector<2x7x7xf32>
    %185 = arith.addf %163, %184 : vector<2x7x7xf32>
    %c0_50 = arith.constant 0 : index
    %c3_51 = arith.constant 3 : index
    %c0_52 = arith.constant 0 : index
    %c1_53 = arith.constant 1 : index
    %c0_54 = arith.constant 0 : index
    %c0_55 = arith.constant 0 : index
    %186 = vector.load %arg0[%c0_50, %c3_51, %c0_52, %c1_53, %c0_54, %c0_55] : memref<2x5x2x2x8x8xf32, #tpu.memory_space<vmem>>, vector<2x1x1x1x7x7xf32>
    %187 = vector.shape_cast %186 : vector<2x1x1x1x7x7xf32> to vector<2x7x7xf32>
    %c28 = arith.constant 28 : index
    %188 = memref.load %arg1[%c28] : memref<225xf32, #tpu.memory_space<smem>>
    %189 = vector.broadcast %188 : f32 to vector<2x7x7xf32>
    %190 = arith.mulf %189, %187 : vector<2x7x7xf32>
    %191 = arith.addf %169, %190 : vector<2x7x7xf32>
    %c73 = arith.constant 73 : index
    %192 = memref.load %arg1[%c73] : memref<225xf32, #tpu.memory_space<smem>>
    %193 = vector.broadcast %192 : f32 to vector<2x7x7xf32>
    %194 = arith.mulf %193, %187 : vector<2x7x7xf32>
    %195 = arith.addf %173, %194 : vector<2x7x7xf32>
    %c118 = arith.constant 118 : index
    %196 = memref.load %arg1[%c118] : memref<225xf32, #tpu.memory_space<smem>>
    %197 = vector.broadcast %196 : f32 to vector<2x7x7xf32>
    %198 = arith.mulf %197, %187 : vector<2x7x7xf32>
    %199 = arith.addf %177, %198 : vector<2x7x7xf32>
    %c163 = arith.constant 163 : index
    %200 = memref.load %arg1[%c163] : memref<225xf32, #tpu.memory_space<smem>>
    %201 = vector.broadcast %200 : f32 to vector<2x7x7xf32>
    %202 = arith.mulf %201, %187 : vector<2x7x7xf32>
    %203 = arith.addf %181, %202 : vector<2x7x7xf32>
    %c208 = arith.constant 208 : index
    %204 = memref.load %arg1[%c208] : memref<225xf32, #tpu.memory_space<smem>>
    %205 = vector.broadcast %204 : f32 to vector<2x7x7xf32>
    %206 = arith.mulf %205, %187 : vector<2x7x7xf32>
    %207 = arith.addf %185, %206 : vector<2x7x7xf32>
    %c0_56 = arith.constant 0 : index
    %c4_57 = arith.constant 4 : index
    %c0_58 = arith.constant 0 : index
    %c1_59 = arith.constant 1 : index
    %c0_60 = arith.constant 0 : index
    %c0_61 = arith.constant 0 : index
    %208 = vector.load %arg0[%c0_56, %c4_57, %c0_58, %c1_59, %c0_60, %c0_61] : memref<2x5x2x2x8x8xf32, #tpu.memory_space<vmem>>, vector<2x1x1x1x7x7xf32>
    %209 = vector.shape_cast %208 : vector<2x1x1x1x7x7xf32> to vector<2x7x7xf32>
    %c37 = arith.constant 37 : index
    %210 = memref.load %arg1[%c37] : memref<225xf32, #tpu.memory_space<smem>>
    %211 = vector.broadcast %210 : f32 to vector<2x7x7xf32>
    %212 = arith.mulf %211, %209 : vector<2x7x7xf32>
    %213 = arith.addf %191, %212 : vector<2x7x7xf32>
    %c82 = arith.constant 82 : index
    %214 = memref.load %arg1[%c82] : memref<225xf32, #tpu.memory_space<smem>>
    %215 = vector.broadcast %214 : f32 to vector<2x7x7xf32>
    %216 = arith.mulf %215, %209 : vector<2x7x7xf32>
    %217 = arith.addf %195, %216 : vector<2x7x7xf32>
    %c127 = arith.constant 127 : index
    %218 = memref.load %arg1[%c127] : memref<225xf32, #tpu.memory_space<smem>>
    %219 = vector.broadcast %218 : f32 to vector<2x7x7xf32>
    %220 = arith.mulf %219, %209 : vector<2x7x7xf32>
    %221 = arith.addf %199, %220 : vector<2x7x7xf32>
    %c172 = arith.constant 172 : index
    %222 = memref.load %arg1[%c172] : memref<225xf32, #tpu.memory_space<smem>>
    %223 = vector.broadcast %222 : f32 to vector<2x7x7xf32>
    %224 = arith.mulf %223, %209 : vector<2x7x7xf32>
    %225 = arith.addf %203, %224 : vector<2x7x7xf32>
    %c217 = arith.constant 217 : index
    %226 = memref.load %arg1[%c217] : memref<225xf32, #tpu.memory_space<smem>>
    %227 = vector.broadcast %226 : f32 to vector<2x7x7xf32>
    %228 = arith.mulf %227, %209 : vector<2x7x7xf32>
    %229 = arith.addf %207, %228 : vector<2x7x7xf32>
    %c0_62 = arith.constant 0 : index
    %c0_63 = arith.constant 0 : index
    %c0_64 = arith.constant 0 : index
    %c0_65 = arith.constant 0 : index
    %c0_66 = arith.constant 0 : index
    %c1_67 = arith.constant 1 : index
    %230 = vector.load %arg0[%c0_62, %c0_63, %c0_64, %c0_65, %c0_66, %c1_67] : memref<2x5x2x2x8x8xf32, #tpu.memory_space<vmem>>, vector<2x1x1x1x7x7xf32>
    %231 = vector.shape_cast %230 : vector<2x1x1x1x7x7xf32> to vector<2x7x7xf32>
    %c2_68 = arith.constant 2 : index
    %232 = memref.load %arg1[%c2_68] : memref<225xf32, #tpu.memory_space<smem>>
    %233 = vector.broadcast %232 : f32 to vector<2x7x7xf32>
    %234 = arith.mulf %233, %231 : vector<2x7x7xf32>
    %235 = arith.addf %213, %234 : vector<2x7x7xf32>
    %c47 = arith.constant 47 : index
    %236 = memref.load %arg1[%c47] : memref<225xf32, #tpu.memory_space<smem>>
    %237 = vector.broadcast %236 : f32 to vector<2x7x7xf32>
    %238 = arith.mulf %237, %231 : vector<2x7x7xf32>
    %239 = arith.addf %217, %238 : vector<2x7x7xf32>
    %c92 = arith.constant 92 : index
    %240 = memref.load %arg1[%c92] : memref<225xf32, #tpu.memory_space<smem>>
    %241 = vector.broadcast %240 : f32 to vector<2x7x7xf32>
    %242 = arith.mulf %241, %231 : vector<2x7x7xf32>
    %243 = arith.addf %221, %242 : vector<2x7x7xf32>
    %c137 = arith.constant 137 : index
    %244 = memref.load %arg1[%c137] : memref<225xf32, #tpu.memory_space<smem>>
    %245 = vector.broadcast %244 : f32 to vector<2x7x7xf32>
    %246 = arith.mulf %245, %231 : vector<2x7x7xf32>
    %247 = arith.addf %225, %246 : vector<2x7x7xf32>
    %c182 = arith.constant 182 : index
    %248 = memref.load %arg1[%c182] : memref<225xf32, #tpu.memory_space<smem>>
    %249 = vector.broadcast %248 : f32 to vector<2x7x7xf32>
    %250 = arith.mulf %249, %231 : vector<2x7x7xf32>
    %251 = arith.addf %229, %250 : vector<2x7x7xf32>
    %c0_69 = arith.constant 0 : index
    %c1_70 = arith.constant 1 : index
    %c0_71 = arith.constant 0 : index
    %c0_72 = arith.constant 0 : index
    %c0_73 = arith.constant 0 : index
    %c1_74 = arith.constant 1 : index
    %252 = vector.load %arg0[%c0_69, %c1_70, %c0_71, %c0_72, %c0_73, %c1_74] : memref<2x5x2x2x8x8xf32, #tpu.memory_space<vmem>>, vector<2x1x1x1x7x7xf32>
    %253 = vector.shape_cast %252 : vector<2x1x1x1x7x7xf32> to vector<2x7x7xf32>
    %c11 = arith.constant 11 : index
    %254 = memref.load %arg1[%c11] : memref<225xf32, #tpu.memory_space<smem>>
    %255 = vector.broadcast %254 : f32 to vector<2x7x7xf32>
    %256 = arith.mulf %255, %253 : vector<2x7x7xf32>
    %257 = arith.addf %235, %256 : vector<2x7x7xf32>
    %c56 = arith.constant 56 : index
    %258 = memref.load %arg1[%c56] : memref<225xf32, #tpu.memory_space<smem>>
    %259 = vector.broadcast %258 : f32 to vector<2x7x7xf32>
    %260 = arith.mulf %259, %253 : vector<2x7x7xf32>
    %261 = arith.addf %239, %260 : vector<2x7x7xf32>
    %c101 = arith.constant 101 : index
    %262 = memref.load %arg1[%c101] : memref<225xf32, #tpu.memory_space<smem>>
    %263 = vector.broadcast %262 : f32 to vector<2x7x7xf32>
    %264 = arith.mulf %263, %253 : vector<2x7x7xf32>
    %265 = arith.addf %243, %264 : vector<2x7x7xf32>
    %c146 = arith.constant 146 : index
    %266 = memref.load %arg1[%c146] : memref<225xf32, #tpu.memory_space<smem>>
    %267 = vector.broadcast %266 : f32 to vector<2x7x7xf32>
    %268 = arith.mulf %267, %253 : vector<2x7x7xf32>
    %269 = arith.addf %247, %268 : vector<2x7x7xf32>
    %c191 = arith.constant 191 : index
    %270 = memref.load %arg1[%c191] : memref<225xf32, #tpu.memory_space<smem>>
    %271 = vector.broadcast %270 : f32 to vector<2x7x7xf32>
    %272 = arith.mulf %271, %253 : vector<2x7x7xf32>
    %273 = arith.addf %251, %272 : vector<2x7x7xf32>
    %c0_75 = arith.constant 0 : index
    %c2_76 = arith.constant 2 : index
    %c0_77 = arith.constant 0 : index
    %c0_78 = arith.constant 0 : index
    %c0_79 = arith.constant 0 : index
    %c1_80 = arith.constant 1 : index
    %274 = vector.load %arg0[%c0_75, %c2_76, %c0_77, %c0_78, %c0_79, %c1_80] : memref<2x5x2x2x8x8xf32, #tpu.memory_space<vmem>>, vector<2x1x1x1x7x7xf32>
    %275 = vector.shape_cast %274 : vector<2x1x1x1x7x7xf32> to vector<2x7x7xf32>
    %c20 = arith.constant 20 : index
    %276 = memref.load %arg1[%c20] : memref<225xf32, #tpu.memory_space<smem>>
    %277 = vector.broadcast %276 : f32 to vector<2x7x7xf32>
    %278 = arith.mulf %277, %275 : vector<2x7x7xf32>
    %279 = arith.addf %257, %278 : vector<2x7x7xf32>
    %c65 = arith.constant 65 : index
    %280 = memref.load %arg1[%c65] : memref<225xf32, #tpu.memory_space<smem>>
    %281 = vector.broadcast %280 : f32 to vector<2x7x7xf32>
    %282 = arith.mulf %281, %275 : vector<2x7x7xf32>
    %283 = arith.addf %261, %282 : vector<2x7x7xf32>
    %c110 = arith.constant 110 : index
    %284 = memref.load %arg1[%c110] : memref<225xf32, #tpu.memory_space<smem>>
    %285 = vector.broadcast %284 : f32 to vector<2x7x7xf32>
    %286 = arith.mulf %285, %275 : vector<2x7x7xf32>
    %287 = arith.addf %265, %286 : vector<2x7x7xf32>
    %c155 = arith.constant 155 : index
    %288 = memref.load %arg1[%c155] : memref<225xf32, #tpu.memory_space<smem>>
    %289 = vector.broadcast %288 : f32 to vector<2x7x7xf32>
    %290 = arith.mulf %289, %275 : vector<2x7x7xf32>
    %291 = arith.addf %269, %290 : vector<2x7x7xf32>
    %c200 = arith.constant 200 : index
    %292 = memref.load %arg1[%c200] : memref<225xf32, #tpu.memory_space<smem>>
    %293 = vector.broadcast %292 : f32 to vector<2x7x7xf32>
    %294 = arith.mulf %293, %275 : vector<2x7x7xf32>
    %295 = arith.addf %273, %294 : vector<2x7x7xf32>
    %c0_81 = arith.constant 0 : index
    %c3_82 = arith.constant 3 : index
    %c0_83 = arith.constant 0 : index
    %c0_84 = arith.constant 0 : index
    %c0_85 = arith.constant 0 : index
    %c1_86 = arith.constant 1 : index
    %296 = vector.load %arg0[%c0_81, %c3_82, %c0_83, %c0_84, %c0_85, %c1_86] : memref<2x5x2x2x8x8xf32, #tpu.memory_space<vmem>>, vector<2x1x1x1x7x7xf32>
    %297 = vector.shape_cast %296 : vector<2x1x1x1x7x7xf32> to vector<2x7x7xf32>
    %c29 = arith.constant 29 : index
    %298 = memref.load %arg1[%c29] : memref<225xf32, #tpu.memory_space<smem>>
    %299 = vector.broadcast %298 : f32 to vector<2x7x7xf32>
    %300 = arith.mulf %299, %297 : vector<2x7x7xf32>
    %301 = arith.addf %279, %300 : vector<2x7x7xf32>
    %c74 = arith.constant 74 : index
    %302 = memref.load %arg1[%c74] : memref<225xf32, #tpu.memory_space<smem>>
    %303 = vector.broadcast %302 : f32 to vector<2x7x7xf32>
    %304 = arith.mulf %303, %297 : vector<2x7x7xf32>
    %305 = arith.addf %283, %304 : vector<2x7x7xf32>
    %c119 = arith.constant 119 : index
    %306 = memref.load %arg1[%c119] : memref<225xf32, #tpu.memory_space<smem>>
    %307 = vector.broadcast %306 : f32 to vector<2x7x7xf32>
    %308 = arith.mulf %307, %297 : vector<2x7x7xf32>
    %309 = arith.addf %287, %308 : vector<2x7x7xf32>
    %c164 = arith.constant 164 : index
    %310 = memref.load %arg1[%c164] : memref<225xf32, #tpu.memory_space<smem>>
    %311 = vector.broadcast %310 : f32 to vector<2x7x7xf32>
    %312 = arith.mulf %311, %297 : vector<2x7x7xf32>
    %313 = arith.addf %291, %312 : vector<2x7x7xf32>
    %c209 = arith.constant 209 : index
    %314 = memref.load %arg1[%c209] : memref<225xf32, #tpu.memory_space<smem>>
    %315 = vector.broadcast %314 : f32 to vector<2x7x7xf32>
    %316 = arith.mulf %315, %297 : vector<2x7x7xf32>
    %317 = arith.addf %295, %316 : vector<2x7x7xf32>
    %c0_87 = arith.constant 0 : index
    %c4_88 = arith.constant 4 : index
    %c0_89 = arith.constant 0 : index
    %c0_90 = arith.constant 0 : index
    %c0_91 = arith.constant 0 : index
    %c1_92 = arith.constant 1 : index
    %318 = vector.load %arg0[%c0_87, %c4_88, %c0_89, %c0_90, %c0_91, %c1_92] : memref<2x5x2x2x8x8xf32, #tpu.memory_space<vmem>>, vector<2x1x1x1x7x7xf32>
    %319 = vector.shape_cast %318 : vector<2x1x1x1x7x7xf32> to vector<2x7x7xf32>
    %c38 = arith.constant 38 : index
    %320 = memref.load %arg1[%c38] : memref<225xf32, #tpu.memory_space<smem>>
    %321 = vector.broadcast %320 : f32 to vector<2x7x7xf32>
    %322 = arith.mulf %321, %319 : vector<2x7x7xf32>
    %323 = arith.addf %301, %322 : vector<2x7x7xf32>
    %c83 = arith.constant 83 : index
    %324 = memref.load %arg1[%c83] : memref<225xf32, #tpu.memory_space<smem>>
    %325 = vector.broadcast %324 : f32 to vector<2x7x7xf32>
    %326 = arith.mulf %325, %319 : vector<2x7x7xf32>
    %327 = arith.addf %305, %326 : vector<2x7x7xf32>
    %c128 = arith.constant 128 : index
    %328 = memref.load %arg1[%c128] : memref<225xf32, #tpu.memory_space<smem>>
    %329 = vector.broadcast %328 : f32 to vector<2x7x7xf32>
    %330 = arith.mulf %329, %319 : vector<2x7x7xf32>
    %331 = arith.addf %309, %330 : vector<2x7x7xf32>
    %c173 = arith.constant 173 : index
    %332 = memref.load %arg1[%c173] : memref<225xf32, #tpu.memory_space<smem>>
    %333 = vector.broadcast %332 : f32 to vector<2x7x7xf32>
    %334 = arith.mulf %333, %319 : vector<2x7x7xf32>
    %335 = arith.addf %313, %334 : vector<2x7x7xf32>
    %c218 = arith.constant 218 : index
    %336 = memref.load %arg1[%c218] : memref<225xf32, #tpu.memory_space<smem>>
    %337 = vector.broadcast %336 : f32 to vector<2x7x7xf32>
    %338 = arith.mulf %337, %319 : vector<2x7x7xf32>
    %339 = arith.addf %317, %338 : vector<2x7x7xf32>
    %c0_93 = arith.constant 0 : index
    %c0_94 = arith.constant 0 : index
    %c1_95 = arith.constant 1 : index
    %c0_96 = arith.constant 0 : index
    %c0_97 = arith.constant 0 : index
    %c0_98 = arith.constant 0 : index
    %340 = vector.load %arg0[%c0_93, %c0_94, %c1_95, %c0_96, %c0_97, %c0_98] : memref<2x5x2x2x8x8xf32, #tpu.memory_space<vmem>>, vector<2x1x1x1x7x7xf32>
    %341 = vector.shape_cast %340 : vector<2x1x1x1x7x7xf32> to vector<2x7x7xf32>
    %c3_99 = arith.constant 3 : index
    %342 = memref.load %arg1[%c3_99] : memref<225xf32, #tpu.memory_space<smem>>
    %343 = vector.broadcast %342 : f32 to vector<2x7x7xf32>
    %344 = arith.mulf %343, %341 : vector<2x7x7xf32>
    %345 = arith.addf %323, %344 : vector<2x7x7xf32>
    %c48 = arith.constant 48 : index
    %346 = memref.load %arg1[%c48] : memref<225xf32, #tpu.memory_space<smem>>
    %347 = vector.broadcast %346 : f32 to vector<2x7x7xf32>
    %348 = arith.mulf %347, %341 : vector<2x7x7xf32>
    %349 = arith.addf %327, %348 : vector<2x7x7xf32>
    %c93 = arith.constant 93 : index
    %350 = memref.load %arg1[%c93] : memref<225xf32, #tpu.memory_space<smem>>
    %351 = vector.broadcast %350 : f32 to vector<2x7x7xf32>
    %352 = arith.mulf %351, %341 : vector<2x7x7xf32>
    %353 = arith.addf %331, %352 : vector<2x7x7xf32>
    %c138 = arith.constant 138 : index
    %354 = memref.load %arg1[%c138] : memref<225xf32, #tpu.memory_space<smem>>
    %355 = vector.broadcast %354 : f32 to vector<2x7x7xf32>
    %356 = arith.mulf %355, %341 : vector<2x7x7xf32>
    %357 = arith.addf %335, %356 : vector<2x7x7xf32>
    %c183 = arith.constant 183 : index
    %358 = memref.load %arg1[%c183] : memref<225xf32, #tpu.memory_space<smem>>
    %359 = vector.broadcast %358 : f32 to vector<2x7x7xf32>
    %360 = arith.mulf %359, %341 : vector<2x7x7xf32>
    %361 = arith.addf %339, %360 : vector<2x7x7xf32>
    %c0_100 = arith.constant 0 : index
    %c1_101 = arith.constant 1 : index
    %c1_102 = arith.constant 1 : index
    %c0_103 = arith.constant 0 : index
    %c0_104 = arith.constant 0 : index
    %c0_105 = arith.constant 0 : index
    %362 = vector.load %arg0[%c0_100, %c1_101, %c1_102, %c0_103, %c0_104, %c0_105] : memref<2x5x2x2x8x8xf32, #tpu.memory_space<vmem>>, vector<2x1x1x1x7x7xf32>
    %363 = vector.shape_cast %362 : vector<2x1x1x1x7x7xf32> to vector<2x7x7xf32>
    %c12 = arith.constant 12 : index
    %364 = memref.load %arg1[%c12] : memref<225xf32, #tpu.memory_space<smem>>
    %365 = vector.broadcast %364 : f32 to vector<2x7x7xf32>
    %366 = arith.mulf %365, %363 : vector<2x7x7xf32>
    %367 = arith.addf %345, %366 : vector<2x7x7xf32>
    %c57 = arith.constant 57 : index
    %368 = memref.load %arg1[%c57] : memref<225xf32, #tpu.memory_space<smem>>
    %369 = vector.broadcast %368 : f32 to vector<2x7x7xf32>
    %370 = arith.mulf %369, %363 : vector<2x7x7xf32>
    %371 = arith.addf %349, %370 : vector<2x7x7xf32>
    %c102 = arith.constant 102 : index
    %372 = memref.load %arg1[%c102] : memref<225xf32, #tpu.memory_space<smem>>
    %373 = vector.broadcast %372 : f32 to vector<2x7x7xf32>
    %374 = arith.mulf %373, %363 : vector<2x7x7xf32>
    %375 = arith.addf %353, %374 : vector<2x7x7xf32>
    %c147 = arith.constant 147 : index
    %376 = memref.load %arg1[%c147] : memref<225xf32, #tpu.memory_space<smem>>
    %377 = vector.broadcast %376 : f32 to vector<2x7x7xf32>
    %378 = arith.mulf %377, %363 : vector<2x7x7xf32>
    %379 = arith.addf %357, %378 : vector<2x7x7xf32>
    %c192 = arith.constant 192 : index
    %380 = memref.load %arg1[%c192] : memref<225xf32, #tpu.memory_space<smem>>
    %381 = vector.broadcast %380 : f32 to vector<2x7x7xf32>
    %382 = arith.mulf %381, %363 : vector<2x7x7xf32>
    %383 = arith.addf %361, %382 : vector<2x7x7xf32>
    %c0_106 = arith.constant 0 : index
    %c2_107 = arith.constant 2 : index
    %c1_108 = arith.constant 1 : index
    %c0_109 = arith.constant 0 : index
    %c0_110 = arith.constant 0 : index
    %c0_111 = arith.constant 0 : index
    %384 = vector.load %arg0[%c0_106, %c2_107, %c1_108, %c0_109, %c0_110, %c0_111] : memref<2x5x2x2x8x8xf32, #tpu.memory_space<vmem>>, vector<2x1x1x1x7x7xf32>
    %385 = vector.shape_cast %384 : vector<2x1x1x1x7x7xf32> to vector<2x7x7xf32>
    %c21 = arith.constant 21 : index
    %386 = memref.load %arg1[%c21] : memref<225xf32, #tpu.memory_space<smem>>
    %387 = vector.broadcast %386 : f32 to vector<2x7x7xf32>
    %388 = arith.mulf %387, %385 : vector<2x7x7xf32>
    %389 = arith.addf %367, %388 : vector<2x7x7xf32>
    %c66 = arith.constant 66 : index
    %390 = memref.load %arg1[%c66] : memref<225xf32, #tpu.memory_space<smem>>
    %391 = vector.broadcast %390 : f32 to vector<2x7x7xf32>
    %392 = arith.mulf %391, %385 : vector<2x7x7xf32>
    %393 = arith.addf %371, %392 : vector<2x7x7xf32>
    %c111 = arith.constant 111 : index
    %394 = memref.load %arg1[%c111] : memref<225xf32, #tpu.memory_space<smem>>
    %395 = vector.broadcast %394 : f32 to vector<2x7x7xf32>
    %396 = arith.mulf %395, %385 : vector<2x7x7xf32>
    %397 = arith.addf %375, %396 : vector<2x7x7xf32>
    %c156 = arith.constant 156 : index
    %398 = memref.load %arg1[%c156] : memref<225xf32, #tpu.memory_space<smem>>
    %399 = vector.broadcast %398 : f32 to vector<2x7x7xf32>
    %400 = arith.mulf %399, %385 : vector<2x7x7xf32>
    %401 = arith.addf %379, %400 : vector<2x7x7xf32>
    %c201 = arith.constant 201 : index
    %402 = memref.load %arg1[%c201] : memref<225xf32, #tpu.memory_space<smem>>
    %403 = vector.broadcast %402 : f32 to vector<2x7x7xf32>
    %404 = arith.mulf %403, %385 : vector<2x7x7xf32>
    %405 = arith.addf %383, %404 : vector<2x7x7xf32>
    %c0_112 = arith.constant 0 : index
    %c3_113 = arith.constant 3 : index
    %c1_114 = arith.constant 1 : index
    %c0_115 = arith.constant 0 : index
    %c0_116 = arith.constant 0 : index
    %c0_117 = arith.constant 0 : index
    %406 = vector.load %arg0[%c0_112, %c3_113, %c1_114, %c0_115, %c0_116, %c0_117] : memref<2x5x2x2x8x8xf32, #tpu.memory_space<vmem>>, vector<2x1x1x1x7x7xf32>
    %407 = vector.shape_cast %406 : vector<2x1x1x1x7x7xf32> to vector<2x7x7xf32>
    %c30 = arith.constant 30 : index
    %408 = memref.load %arg1[%c30] : memref<225xf32, #tpu.memory_space<smem>>
    %409 = vector.broadcast %408 : f32 to vector<2x7x7xf32>
    %410 = arith.mulf %409, %407 : vector<2x7x7xf32>
    %411 = arith.addf %389, %410 : vector<2x7x7xf32>
    %c75 = arith.constant 75 : index
    %412 = memref.load %arg1[%c75] : memref<225xf32, #tpu.memory_space<smem>>
    %413 = vector.broadcast %412 : f32 to vector<2x7x7xf32>
    %414 = arith.mulf %413, %407 : vector<2x7x7xf32>
    %415 = arith.addf %393, %414 : vector<2x7x7xf32>
    %c120 = arith.constant 120 : index
    %416 = memref.load %arg1[%c120] : memref<225xf32, #tpu.memory_space<smem>>
    %417 = vector.broadcast %416 : f32 to vector<2x7x7xf32>
    %418 = arith.mulf %417, %407 : vector<2x7x7xf32>
    %419 = arith.addf %397, %418 : vector<2x7x7xf32>
    %c165 = arith.constant 165 : index
    %420 = memref.load %arg1[%c165] : memref<225xf32, #tpu.memory_space<smem>>
    %421 = vector.broadcast %420 : f32 to vector<2x7x7xf32>
    %422 = arith.mulf %421, %407 : vector<2x7x7xf32>
    %423 = arith.addf %401, %422 : vector<2x7x7xf32>
    %c210 = arith.constant 210 : index
    %424 = memref.load %arg1[%c210] : memref<225xf32, #tpu.memory_space<smem>>
    %425 = vector.broadcast %424 : f32 to vector<2x7x7xf32>
    %426 = arith.mulf %425, %407 : vector<2x7x7xf32>
    %427 = arith.addf %405, %426 : vector<2x7x7xf32>
    %c0_118 = arith.constant 0 : index
    %c4_119 = arith.constant 4 : index
    %c1_120 = arith.constant 1 : index
    %c0_121 = arith.constant 0 : index
    %c0_122 = arith.constant 0 : index
    %c0_123 = arith.constant 0 : index
    %428 = vector.load %arg0[%c0_118, %c4_119, %c1_120, %c0_121, %c0_122, %c0_123] : memref<2x5x2x2x8x8xf32, #tpu.memory_space<vmem>>, vector<2x1x1x1x7x7xf32>
    %429 = vector.shape_cast %428 : vector<2x1x1x1x7x7xf32> to vector<2x7x7xf32>
    %c39 = arith.constant 39 : index
    %430 = memref.load %arg1[%c39] : memref<225xf32, #tpu.memory_space<smem>>
    %431 = vector.broadcast %430 : f32 to vector<2x7x7xf32>
    %432 = arith.mulf %431, %429 : vector<2x7x7xf32>
    %433 = arith.addf %411, %432 : vector<2x7x7xf32>
    %c84 = arith.constant 84 : index
    %434 = memref.load %arg1[%c84] : memref<225xf32, #tpu.memory_space<smem>>
    %435 = vector.broadcast %434 : f32 to vector<2x7x7xf32>
    %436 = arith.mulf %435, %429 : vector<2x7x7xf32>
    %437 = arith.addf %415, %436 : vector<2x7x7xf32>
    %c129 = arith.constant 129 : index
    %438 = memref.load %arg1[%c129] : memref<225xf32, #tpu.memory_space<smem>>
    %439 = vector.broadcast %438 : f32 to vector<2x7x7xf32>
    %440 = arith.mulf %439, %429 : vector<2x7x7xf32>
    %441 = arith.addf %419, %440 : vector<2x7x7xf32>
    %c174 = arith.constant 174 : index
    %442 = memref.load %arg1[%c174] : memref<225xf32, #tpu.memory_space<smem>>
    %443 = vector.broadcast %442 : f32 to vector<2x7x7xf32>
    %444 = arith.mulf %443, %429 : vector<2x7x7xf32>
    %445 = arith.addf %423, %444 : vector<2x7x7xf32>
    %c219 = arith.constant 219 : index
    %446 = memref.load %arg1[%c219] : memref<225xf32, #tpu.memory_space<smem>>
    %447 = vector.broadcast %446 : f32 to vector<2x7x7xf32>
    %448 = arith.mulf %447, %429 : vector<2x7x7xf32>
    %449 = arith.addf %427, %448 : vector<2x7x7xf32>
    %c0_124 = arith.constant 0 : index
    %c0_125 = arith.constant 0 : index
    %c1_126 = arith.constant 1 : index
    %c1_127 = arith.constant 1 : index
    %c0_128 = arith.constant 0 : index
    %c0_129 = arith.constant 0 : index
    %450 = vector.load %arg0[%c0_124, %c0_125, %c1_126, %c1_127, %c0_128, %c0_129] : memref<2x5x2x2x8x8xf32, #tpu.memory_space<vmem>>, vector<2x1x1x1x7x7xf32>
    %451 = vector.shape_cast %450 : vector<2x1x1x1x7x7xf32> to vector<2x7x7xf32>
    %c4_130 = arith.constant 4 : index
    %452 = memref.load %arg1[%c4_130] : memref<225xf32, #tpu.memory_space<smem>>
    %453 = vector.broadcast %452 : f32 to vector<2x7x7xf32>
    %454 = arith.mulf %453, %451 : vector<2x7x7xf32>
    %455 = arith.addf %433, %454 : vector<2x7x7xf32>
    %c49 = arith.constant 49 : index
    %456 = memref.load %arg1[%c49] : memref<225xf32, #tpu.memory_space<smem>>
    %457 = vector.broadcast %456 : f32 to vector<2x7x7xf32>
    %458 = arith.mulf %457, %451 : vector<2x7x7xf32>
    %459 = arith.addf %437, %458 : vector<2x7x7xf32>
    %c94 = arith.constant 94 : index
    %460 = memref.load %arg1[%c94] : memref<225xf32, #tpu.memory_space<smem>>
    %461 = vector.broadcast %460 : f32 to vector<2x7x7xf32>
    %462 = arith.mulf %461, %451 : vector<2x7x7xf32>
    %463 = arith.addf %441, %462 : vector<2x7x7xf32>
    %c139 = arith.constant 139 : index
    %464 = memref.load %arg1[%c139] : memref<225xf32, #tpu.memory_space<smem>>
    %465 = vector.broadcast %464 : f32 to vector<2x7x7xf32>
    %466 = arith.mulf %465, %451 : vector<2x7x7xf32>
    %467 = arith.addf %445, %466 : vector<2x7x7xf32>
    %c184 = arith.constant 184 : index
    %468 = memref.load %arg1[%c184] : memref<225xf32, #tpu.memory_space<smem>>
    %469 = vector.broadcast %468 : f32 to vector<2x7x7xf32>
    %470 = arith.mulf %469, %451 : vector<2x7x7xf32>
    %471 = arith.addf %449, %470 : vector<2x7x7xf32>
    %c0_131 = arith.constant 0 : index
    %c1_132 = arith.constant 1 : index
    %c1_133 = arith.constant 1 : index
    %c1_134 = arith.constant 1 : index
    %c0_135 = arith.constant 0 : index
    %c0_136 = arith.constant 0 : index
    %472 = vector.load %arg0[%c0_131, %c1_132, %c1_133, %c1_134, %c0_135, %c0_136] : memref<2x5x2x2x8x8xf32, #tpu.memory_space<vmem>>, vector<2x1x1x1x7x7xf32>
    %473 = vector.shape_cast %472 : vector<2x1x1x1x7x7xf32> to vector<2x7x7xf32>
    %c13 = arith.constant 13 : index
    %474 = memref.load %arg1[%c13] : memref<225xf32, #tpu.memory_space<smem>>
    %475 = vector.broadcast %474 : f32 to vector<2x7x7xf32>
    %476 = arith.mulf %475, %473 : vector<2x7x7xf32>
    %477 = arith.addf %455, %476 : vector<2x7x7xf32>
    %c58 = arith.constant 58 : index
    %478 = memref.load %arg1[%c58] : memref<225xf32, #tpu.memory_space<smem>>
    %479 = vector.broadcast %478 : f32 to vector<2x7x7xf32>
    %480 = arith.mulf %479, %473 : vector<2x7x7xf32>
    %481 = arith.addf %459, %480 : vector<2x7x7xf32>
    %c103 = arith.constant 103 : index
    %482 = memref.load %arg1[%c103] : memref<225xf32, #tpu.memory_space<smem>>
    %483 = vector.broadcast %482 : f32 to vector<2x7x7xf32>
    %484 = arith.mulf %483, %473 : vector<2x7x7xf32>
    %485 = arith.addf %463, %484 : vector<2x7x7xf32>
    %c148 = arith.constant 148 : index
    %486 = memref.load %arg1[%c148] : memref<225xf32, #tpu.memory_space<smem>>
    %487 = vector.broadcast %486 : f32 to vector<2x7x7xf32>
    %488 = arith.mulf %487, %473 : vector<2x7x7xf32>
    %489 = arith.addf %467, %488 : vector<2x7x7xf32>
    %c193 = arith.constant 193 : index
    %490 = memref.load %arg1[%c193] : memref<225xf32, #tpu.memory_space<smem>>
    %491 = vector.broadcast %490 : f32 to vector<2x7x7xf32>
    %492 = arith.mulf %491, %473 : vector<2x7x7xf32>
    %493 = arith.addf %471, %492 : vector<2x7x7xf32>
    %c0_137 = arith.constant 0 : index
    %c2_138 = arith.constant 2 : index
    %c1_139 = arith.constant 1 : index
    %c1_140 = arith.constant 1 : index
    %c0_141 = arith.constant 0 : index
    %c0_142 = arith.constant 0 : index
    %494 = vector.load %arg0[%c0_137, %c2_138, %c1_139, %c1_140, %c0_141, %c0_142] : memref<2x5x2x2x8x8xf32, #tpu.memory_space<vmem>>, vector<2x1x1x1x7x7xf32>
    %495 = vector.shape_cast %494 : vector<2x1x1x1x7x7xf32> to vector<2x7x7xf32>
    %c22 = arith.constant 22 : index
    %496 = memref.load %arg1[%c22] : memref<225xf32, #tpu.memory_space<smem>>
    %497 = vector.broadcast %496 : f32 to vector<2x7x7xf32>
    %498 = arith.mulf %497, %495 : vector<2x7x7xf32>
    %499 = arith.addf %477, %498 : vector<2x7x7xf32>
    %c67 = arith.constant 67 : index
    %500 = memref.load %arg1[%c67] : memref<225xf32, #tpu.memory_space<smem>>
    %501 = vector.broadcast %500 : f32 to vector<2x7x7xf32>
    %502 = arith.mulf %501, %495 : vector<2x7x7xf32>
    %503 = arith.addf %481, %502 : vector<2x7x7xf32>
    %c112 = arith.constant 112 : index
    %504 = memref.load %arg1[%c112] : memref<225xf32, #tpu.memory_space<smem>>
    %505 = vector.broadcast %504 : f32 to vector<2x7x7xf32>
    %506 = arith.mulf %505, %495 : vector<2x7x7xf32>
    %507 = arith.addf %485, %506 : vector<2x7x7xf32>
    %c157 = arith.constant 157 : index
    %508 = memref.load %arg1[%c157] : memref<225xf32, #tpu.memory_space<smem>>
    %509 = vector.broadcast %508 : f32 to vector<2x7x7xf32>
    %510 = arith.mulf %509, %495 : vector<2x7x7xf32>
    %511 = arith.addf %489, %510 : vector<2x7x7xf32>
    %c202 = arith.constant 202 : index
    %512 = memref.load %arg1[%c202] : memref<225xf32, #tpu.memory_space<smem>>
    %513 = vector.broadcast %512 : f32 to vector<2x7x7xf32>
    %514 = arith.mulf %513, %495 : vector<2x7x7xf32>
    %515 = arith.addf %493, %514 : vector<2x7x7xf32>
    %c0_143 = arith.constant 0 : index
    %c3_144 = arith.constant 3 : index
    %c1_145 = arith.constant 1 : index
    %c1_146 = arith.constant 1 : index
    %c0_147 = arith.constant 0 : index
    %c0_148 = arith.constant 0 : index
    %516 = vector.load %arg0[%c0_143, %c3_144, %c1_145, %c1_146, %c0_147, %c0_148] : memref<2x5x2x2x8x8xf32, #tpu.memory_space<vmem>>, vector<2x1x1x1x7x7xf32>
    %517 = vector.shape_cast %516 : vector<2x1x1x1x7x7xf32> to vector<2x7x7xf32>
    %c31 = arith.constant 31 : index
    %518 = memref.load %arg1[%c31] : memref<225xf32, #tpu.memory_space<smem>>
    %519 = vector.broadcast %518 : f32 to vector<2x7x7xf32>
    %520 = arith.mulf %519, %517 : vector<2x7x7xf32>
    %521 = arith.addf %499, %520 : vector<2x7x7xf32>
    %c76 = arith.constant 76 : index
    %522 = memref.load %arg1[%c76] : memref<225xf32, #tpu.memory_space<smem>>
    %523 = vector.broadcast %522 : f32 to vector<2x7x7xf32>
    %524 = arith.mulf %523, %517 : vector<2x7x7xf32>
    %525 = arith.addf %503, %524 : vector<2x7x7xf32>
    %c121 = arith.constant 121 : index
    %526 = memref.load %arg1[%c121] : memref<225xf32, #tpu.memory_space<smem>>
    %527 = vector.broadcast %526 : f32 to vector<2x7x7xf32>
    %528 = arith.mulf %527, %517 : vector<2x7x7xf32>
    %529 = arith.addf %507, %528 : vector<2x7x7xf32>
    %c166 = arith.constant 166 : index
    %530 = memref.load %arg1[%c166] : memref<225xf32, #tpu.memory_space<smem>>
    %531 = vector.broadcast %530 : f32 to vector<2x7x7xf32>
    %532 = arith.mulf %531, %517 : vector<2x7x7xf32>
    %533 = arith.addf %511, %532 : vector<2x7x7xf32>
    %c211 = arith.constant 211 : index
    %534 = memref.load %arg1[%c211] : memref<225xf32, #tpu.memory_space<smem>>
    %535 = vector.broadcast %534 : f32 to vector<2x7x7xf32>
    %536 = arith.mulf %535, %517 : vector<2x7x7xf32>
    %537 = arith.addf %515, %536 : vector<2x7x7xf32>
    %c0_149 = arith.constant 0 : index
    %c4_150 = arith.constant 4 : index
    %c1_151 = arith.constant 1 : index
    %c1_152 = arith.constant 1 : index
    %c0_153 = arith.constant 0 : index
    %c0_154 = arith.constant 0 : index
    %538 = vector.load %arg0[%c0_149, %c4_150, %c1_151, %c1_152, %c0_153, %c0_154] : memref<2x5x2x2x8x8xf32, #tpu.memory_space<vmem>>, vector<2x1x1x1x7x7xf32>
    %539 = vector.shape_cast %538 : vector<2x1x1x1x7x7xf32> to vector<2x7x7xf32>
    %c40 = arith.constant 40 : index
    %540 = memref.load %arg1[%c40] : memref<225xf32, #tpu.memory_space<smem>>
    %541 = vector.broadcast %540 : f32 to vector<2x7x7xf32>
    %542 = arith.mulf %541, %539 : vector<2x7x7xf32>
    %543 = arith.addf %521, %542 : vector<2x7x7xf32>
    %c85 = arith.constant 85 : index
    %544 = memref.load %arg1[%c85] : memref<225xf32, #tpu.memory_space<smem>>
    %545 = vector.broadcast %544 : f32 to vector<2x7x7xf32>
    %546 = arith.mulf %545, %539 : vector<2x7x7xf32>
    %547 = arith.addf %525, %546 : vector<2x7x7xf32>
    %c130 = arith.constant 130 : index
    %548 = memref.load %arg1[%c130] : memref<225xf32, #tpu.memory_space<smem>>
    %549 = vector.broadcast %548 : f32 to vector<2x7x7xf32>
    %550 = arith.mulf %549, %539 : vector<2x7x7xf32>
    %551 = arith.addf %529, %550 : vector<2x7x7xf32>
    %c175 = arith.constant 175 : index
    %552 = memref.load %arg1[%c175] : memref<225xf32, #tpu.memory_space<smem>>
    %553 = vector.broadcast %552 : f32 to vector<2x7x7xf32>
    %554 = arith.mulf %553, %539 : vector<2x7x7xf32>
    %555 = arith.addf %533, %554 : vector<2x7x7xf32>
    %c220 = arith.constant 220 : index
    %556 = memref.load %arg1[%c220] : memref<225xf32, #tpu.memory_space<smem>>
    %557 = vector.broadcast %556 : f32 to vector<2x7x7xf32>
    %558 = arith.mulf %557, %539 : vector<2x7x7xf32>
    %559 = arith.addf %537, %558 : vector<2x7x7xf32>
    %c0_155 = arith.constant 0 : index
    %c0_156 = arith.constant 0 : index
    %c1_157 = arith.constant 1 : index
    %c0_158 = arith.constant 0 : index
    %c0_159 = arith.constant 0 : index
    %c1_160 = arith.constant 1 : index
    %560 = vector.load %arg0[%c0_155, %c0_156, %c1_157, %c0_158, %c0_159, %c1_160] : memref<2x5x2x2x8x8xf32, #tpu.memory_space<vmem>>, vector<2x1x1x1x7x7xf32>
    %561 = vector.shape_cast %560 : vector<2x1x1x1x7x7xf32> to vector<2x7x7xf32>
    %c5 = arith.constant 5 : index
    %562 = memref.load %arg1[%c5] : memref<225xf32, #tpu.memory_space<smem>>
    %563 = vector.broadcast %562 : f32 to vector<2x7x7xf32>
    %564 = arith.mulf %563, %561 : vector<2x7x7xf32>
    %565 = arith.addf %543, %564 : vector<2x7x7xf32>
    %c50 = arith.constant 50 : index
    %566 = memref.load %arg1[%c50] : memref<225xf32, #tpu.memory_space<smem>>
    %567 = vector.broadcast %566 : f32 to vector<2x7x7xf32>
    %568 = arith.mulf %567, %561 : vector<2x7x7xf32>
    %569 = arith.addf %547, %568 : vector<2x7x7xf32>
    %c95 = arith.constant 95 : index
    %570 = memref.load %arg1[%c95] : memref<225xf32, #tpu.memory_space<smem>>
    %571 = vector.broadcast %570 : f32 to vector<2x7x7xf32>
    %572 = arith.mulf %571, %561 : vector<2x7x7xf32>
    %573 = arith.addf %551, %572 : vector<2x7x7xf32>
    %c140 = arith.constant 140 : index
    %574 = memref.load %arg1[%c140] : memref<225xf32, #tpu.memory_space<smem>>
    %575 = vector.broadcast %574 : f32 to vector<2x7x7xf32>
    %576 = arith.mulf %575, %561 : vector<2x7x7xf32>
    %577 = arith.addf %555, %576 : vector<2x7x7xf32>
    %c185 = arith.constant 185 : index
    %578 = memref.load %arg1[%c185] : memref<225xf32, #tpu.memory_space<smem>>
    %579 = vector.broadcast %578 : f32 to vector<2x7x7xf32>
    %580 = arith.mulf %579, %561 : vector<2x7x7xf32>
    %581 = arith.addf %559, %580 : vector<2x7x7xf32>
    %c0_161 = arith.constant 0 : index
    %c1_162 = arith.constant 1 : index
    %c1_163 = arith.constant 1 : index
    %c0_164 = arith.constant 0 : index
    %c0_165 = arith.constant 0 : index
    %c1_166 = arith.constant 1 : index
    %582 = vector.load %arg0[%c0_161, %c1_162, %c1_163, %c0_164, %c0_165, %c1_166] : memref<2x5x2x2x8x8xf32, #tpu.memory_space<vmem>>, vector<2x1x1x1x7x7xf32>
    %583 = vector.shape_cast %582 : vector<2x1x1x1x7x7xf32> to vector<2x7x7xf32>
    %c14 = arith.constant 14 : index
    %584 = memref.load %arg1[%c14] : memref<225xf32, #tpu.memory_space<smem>>
    %585 = vector.broadcast %584 : f32 to vector<2x7x7xf32>
    %586 = arith.mulf %585, %583 : vector<2x7x7xf32>
    %587 = arith.addf %565, %586 : vector<2x7x7xf32>
    %c59 = arith.constant 59 : index
    %588 = memref.load %arg1[%c59] : memref<225xf32, #tpu.memory_space<smem>>
    %589 = vector.broadcast %588 : f32 to vector<2x7x7xf32>
    %590 = arith.mulf %589, %583 : vector<2x7x7xf32>
    %591 = arith.addf %569, %590 : vector<2x7x7xf32>
    %c104 = arith.constant 104 : index
    %592 = memref.load %arg1[%c104] : memref<225xf32, #tpu.memory_space<smem>>
    %593 = vector.broadcast %592 : f32 to vector<2x7x7xf32>
    %594 = arith.mulf %593, %583 : vector<2x7x7xf32>
    %595 = arith.addf %573, %594 : vector<2x7x7xf32>
    %c149 = arith.constant 149 : index
    %596 = memref.load %arg1[%c149] : memref<225xf32, #tpu.memory_space<smem>>
    %597 = vector.broadcast %596 : f32 to vector<2x7x7xf32>
    %598 = arith.mulf %597, %583 : vector<2x7x7xf32>
    %599 = arith.addf %577, %598 : vector<2x7x7xf32>
    %c194 = arith.constant 194 : index
    %600 = memref.load %arg1[%c194] : memref<225xf32, #tpu.memory_space<smem>>
    %601 = vector.broadcast %600 : f32 to vector<2x7x7xf32>
    %602 = arith.mulf %601, %583 : vector<2x7x7xf32>
    %603 = arith.addf %581, %602 : vector<2x7x7xf32>
    %c0_167 = arith.constant 0 : index
    %c2_168 = arith.constant 2 : index
    %c1_169 = arith.constant 1 : index
    %c0_170 = arith.constant 0 : index
    %c0_171 = arith.constant 0 : index
    %c1_172 = arith.constant 1 : index
    %604 = vector.load %arg0[%c0_167, %c2_168, %c1_169, %c0_170, %c0_171, %c1_172] : memref<2x5x2x2x8x8xf32, #tpu.memory_space<vmem>>, vector<2x1x1x1x7x7xf32>
    %605 = vector.shape_cast %604 : vector<2x1x1x1x7x7xf32> to vector<2x7x7xf32>
    %c23 = arith.constant 23 : index
    %606 = memref.load %arg1[%c23] : memref<225xf32, #tpu.memory_space<smem>>
    %607 = vector.broadcast %606 : f32 to vector<2x7x7xf32>
    %608 = arith.mulf %607, %605 : vector<2x7x7xf32>
    %609 = arith.addf %587, %608 : vector<2x7x7xf32>
    %c68 = arith.constant 68 : index
    %610 = memref.load %arg1[%c68] : memref<225xf32, #tpu.memory_space<smem>>
    %611 = vector.broadcast %610 : f32 to vector<2x7x7xf32>
    %612 = arith.mulf %611, %605 : vector<2x7x7xf32>
    %613 = arith.addf %591, %612 : vector<2x7x7xf32>
    %c113 = arith.constant 113 : index
    %614 = memref.load %arg1[%c113] : memref<225xf32, #tpu.memory_space<smem>>
    %615 = vector.broadcast %614 : f32 to vector<2x7x7xf32>
    %616 = arith.mulf %615, %605 : vector<2x7x7xf32>
    %617 = arith.addf %595, %616 : vector<2x7x7xf32>
    %c158 = arith.constant 158 : index
    %618 = memref.load %arg1[%c158] : memref<225xf32, #tpu.memory_space<smem>>
    %619 = vector.broadcast %618 : f32 to vector<2x7x7xf32>
    %620 = arith.mulf %619, %605 : vector<2x7x7xf32>
    %621 = arith.addf %599, %620 : vector<2x7x7xf32>
    %c203 = arith.constant 203 : index
    %622 = memref.load %arg1[%c203] : memref<225xf32, #tpu.memory_space<smem>>
    %623 = vector.broadcast %622 : f32 to vector<2x7x7xf32>
    %624 = arith.mulf %623, %605 : vector<2x7x7xf32>
    %625 = arith.addf %603, %624 : vector<2x7x7xf32>
    %c0_173 = arith.constant 0 : index
    %c3_174 = arith.constant 3 : index
    %c1_175 = arith.constant 1 : index
    %c0_176 = arith.constant 0 : index
    %c0_177 = arith.constant 0 : index
    %c1_178 = arith.constant 1 : index
    %626 = vector.load %arg0[%c0_173, %c3_174, %c1_175, %c0_176, %c0_177, %c1_178] : memref<2x5x2x2x8x8xf32, #tpu.memory_space<vmem>>, vector<2x1x1x1x7x7xf32>
    %627 = vector.shape_cast %626 : vector<2x1x1x1x7x7xf32> to vector<2x7x7xf32>
    %c32 = arith.constant 32 : index
    %628 = memref.load %arg1[%c32] : memref<225xf32, #tpu.memory_space<smem>>
    %629 = vector.broadcast %628 : f32 to vector<2x7x7xf32>
    %630 = arith.mulf %629, %627 : vector<2x7x7xf32>
    %631 = arith.addf %609, %630 : vector<2x7x7xf32>
    %c77 = arith.constant 77 : index
    %632 = memref.load %arg1[%c77] : memref<225xf32, #tpu.memory_space<smem>>
    %633 = vector.broadcast %632 : f32 to vector<2x7x7xf32>
    %634 = arith.mulf %633, %627 : vector<2x7x7xf32>
    %635 = arith.addf %613, %634 : vector<2x7x7xf32>
    %c122 = arith.constant 122 : index
    %636 = memref.load %arg1[%c122] : memref<225xf32, #tpu.memory_space<smem>>
    %637 = vector.broadcast %636 : f32 to vector<2x7x7xf32>
    %638 = arith.mulf %637, %627 : vector<2x7x7xf32>
    %639 = arith.addf %617, %638 : vector<2x7x7xf32>
    %c167 = arith.constant 167 : index
    %640 = memref.load %arg1[%c167] : memref<225xf32, #tpu.memory_space<smem>>
    %641 = vector.broadcast %640 : f32 to vector<2x7x7xf32>
    %642 = arith.mulf %641, %627 : vector<2x7x7xf32>
    %643 = arith.addf %621, %642 : vector<2x7x7xf32>
    %c212 = arith.constant 212 : index
    %644 = memref.load %arg1[%c212] : memref<225xf32, #tpu.memory_space<smem>>
    %645 = vector.broadcast %644 : f32 to vector<2x7x7xf32>
    %646 = arith.mulf %645, %627 : vector<2x7x7xf32>
    %647 = arith.addf %625, %646 : vector<2x7x7xf32>
    %c0_179 = arith.constant 0 : index
    %c4_180 = arith.constant 4 : index
    %c1_181 = arith.constant 1 : index
    %c0_182 = arith.constant 0 : index
    %c0_183 = arith.constant 0 : index
    %c1_184 = arith.constant 1 : index
    %648 = vector.load %arg0[%c0_179, %c4_180, %c1_181, %c0_182, %c0_183, %c1_184] : memref<2x5x2x2x8x8xf32, #tpu.memory_space<vmem>>, vector<2x1x1x1x7x7xf32>
    %649 = vector.shape_cast %648 : vector<2x1x1x1x7x7xf32> to vector<2x7x7xf32>
    %c41 = arith.constant 41 : index
    %650 = memref.load %arg1[%c41] : memref<225xf32, #tpu.memory_space<smem>>
    %651 = vector.broadcast %650 : f32 to vector<2x7x7xf32>
    %652 = arith.mulf %651, %649 : vector<2x7x7xf32>
    %653 = arith.addf %631, %652 : vector<2x7x7xf32>
    %c86 = arith.constant 86 : index
    %654 = memref.load %arg1[%c86] : memref<225xf32, #tpu.memory_space<smem>>
    %655 = vector.broadcast %654 : f32 to vector<2x7x7xf32>
    %656 = arith.mulf %655, %649 : vector<2x7x7xf32>
    %657 = arith.addf %635, %656 : vector<2x7x7xf32>
    %c131 = arith.constant 131 : index
    %658 = memref.load %arg1[%c131] : memref<225xf32, #tpu.memory_space<smem>>
    %659 = vector.broadcast %658 : f32 to vector<2x7x7xf32>
    %660 = arith.mulf %659, %649 : vector<2x7x7xf32>
    %661 = arith.addf %639, %660 : vector<2x7x7xf32>
    %c176 = arith.constant 176 : index
    %662 = memref.load %arg1[%c176] : memref<225xf32, #tpu.memory_space<smem>>
    %663 = vector.broadcast %662 : f32 to vector<2x7x7xf32>
    %664 = arith.mulf %663, %649 : vector<2x7x7xf32>
    %665 = arith.addf %643, %664 : vector<2x7x7xf32>
    %c221 = arith.constant 221 : index
    %666 = memref.load %arg1[%c221] : memref<225xf32, #tpu.memory_space<smem>>
    %667 = vector.broadcast %666 : f32 to vector<2x7x7xf32>
    %668 = arith.mulf %667, %649 : vector<2x7x7xf32>
    %669 = arith.addf %647, %668 : vector<2x7x7xf32>
    %c0_185 = arith.constant 0 : index
    %c0_186 = arith.constant 0 : index
    %c0_187 = arith.constant 0 : index
    %c0_188 = arith.constant 0 : index
    %c1_189 = arith.constant 1 : index
    %c0_190 = arith.constant 0 : index
    %670 = vector.load %arg0[%c0_185, %c0_186, %c0_187, %c0_188, %c1_189, %c0_190] : memref<2x5x2x2x8x8xf32, #tpu.memory_space<vmem>>, vector<2x1x1x1x7x7xf32>
    %671 = vector.shape_cast %670 : vector<2x1x1x1x7x7xf32> to vector<2x7x7xf32>
    %c6 = arith.constant 6 : index
    %672 = memref.load %arg1[%c6] : memref<225xf32, #tpu.memory_space<smem>>
    %673 = vector.broadcast %672 : f32 to vector<2x7x7xf32>
    %674 = arith.mulf %673, %671 : vector<2x7x7xf32>
    %675 = arith.addf %653, %674 : vector<2x7x7xf32>
    %c51 = arith.constant 51 : index
    %676 = memref.load %arg1[%c51] : memref<225xf32, #tpu.memory_space<smem>>
    %677 = vector.broadcast %676 : f32 to vector<2x7x7xf32>
    %678 = arith.mulf %677, %671 : vector<2x7x7xf32>
    %679 = arith.addf %657, %678 : vector<2x7x7xf32>
    %c96 = arith.constant 96 : index
    %680 = memref.load %arg1[%c96] : memref<225xf32, #tpu.memory_space<smem>>
    %681 = vector.broadcast %680 : f32 to vector<2x7x7xf32>
    %682 = arith.mulf %681, %671 : vector<2x7x7xf32>
    %683 = arith.addf %661, %682 : vector<2x7x7xf32>
    %c141 = arith.constant 141 : index
    %684 = memref.load %arg1[%c141] : memref<225xf32, #tpu.memory_space<smem>>
    %685 = vector.broadcast %684 : f32 to vector<2x7x7xf32>
    %686 = arith.mulf %685, %671 : vector<2x7x7xf32>
    %687 = arith.addf %665, %686 : vector<2x7x7xf32>
    %c186 = arith.constant 186 : index
    %688 = memref.load %arg1[%c186] : memref<225xf32, #tpu.memory_space<smem>>
    %689 = vector.broadcast %688 : f32 to vector<2x7x7xf32>
    %690 = arith.mulf %689, %671 : vector<2x7x7xf32>
    %691 = arith.addf %669, %690 : vector<2x7x7xf32>
    %c0_191 = arith.constant 0 : index
    %c1_192 = arith.constant 1 : index
    %c0_193 = arith.constant 0 : index
    %c0_194 = arith.constant 0 : index
    %c1_195 = arith.constant 1 : index
    %c0_196 = arith.constant 0 : index
    %692 = vector.load %arg0[%c0_191, %c1_192, %c0_193, %c0_194, %c1_195, %c0_196] : memref<2x5x2x2x8x8xf32, #tpu.memory_space<vmem>>, vector<2x1x1x1x7x7xf32>
    %693 = vector.shape_cast %692 : vector<2x1x1x1x7x7xf32> to vector<2x7x7xf32>
    %c15 = arith.constant 15 : index
    %694 = memref.load %arg1[%c15] : memref<225xf32, #tpu.memory_space<smem>>
    %695 = vector.broadcast %694 : f32 to vector<2x7x7xf32>
    %696 = arith.mulf %695, %693 : vector<2x7x7xf32>
    %697 = arith.addf %675, %696 : vector<2x7x7xf32>
    %c60 = arith.constant 60 : index
    %698 = memref.load %arg1[%c60] : memref<225xf32, #tpu.memory_space<smem>>
    %699 = vector.broadcast %698 : f32 to vector<2x7x7xf32>
    %700 = arith.mulf %699, %693 : vector<2x7x7xf32>
    %701 = arith.addf %679, %700 : vector<2x7x7xf32>
    %c105 = arith.constant 105 : index
    %702 = memref.load %arg1[%c105] : memref<225xf32, #tpu.memory_space<smem>>
    %703 = vector.broadcast %702 : f32 to vector<2x7x7xf32>
    %704 = arith.mulf %703, %693 : vector<2x7x7xf32>
    %705 = arith.addf %683, %704 : vector<2x7x7xf32>
    %c150 = arith.constant 150 : index
    %706 = memref.load %arg1[%c150] : memref<225xf32, #tpu.memory_space<smem>>
    %707 = vector.broadcast %706 : f32 to vector<2x7x7xf32>
    %708 = arith.mulf %707, %693 : vector<2x7x7xf32>
    %709 = arith.addf %687, %708 : vector<2x7x7xf32>
    %c195 = arith.constant 195 : index
    %710 = memref.load %arg1[%c195] : memref<225xf32, #tpu.memory_space<smem>>
    %711 = vector.broadcast %710 : f32 to vector<2x7x7xf32>
    %712 = arith.mulf %711, %693 : vector<2x7x7xf32>
    %713 = arith.addf %691, %712 : vector<2x7x7xf32>
    %c0_197 = arith.constant 0 : index
    %c2_198 = arith.constant 2 : index
    %c0_199 = arith.constant 0 : index
    %c0_200 = arith.constant 0 : index
    %c1_201 = arith.constant 1 : index
    %c0_202 = arith.constant 0 : index
    %714 = vector.load %arg0[%c0_197, %c2_198, %c0_199, %c0_200, %c1_201, %c0_202] : memref<2x5x2x2x8x8xf32, #tpu.memory_space<vmem>>, vector<2x1x1x1x7x7xf32>
    %715 = vector.shape_cast %714 : vector<2x1x1x1x7x7xf32> to vector<2x7x7xf32>
    %c24 = arith.constant 24 : index
    %716 = memref.load %arg1[%c24] : memref<225xf32, #tpu.memory_space<smem>>
    %717 = vector.broadcast %716 : f32 to vector<2x7x7xf32>
    %718 = arith.mulf %717, %715 : vector<2x7x7xf32>
    %719 = arith.addf %697, %718 : vector<2x7x7xf32>
    %c69 = arith.constant 69 : index
    %720 = memref.load %arg1[%c69] : memref<225xf32, #tpu.memory_space<smem>>
    %721 = vector.broadcast %720 : f32 to vector<2x7x7xf32>
    %722 = arith.mulf %721, %715 : vector<2x7x7xf32>
    %723 = arith.addf %701, %722 : vector<2x7x7xf32>
    %c114 = arith.constant 114 : index
    %724 = memref.load %arg1[%c114] : memref<225xf32, #tpu.memory_space<smem>>
    %725 = vector.broadcast %724 : f32 to vector<2x7x7xf32>
    %726 = arith.mulf %725, %715 : vector<2x7x7xf32>
    %727 = arith.addf %705, %726 : vector<2x7x7xf32>
    %c159 = arith.constant 159 : index
    %728 = memref.load %arg1[%c159] : memref<225xf32, #tpu.memory_space<smem>>
    %729 = vector.broadcast %728 : f32 to vector<2x7x7xf32>
    %730 = arith.mulf %729, %715 : vector<2x7x7xf32>
    %731 = arith.addf %709, %730 : vector<2x7x7xf32>
    %c204 = arith.constant 204 : index
    %732 = memref.load %arg1[%c204] : memref<225xf32, #tpu.memory_space<smem>>
    %733 = vector.broadcast %732 : f32 to vector<2x7x7xf32>
    %734 = arith.mulf %733, %715 : vector<2x7x7xf32>
    %735 = arith.addf %713, %734 : vector<2x7x7xf32>
    %c0_203 = arith.constant 0 : index
    %c3_204 = arith.constant 3 : index
    %c0_205 = arith.constant 0 : index
    %c0_206 = arith.constant 0 : index
    %c1_207 = arith.constant 1 : index
    %c0_208 = arith.constant 0 : index
    %736 = vector.load %arg0[%c0_203, %c3_204, %c0_205, %c0_206, %c1_207, %c0_208] : memref<2x5x2x2x8x8xf32, #tpu.memory_space<vmem>>, vector<2x1x1x1x7x7xf32>
    %737 = vector.shape_cast %736 : vector<2x1x1x1x7x7xf32> to vector<2x7x7xf32>
    %c33 = arith.constant 33 : index
    %738 = memref.load %arg1[%c33] : memref<225xf32, #tpu.memory_space<smem>>
    %739 = vector.broadcast %738 : f32 to vector<2x7x7xf32>
    %740 = arith.mulf %739, %737 : vector<2x7x7xf32>
    %741 = arith.addf %719, %740 : vector<2x7x7xf32>
    %c78 = arith.constant 78 : index
    %742 = memref.load %arg1[%c78] : memref<225xf32, #tpu.memory_space<smem>>
    %743 = vector.broadcast %742 : f32 to vector<2x7x7xf32>
    %744 = arith.mulf %743, %737 : vector<2x7x7xf32>
    %745 = arith.addf %723, %744 : vector<2x7x7xf32>
    %c123 = arith.constant 123 : index
    %746 = memref.load %arg1[%c123] : memref<225xf32, #tpu.memory_space<smem>>
    %747 = vector.broadcast %746 : f32 to vector<2x7x7xf32>
    %748 = arith.mulf %747, %737 : vector<2x7x7xf32>
    %749 = arith.addf %727, %748 : vector<2x7x7xf32>
    %c168 = arith.constant 168 : index
    %750 = memref.load %arg1[%c168] : memref<225xf32, #tpu.memory_space<smem>>
    %751 = vector.broadcast %750 : f32 to vector<2x7x7xf32>
    %752 = arith.mulf %751, %737 : vector<2x7x7xf32>
    %753 = arith.addf %731, %752 : vector<2x7x7xf32>
    %c213 = arith.constant 213 : index
    %754 = memref.load %arg1[%c213] : memref<225xf32, #tpu.memory_space<smem>>
    %755 = vector.broadcast %754 : f32 to vector<2x7x7xf32>
    %756 = arith.mulf %755, %737 : vector<2x7x7xf32>
    %757 = arith.addf %735, %756 : vector<2x7x7xf32>
    %c0_209 = arith.constant 0 : index
    %c4_210 = arith.constant 4 : index
    %c0_211 = arith.constant 0 : index
    %c0_212 = arith.constant 0 : index
    %c1_213 = arith.constant 1 : index
    %c0_214 = arith.constant 0 : index
    %758 = vector.load %arg0[%c0_209, %c4_210, %c0_211, %c0_212, %c1_213, %c0_214] : memref<2x5x2x2x8x8xf32, #tpu.memory_space<vmem>>, vector<2x1x1x1x7x7xf32>
    %759 = vector.shape_cast %758 : vector<2x1x1x1x7x7xf32> to vector<2x7x7xf32>
    %c42 = arith.constant 42 : index
    %760 = memref.load %arg1[%c42] : memref<225xf32, #tpu.memory_space<smem>>
    %761 = vector.broadcast %760 : f32 to vector<2x7x7xf32>
    %762 = arith.mulf %761, %759 : vector<2x7x7xf32>
    %763 = arith.addf %741, %762 : vector<2x7x7xf32>
    %c87 = arith.constant 87 : index
    %764 = memref.load %arg1[%c87] : memref<225xf32, #tpu.memory_space<smem>>
    %765 = vector.broadcast %764 : f32 to vector<2x7x7xf32>
    %766 = arith.mulf %765, %759 : vector<2x7x7xf32>
    %767 = arith.addf %745, %766 : vector<2x7x7xf32>
    %c132 = arith.constant 132 : index
    %768 = memref.load %arg1[%c132] : memref<225xf32, #tpu.memory_space<smem>>
    %769 = vector.broadcast %768 : f32 to vector<2x7x7xf32>
    %770 = arith.mulf %769, %759 : vector<2x7x7xf32>
    %771 = arith.addf %749, %770 : vector<2x7x7xf32>
    %c177 = arith.constant 177 : index
    %772 = memref.load %arg1[%c177] : memref<225xf32, #tpu.memory_space<smem>>
    %773 = vector.broadcast %772 : f32 to vector<2x7x7xf32>
    %774 = arith.mulf %773, %759 : vector<2x7x7xf32>
    %775 = arith.addf %753, %774 : vector<2x7x7xf32>
    %c222 = arith.constant 222 : index
    %776 = memref.load %arg1[%c222] : memref<225xf32, #tpu.memory_space<smem>>
    %777 = vector.broadcast %776 : f32 to vector<2x7x7xf32>
    %778 = arith.mulf %777, %759 : vector<2x7x7xf32>
    %779 = arith.addf %757, %778 : vector<2x7x7xf32>
    %c0_215 = arith.constant 0 : index
    %c0_216 = arith.constant 0 : index
    %c0_217 = arith.constant 0 : index
    %c1_218 = arith.constant 1 : index
    %c1_219 = arith.constant 1 : index
    %c0_220 = arith.constant 0 : index
    %780 = vector.load %arg0[%c0_215, %c0_216, %c0_217, %c1_218, %c1_219, %c0_220] : memref<2x5x2x2x8x8xf32, #tpu.memory_space<vmem>>, vector<2x1x1x1x7x7xf32>
    %781 = vector.shape_cast %780 : vector<2x1x1x1x7x7xf32> to vector<2x7x7xf32>
    %c7 = arith.constant 7 : index
    %782 = memref.load %arg1[%c7] : memref<225xf32, #tpu.memory_space<smem>>
    %783 = vector.broadcast %782 : f32 to vector<2x7x7xf32>
    %784 = arith.mulf %783, %781 : vector<2x7x7xf32>
    %785 = arith.addf %763, %784 : vector<2x7x7xf32>
    %c52 = arith.constant 52 : index
    %786 = memref.load %arg1[%c52] : memref<225xf32, #tpu.memory_space<smem>>
    %787 = vector.broadcast %786 : f32 to vector<2x7x7xf32>
    %788 = arith.mulf %787, %781 : vector<2x7x7xf32>
    %789 = arith.addf %767, %788 : vector<2x7x7xf32>
    %c97 = arith.constant 97 : index
    %790 = memref.load %arg1[%c97] : memref<225xf32, #tpu.memory_space<smem>>
    %791 = vector.broadcast %790 : f32 to vector<2x7x7xf32>
    %792 = arith.mulf %791, %781 : vector<2x7x7xf32>
    %793 = arith.addf %771, %792 : vector<2x7x7xf32>
    %c142 = arith.constant 142 : index
    %794 = memref.load %arg1[%c142] : memref<225xf32, #tpu.memory_space<smem>>
    %795 = vector.broadcast %794 : f32 to vector<2x7x7xf32>
    %796 = arith.mulf %795, %781 : vector<2x7x7xf32>
    %797 = arith.addf %775, %796 : vector<2x7x7xf32>
    %c187 = arith.constant 187 : index
    %798 = memref.load %arg1[%c187] : memref<225xf32, #tpu.memory_space<smem>>
    %799 = vector.broadcast %798 : f32 to vector<2x7x7xf32>
    %800 = arith.mulf %799, %781 : vector<2x7x7xf32>
    %801 = arith.addf %779, %800 : vector<2x7x7xf32>
    %c0_221 = arith.constant 0 : index
    %c1_222 = arith.constant 1 : index
    %c0_223 = arith.constant 0 : index
    %c1_224 = arith.constant 1 : index
    %c1_225 = arith.constant 1 : index
    %c0_226 = arith.constant 0 : index
    %802 = vector.load %arg0[%c0_221, %c1_222, %c0_223, %c1_224, %c1_225, %c0_226] : memref<2x5x2x2x8x8xf32, #tpu.memory_space<vmem>>, vector<2x1x1x1x7x7xf32>
    %803 = vector.shape_cast %802 : vector<2x1x1x1x7x7xf32> to vector<2x7x7xf32>
    %c16 = arith.constant 16 : index
    %804 = memref.load %arg1[%c16] : memref<225xf32, #tpu.memory_space<smem>>
    %805 = vector.broadcast %804 : f32 to vector<2x7x7xf32>
    %806 = arith.mulf %805, %803 : vector<2x7x7xf32>
    %807 = arith.addf %785, %806 : vector<2x7x7xf32>
    %c61 = arith.constant 61 : index
    %808 = memref.load %arg1[%c61] : memref<225xf32, #tpu.memory_space<smem>>
    %809 = vector.broadcast %808 : f32 to vector<2x7x7xf32>
    %810 = arith.mulf %809, %803 : vector<2x7x7xf32>
    %811 = arith.addf %789, %810 : vector<2x7x7xf32>
    %c106 = arith.constant 106 : index
    %812 = memref.load %arg1[%c106] : memref<225xf32, #tpu.memory_space<smem>>
    %813 = vector.broadcast %812 : f32 to vector<2x7x7xf32>
    %814 = arith.mulf %813, %803 : vector<2x7x7xf32>
    %815 = arith.addf %793, %814 : vector<2x7x7xf32>
    %c151 = arith.constant 151 : index
    %816 = memref.load %arg1[%c151] : memref<225xf32, #tpu.memory_space<smem>>
    %817 = vector.broadcast %816 : f32 to vector<2x7x7xf32>
    %818 = arith.mulf %817, %803 : vector<2x7x7xf32>
    %819 = arith.addf %797, %818 : vector<2x7x7xf32>
    %c196 = arith.constant 196 : index
    %820 = memref.load %arg1[%c196] : memref<225xf32, #tpu.memory_space<smem>>
    %821 = vector.broadcast %820 : f32 to vector<2x7x7xf32>
    %822 = arith.mulf %821, %803 : vector<2x7x7xf32>
    %823 = arith.addf %801, %822 : vector<2x7x7xf32>
    %c0_227 = arith.constant 0 : index
    %c2_228 = arith.constant 2 : index
    %c0_229 = arith.constant 0 : index
    %c1_230 = arith.constant 1 : index
    %c1_231 = arith.constant 1 : index
    %c0_232 = arith.constant 0 : index
    %824 = vector.load %arg0[%c0_227, %c2_228, %c0_229, %c1_230, %c1_231, %c0_232] : memref<2x5x2x2x8x8xf32, #tpu.memory_space<vmem>>, vector<2x1x1x1x7x7xf32>
    %825 = vector.shape_cast %824 : vector<2x1x1x1x7x7xf32> to vector<2x7x7xf32>
    %c25 = arith.constant 25 : index
    %826 = memref.load %arg1[%c25] : memref<225xf32, #tpu.memory_space<smem>>
    %827 = vector.broadcast %826 : f32 to vector<2x7x7xf32>
    %828 = arith.mulf %827, %825 : vector<2x7x7xf32>
    %829 = arith.addf %807, %828 : vector<2x7x7xf32>
    %c70 = arith.constant 70 : index
    %830 = memref.load %arg1[%c70] : memref<225xf32, #tpu.memory_space<smem>>
    %831 = vector.broadcast %830 : f32 to vector<2x7x7xf32>
    %832 = arith.mulf %831, %825 : vector<2x7x7xf32>
    %833 = arith.addf %811, %832 : vector<2x7x7xf32>
    %c115 = arith.constant 115 : index
    %834 = memref.load %arg1[%c115] : memref<225xf32, #tpu.memory_space<smem>>
    %835 = vector.broadcast %834 : f32 to vector<2x7x7xf32>
    %836 = arith.mulf %835, %825 : vector<2x7x7xf32>
    %837 = arith.addf %815, %836 : vector<2x7x7xf32>
    %c160 = arith.constant 160 : index
    %838 = memref.load %arg1[%c160] : memref<225xf32, #tpu.memory_space<smem>>
    %839 = vector.broadcast %838 : f32 to vector<2x7x7xf32>
    %840 = arith.mulf %839, %825 : vector<2x7x7xf32>
    %841 = arith.addf %819, %840 : vector<2x7x7xf32>
    %c205 = arith.constant 205 : index
    %842 = memref.load %arg1[%c205] : memref<225xf32, #tpu.memory_space<smem>>
    %843 = vector.broadcast %842 : f32 to vector<2x7x7xf32>
    %844 = arith.mulf %843, %825 : vector<2x7x7xf32>
    %845 = arith.addf %823, %844 : vector<2x7x7xf32>
    %c0_233 = arith.constant 0 : index
    %c3_234 = arith.constant 3 : index
    %c0_235 = arith.constant 0 : index
    %c1_236 = arith.constant 1 : index
    %c1_237 = arith.constant 1 : index
    %c0_238 = arith.constant 0 : index
    %846 = vector.load %arg0[%c0_233, %c3_234, %c0_235, %c1_236, %c1_237, %c0_238] : memref<2x5x2x2x8x8xf32, #tpu.memory_space<vmem>>, vector<2x1x1x1x7x7xf32>
    %847 = vector.shape_cast %846 : vector<2x1x1x1x7x7xf32> to vector<2x7x7xf32>
    %c34 = arith.constant 34 : index
    %848 = memref.load %arg1[%c34] : memref<225xf32, #tpu.memory_space<smem>>
    %849 = vector.broadcast %848 : f32 to vector<2x7x7xf32>
    %850 = arith.mulf %849, %847 : vector<2x7x7xf32>
    %851 = arith.addf %829, %850 : vector<2x7x7xf32>
    %c79 = arith.constant 79 : index
    %852 = memref.load %arg1[%c79] : memref<225xf32, #tpu.memory_space<smem>>
    %853 = vector.broadcast %852 : f32 to vector<2x7x7xf32>
    %854 = arith.mulf %853, %847 : vector<2x7x7xf32>
    %855 = arith.addf %833, %854 : vector<2x7x7xf32>
    %c124 = arith.constant 124 : index
    %856 = memref.load %arg1[%c124] : memref<225xf32, #tpu.memory_space<smem>>
    %857 = vector.broadcast %856 : f32 to vector<2x7x7xf32>
    %858 = arith.mulf %857, %847 : vector<2x7x7xf32>
    %859 = arith.addf %837, %858 : vector<2x7x7xf32>
    %c169 = arith.constant 169 : index
    %860 = memref.load %arg1[%c169] : memref<225xf32, #tpu.memory_space<smem>>
    %861 = vector.broadcast %860 : f32 to vector<2x7x7xf32>
    %862 = arith.mulf %861, %847 : vector<2x7x7xf32>
    %863 = arith.addf %841, %862 : vector<2x7x7xf32>
    %c214 = arith.constant 214 : index
    %864 = memref.load %arg1[%c214] : memref<225xf32, #tpu.memory_space<smem>>
    %865 = vector.broadcast %864 : f32 to vector<2x7x7xf32>
    %866 = arith.mulf %865, %847 : vector<2x7x7xf32>
    %867 = arith.addf %845, %866 : vector<2x7x7xf32>
    %c0_239 = arith.constant 0 : index
    %c4_240 = arith.constant 4 : index
    %c0_241 = arith.constant 0 : index
    %c1_242 = arith.constant 1 : index
    %c1_243 = arith.constant 1 : index
    %c0_244 = arith.constant 0 : index
    %868 = vector.load %arg0[%c0_239, %c4_240, %c0_241, %c1_242, %c1_243, %c0_244] : memref<2x5x2x2x8x8xf32, #tpu.memory_space<vmem>>, vector<2x1x1x1x7x7xf32>
    %869 = vector.shape_cast %868 : vector<2x1x1x1x7x7xf32> to vector<2x7x7xf32>
    %c43 = arith.constant 43 : index
    %870 = memref.load %arg1[%c43] : memref<225xf32, #tpu.memory_space<smem>>
    %871 = vector.broadcast %870 : f32 to vector<2x7x7xf32>
    %872 = arith.mulf %871, %869 : vector<2x7x7xf32>
    %873 = arith.addf %851, %872 : vector<2x7x7xf32>
    %c88 = arith.constant 88 : index
    %874 = memref.load %arg1[%c88] : memref<225xf32, #tpu.memory_space<smem>>
    %875 = vector.broadcast %874 : f32 to vector<2x7x7xf32>
    %876 = arith.mulf %875, %869 : vector<2x7x7xf32>
    %877 = arith.addf %855, %876 : vector<2x7x7xf32>
    %c133 = arith.constant 133 : index
    %878 = memref.load %arg1[%c133] : memref<225xf32, #tpu.memory_space<smem>>
    %879 = vector.broadcast %878 : f32 to vector<2x7x7xf32>
    %880 = arith.mulf %879, %869 : vector<2x7x7xf32>
    %881 = arith.addf %859, %880 : vector<2x7x7xf32>
    %c178 = arith.constant 178 : index
    %882 = memref.load %arg1[%c178] : memref<225xf32, #tpu.memory_space<smem>>
    %883 = vector.broadcast %882 : f32 to vector<2x7x7xf32>
    %884 = arith.mulf %883, %869 : vector<2x7x7xf32>
    %885 = arith.addf %863, %884 : vector<2x7x7xf32>
    %c223 = arith.constant 223 : index
    %886 = memref.load %arg1[%c223] : memref<225xf32, #tpu.memory_space<smem>>
    %887 = vector.broadcast %886 : f32 to vector<2x7x7xf32>
    %888 = arith.mulf %887, %869 : vector<2x7x7xf32>
    %889 = arith.addf %867, %888 : vector<2x7x7xf32>
    %c0_245 = arith.constant 0 : index
    %c0_246 = arith.constant 0 : index
    %c0_247 = arith.constant 0 : index
    %c0_248 = arith.constant 0 : index
    %c1_249 = arith.constant 1 : index
    %c1_250 = arith.constant 1 : index
    %890 = vector.load %arg0[%c0_245, %c0_246, %c0_247, %c0_248, %c1_249, %c1_250] : memref<2x5x2x2x8x8xf32, #tpu.memory_space<vmem>>, vector<2x1x1x1x7x7xf32>
    %891 = vector.shape_cast %890 : vector<2x1x1x1x7x7xf32> to vector<2x7x7xf32>
    %c8 = arith.constant 8 : index
    %892 = memref.load %arg1[%c8] : memref<225xf32, #tpu.memory_space<smem>>
    %893 = vector.broadcast %892 : f32 to vector<2x7x7xf32>
    %894 = arith.mulf %893, %891 : vector<2x7x7xf32>
    %895 = arith.addf %873, %894 : vector<2x7x7xf32>
    %c53 = arith.constant 53 : index
    %896 = memref.load %arg1[%c53] : memref<225xf32, #tpu.memory_space<smem>>
    %897 = vector.broadcast %896 : f32 to vector<2x7x7xf32>
    %898 = arith.mulf %897, %891 : vector<2x7x7xf32>
    %899 = arith.addf %877, %898 : vector<2x7x7xf32>
    %c98 = arith.constant 98 : index
    %900 = memref.load %arg1[%c98] : memref<225xf32, #tpu.memory_space<smem>>
    %901 = vector.broadcast %900 : f32 to vector<2x7x7xf32>
    %902 = arith.mulf %901, %891 : vector<2x7x7xf32>
    %903 = arith.addf %881, %902 : vector<2x7x7xf32>
    %c143 = arith.constant 143 : index
    %904 = memref.load %arg1[%c143] : memref<225xf32, #tpu.memory_space<smem>>
    %905 = vector.broadcast %904 : f32 to vector<2x7x7xf32>
    %906 = arith.mulf %905, %891 : vector<2x7x7xf32>
    %907 = arith.addf %885, %906 : vector<2x7x7xf32>
    %c188 = arith.constant 188 : index
    %908 = memref.load %arg1[%c188] : memref<225xf32, #tpu.memory_space<smem>>
    %909 = vector.broadcast %908 : f32 to vector<2x7x7xf32>
    %910 = arith.mulf %909, %891 : vector<2x7x7xf32>
    %911 = arith.addf %889, %910 : vector<2x7x7xf32>
    %c0_251 = arith.constant 0 : index
    %c1_252 = arith.constant 1 : index
    %c0_253 = arith.constant 0 : index
    %c0_254 = arith.constant 0 : index
    %c1_255 = arith.constant 1 : index
    %c1_256 = arith.constant 1 : index
    %912 = vector.load %arg0[%c0_251, %c1_252, %c0_253, %c0_254, %c1_255, %c1_256] : memref<2x5x2x2x8x8xf32, #tpu.memory_space<vmem>>, vector<2x1x1x1x7x7xf32>
    %913 = vector.shape_cast %912 : vector<2x1x1x1x7x7xf32> to vector<2x7x7xf32>
    %c17 = arith.constant 17 : index
    %914 = memref.load %arg1[%c17] : memref<225xf32, #tpu.memory_space<smem>>
    %915 = vector.broadcast %914 : f32 to vector<2x7x7xf32>
    %916 = arith.mulf %915, %913 : vector<2x7x7xf32>
    %917 = arith.addf %895, %916 : vector<2x7x7xf32>
    %c62 = arith.constant 62 : index
    %918 = memref.load %arg1[%c62] : memref<225xf32, #tpu.memory_space<smem>>
    %919 = vector.broadcast %918 : f32 to vector<2x7x7xf32>
    %920 = arith.mulf %919, %913 : vector<2x7x7xf32>
    %921 = arith.addf %899, %920 : vector<2x7x7xf32>
    %c107 = arith.constant 107 : index
    %922 = memref.load %arg1[%c107] : memref<225xf32, #tpu.memory_space<smem>>
    %923 = vector.broadcast %922 : f32 to vector<2x7x7xf32>
    %924 = arith.mulf %923, %913 : vector<2x7x7xf32>
    %925 = arith.addf %903, %924 : vector<2x7x7xf32>
    %c152 = arith.constant 152 : index
    %926 = memref.load %arg1[%c152] : memref<225xf32, #tpu.memory_space<smem>>
    %927 = vector.broadcast %926 : f32 to vector<2x7x7xf32>
    %928 = arith.mulf %927, %913 : vector<2x7x7xf32>
    %929 = arith.addf %907, %928 : vector<2x7x7xf32>
    %c197 = arith.constant 197 : index
    %930 = memref.load %arg1[%c197] : memref<225xf32, #tpu.memory_space<smem>>
    %931 = vector.broadcast %930 : f32 to vector<2x7x7xf32>
    %932 = arith.mulf %931, %913 : vector<2x7x7xf32>
    %933 = arith.addf %911, %932 : vector<2x7x7xf32>
    %c0_257 = arith.constant 0 : index
    %c2_258 = arith.constant 2 : index
    %c0_259 = arith.constant 0 : index
    %c0_260 = arith.constant 0 : index
    %c1_261 = arith.constant 1 : index
    %c1_262 = arith.constant 1 : index
    %934 = vector.load %arg0[%c0_257, %c2_258, %c0_259, %c0_260, %c1_261, %c1_262] : memref<2x5x2x2x8x8xf32, #tpu.memory_space<vmem>>, vector<2x1x1x1x7x7xf32>
    %935 = vector.shape_cast %934 : vector<2x1x1x1x7x7xf32> to vector<2x7x7xf32>
    %c26 = arith.constant 26 : index
    %936 = memref.load %arg1[%c26] : memref<225xf32, #tpu.memory_space<smem>>
    %937 = vector.broadcast %936 : f32 to vector<2x7x7xf32>
    %938 = arith.mulf %937, %935 : vector<2x7x7xf32>
    %939 = arith.addf %917, %938 : vector<2x7x7xf32>
    %c71 = arith.constant 71 : index
    %940 = memref.load %arg1[%c71] : memref<225xf32, #tpu.memory_space<smem>>
    %941 = vector.broadcast %940 : f32 to vector<2x7x7xf32>
    %942 = arith.mulf %941, %935 : vector<2x7x7xf32>
    %943 = arith.addf %921, %942 : vector<2x7x7xf32>
    %c116 = arith.constant 116 : index
    %944 = memref.load %arg1[%c116] : memref<225xf32, #tpu.memory_space<smem>>
    %945 = vector.broadcast %944 : f32 to vector<2x7x7xf32>
    %946 = arith.mulf %945, %935 : vector<2x7x7xf32>
    %947 = arith.addf %925, %946 : vector<2x7x7xf32>
    %c161 = arith.constant 161 : index
    %948 = memref.load %arg1[%c161] : memref<225xf32, #tpu.memory_space<smem>>
    %949 = vector.broadcast %948 : f32 to vector<2x7x7xf32>
    %950 = arith.mulf %949, %935 : vector<2x7x7xf32>
    %951 = arith.addf %929, %950 : vector<2x7x7xf32>
    %c206 = arith.constant 206 : index
    %952 = memref.load %arg1[%c206] : memref<225xf32, #tpu.memory_space<smem>>
    %953 = vector.broadcast %952 : f32 to vector<2x7x7xf32>
    %954 = arith.mulf %953, %935 : vector<2x7x7xf32>
    %955 = arith.addf %933, %954 : vector<2x7x7xf32>
    %c0_263 = arith.constant 0 : index
    %c3_264 = arith.constant 3 : index
    %c0_265 = arith.constant 0 : index
    %c0_266 = arith.constant 0 : index
    %c1_267 = arith.constant 1 : index
    %c1_268 = arith.constant 1 : index
    %956 = vector.load %arg0[%c0_263, %c3_264, %c0_265, %c0_266, %c1_267, %c1_268] : memref<2x5x2x2x8x8xf32, #tpu.memory_space<vmem>>, vector<2x1x1x1x7x7xf32>
    %957 = vector.shape_cast %956 : vector<2x1x1x1x7x7xf32> to vector<2x7x7xf32>
    %c35 = arith.constant 35 : index
    %958 = memref.load %arg1[%c35] : memref<225xf32, #tpu.memory_space<smem>>
    %959 = vector.broadcast %958 : f32 to vector<2x7x7xf32>
    %960 = arith.mulf %959, %957 : vector<2x7x7xf32>
    %961 = arith.addf %939, %960 : vector<2x7x7xf32>
    %c80 = arith.constant 80 : index
    %962 = memref.load %arg1[%c80] : memref<225xf32, #tpu.memory_space<smem>>
    %963 = vector.broadcast %962 : f32 to vector<2x7x7xf32>
    %964 = arith.mulf %963, %957 : vector<2x7x7xf32>
    %965 = arith.addf %943, %964 : vector<2x7x7xf32>
    %c125 = arith.constant 125 : index
    %966 = memref.load %arg1[%c125] : memref<225xf32, #tpu.memory_space<smem>>
    %967 = vector.broadcast %966 : f32 to vector<2x7x7xf32>
    %968 = arith.mulf %967, %957 : vector<2x7x7xf32>
    %969 = arith.addf %947, %968 : vector<2x7x7xf32>
    %c170 = arith.constant 170 : index
    %970 = memref.load %arg1[%c170] : memref<225xf32, #tpu.memory_space<smem>>
    %971 = vector.broadcast %970 : f32 to vector<2x7x7xf32>
    %972 = arith.mulf %971, %957 : vector<2x7x7xf32>
    %973 = arith.addf %951, %972 : vector<2x7x7xf32>
    %c215 = arith.constant 215 : index
    %974 = memref.load %arg1[%c215] : memref<225xf32, #tpu.memory_space<smem>>
    %975 = vector.broadcast %974 : f32 to vector<2x7x7xf32>
    %976 = arith.mulf %975, %957 : vector<2x7x7xf32>
    %977 = arith.addf %955, %976 : vector<2x7x7xf32>
    %c0_269 = arith.constant 0 : index
    %c4_270 = arith.constant 4 : index
    %c0_271 = arith.constant 0 : index
    %c0_272 = arith.constant 0 : index
    %c1_273 = arith.constant 1 : index
    %c1_274 = arith.constant 1 : index
    %978 = vector.load %arg0[%c0_269, %c4_270, %c0_271, %c0_272, %c1_273, %c1_274] : memref<2x5x2x2x8x8xf32, #tpu.memory_space<vmem>>, vector<2x1x1x1x7x7xf32>
    %979 = vector.shape_cast %978 : vector<2x1x1x1x7x7xf32> to vector<2x7x7xf32>
    %c44 = arith.constant 44 : index
    %980 = memref.load %arg1[%c44] : memref<225xf32, #tpu.memory_space<smem>>
    %981 = vector.broadcast %980 : f32 to vector<2x7x7xf32>
    %982 = arith.mulf %981, %979 : vector<2x7x7xf32>
    %983 = arith.addf %961, %982 : vector<2x7x7xf32>
    %c89 = arith.constant 89 : index
    %984 = memref.load %arg1[%c89] : memref<225xf32, #tpu.memory_space<smem>>
    %985 = vector.broadcast %984 : f32 to vector<2x7x7xf32>
    %986 = arith.mulf %985, %979 : vector<2x7x7xf32>
    %987 = arith.addf %965, %986 : vector<2x7x7xf32>
    %c134 = arith.constant 134 : index
    %988 = memref.load %arg1[%c134] : memref<225xf32, #tpu.memory_space<smem>>
    %989 = vector.broadcast %988 : f32 to vector<2x7x7xf32>
    %990 = arith.mulf %989, %979 : vector<2x7x7xf32>
    %991 = arith.addf %969, %990 : vector<2x7x7xf32>
    %c179 = arith.constant 179 : index
    %992 = memref.load %arg1[%c179] : memref<225xf32, #tpu.memory_space<smem>>
    %993 = vector.broadcast %992 : f32 to vector<2x7x7xf32>
    %994 = arith.mulf %993, %979 : vector<2x7x7xf32>
    %995 = arith.addf %973, %994 : vector<2x7x7xf32>
    %c224 = arith.constant 224 : index
    %996 = memref.load %arg1[%c224] : memref<225xf32, #tpu.memory_space<smem>>
    %997 = vector.broadcast %996 : f32 to vector<2x7x7xf32>
    %998 = arith.mulf %997, %979 : vector<2x7x7xf32>
    %999 = arith.addf %977, %998 : vector<2x7x7xf32>
    %1000 = arith.negf %983 : vector<2x7x7xf32>
    %1001 = math.exp %1000 : vector<2x7x7xf32>
    %cst = arith.constant 1.000000e+00 : f32
    %1002 = vector.broadcast %cst : f32 to vector<2x7x7xf32>
    %1003 = arith.addf %1002, %1001 : vector<2x7x7xf32>
    %1004 = arith.divf %1002, %1003 : vector<2x7x7xf32>
    %1005 = arith.mulf %983, %1004 : vector<2x7x7xf32>
    %c0_275 = arith.constant 0 : index
    %c0_276 = arith.constant 0 : index
    %c0_277 = arith.constant 0 : index
    %c0_278 = arith.constant 0 : index
    %1006 = vector.load %arg3[%c0_275, %c0_276, %c0_277, %c0_278] : memref<2x5x7x7xf32, #tpu.memory_space<vmem>>, vector<2x1x7x7xf32>
    %1007 = vector.shape_cast %1006 : vector<2x1x7x7xf32> to vector<2x7x7xf32>
    %1008 = vector.shape_cast %1005 : vector<2x7x7xf32> to vector<2x1x7x7xf32>
    tpu.vector_store %arg3[%c0_275, %c0_276, %c0_277, %c0_278], %1008 {strides = array<i32>} : memref<2x5x7x7xf32, #tpu.memory_space<vmem>>, vector<2x1x7x7xf32>,
    %1009 = arith.negf %987 : vector<2x7x7xf32>
    %1010 = math.exp %1009 : vector<2x7x7xf32>
    %cst_279 = arith.constant 1.000000e+00 : f32
    %1011 = vector.broadcast %cst_279 : f32 to vector<2x7x7xf32>
    %1012 = arith.addf %1011, %1010 : vector<2x7x7xf32>
    %1013 = arith.divf %1011, %1012 : vector<2x7x7xf32>
    %1014 = arith.mulf %987, %1013 : vector<2x7x7xf32>
    %c0_280 = arith.constant 0 : index
    %c1_281 = arith.constant 1 : index
    %c0_282 = arith.constant 0 : index
    %c0_283 = arith.constant 0 : index
    %1015 = vector.load %arg3[%c0_280, %c1_281, %c0_282, %c0_283] : memref<2x5x7x7xf32, #tpu.memory_space<vmem>>, vector<2x1x7x7xf32>
    %1016 = vector.shape_cast %1015 : vector<2x1x7x7xf32> to vector<2x7x7xf32>
    %1017 = vector.shape_cast %1014 : vector<2x7x7xf32> to vector<2x1x7x7xf32>
    tpu.vector_store %arg3[%c0_280, %c1_281, %c0_282, %c0_283], %1017 {strides = array<i32>} : memref<2x5x7x7xf32, #tpu.memory_space<vmem>>, vector<2x1x7x7xf32>,
    %1018 = arith.negf %991 : vector<2x7x7xf32>
    %1019 = math.exp %1018 : vector<2x7x7xf32>
    %cst_284 = arith.constant 1.000000e+00 : f32
    %1020 = vector.broadcast %cst_284 : f32 to vector<2x7x7xf32>
    %1021 = arith.addf %1020, %1019 : vector<2x7x7xf32>
    %1022 = arith.divf %1020, %1021 : vector<2x7x7xf32>
    %1023 = arith.mulf %991, %1022 : vector<2x7x7xf32>
    %c0_285 = arith.constant 0 : index
    %c2_286 = arith.constant 2 : index
    %c0_287 = arith.constant 0 : index
    %c0_288 = arith.constant 0 : index
    %1024 = vector.load %arg3[%c0_285, %c2_286, %c0_287, %c0_288] : memref<2x5x7x7xf32, #tpu.memory_space<vmem>>, vector<2x1x7x7xf32>
    %1025 = vector.shape_cast %1024 : vector<2x1x7x7xf32> to vector<2x7x7xf32>
    %1026 = vector.shape_cast %1023 : vector<2x7x7xf32> to vector<2x1x7x7xf32>
    tpu.vector_store %arg3[%c0_285, %c2_286, %c0_287, %c0_288], %1026 {strides = array<i32>} : memref<2x5x7x7xf32, #tpu.memory_space<vmem>>, vector<2x1x7x7xf32>,
    %1027 = arith.negf %995 : vector<2x7x7xf32>
    %1028 = math.exp %1027 : vector<2x7x7xf32>
    %cst_289 = arith.constant 1.000000e+00 : f32
    %1029 = vector.broadcast %cst_289 : f32 to vector<2x7x7xf32>
    %1030 = arith.addf %1029, %1028 : vector<2x7x7xf32>
    %1031 = arith.divf %1029, %1030 : vector<2x7x7xf32>
    %1032 = arith.mulf %995, %1031 : vector<2x7x7xf32>
    %c0_290 = arith.constant 0 : index
    %c3_291 = arith.constant 3 : index
    %c0_292 = arith.constant 0 : index
    %c0_293 = arith.constant 0 : index
    %1033 = vector.load %arg3[%c0_290, %c3_291, %c0_292, %c0_293] : memref<2x5x7x7xf32, #tpu.memory_space<vmem>>, vector<2x1x7x7xf32>
    %1034 = vector.shape_cast %1033 : vector<2x1x7x7xf32> to vector<2x7x7xf32>
    %1035 = vector.shape_cast %1032 : vector<2x7x7xf32> to vector<2x1x7x7xf32>
    tpu.vector_store %arg3[%c0_290, %c3_291, %c0_292, %c0_293], %1035 {strides = array<i32>} : memref<2x5x7x7xf32, #tpu.memory_space<vmem>>, vector<2x1x7x7xf32>,
    %1036 = arith.negf %999 : vector<2x7x7xf32>
    %1037 = math.exp %1036 : vector<2x7x7xf32>
    %cst_294 = arith.constant 1.000000e+00 : f32
    %1038 = vector.broadcast %cst_294 : f32 to vector<2x7x7xf32>
    %1039 = arith.addf %1038, %1037 : vector<2x7x7xf32>
    %1040 = arith.divf %1038, %1039 : vector<2x7x7xf32>
    %1041 = arith.mulf %999, %1040 : vector<2x7x7xf32>
    %c0_295 = arith.constant 0 : index
    %c4_296 = arith.constant 4 : index
    %c0_297 = arith.constant 0 : index
    %c0_298 = arith.constant 0 : index
    %1042 = vector.load %arg3[%c0_295, %c4_296, %c0_297, %c0_298] : memref<2x5x7x7xf32, #tpu.memory_space<vmem>>, vector<2x1x7x7xf32>
    %1043 = vector.shape_cast %1042 : vector<2x1x7x7xf32> to vector<2x7x7xf32>
    %1044 = vector.shape_cast %1041 : vector<2x7x7xf32> to vector<2x1x7x7xf32>
    tpu.vector_store %arg3[%c0_295, %c4_296, %c0_297, %c0_298], %1044 {strides = array<i32>} : memref<2x5x7x7xf32, #tpu.memory_space<vmem>>, vector<2x1x7x7xf32>,
    return
  }
}

</mosaic_0001>

<bundles_post_ra>
// kernel: model2_forward.1
= control target key start
LH: loop header
LB: loop body
LE: loop exit
PB: predicated region body
PF: predicated region fallthrough
CT: control target
= control target key end

     0   :  { %s5531_s0 = inlined_call_operand.vmem [shape: f32[2,5,2,2,8,8], index: 0, kind: input, shape index: {}]   ;;  %s5532_s1 = inlined_call_operand.vmem [shape: f32[225], index: 1, kind: input, shape index: {}]   ;;  %s5533_s2 = inlined_call_operand.vmem [shape: f32[5], index: 2, kind: input, shape index: {}]   ;;  %s5534_s3 = inlined_call_operand.vmem [shape: f32[2,5,7,7], index: 3, kind: output, shape index: {}]  }
   0x1   :  { %5554 = sst [smem:[#allocation121_spill]] %s5534_s3 }
   0x2   :  { %8 = vsyncpa [#allocation3], 0  ;;  %s18_s14 = sshll.u32 %s5532_s1, 4  ;;  %s19_s14 = int_to_ptr.vmem [resolvable:$true] %s18_s14 }
   0x3   :  { %9 = vsyncpa [#allocation5], 0  ;;  %s28_s17 = sshll.u32 %s5533_s2, 4  ;;  %s2518_s18 = scalar_lea.vmem %s19_s14, 32  ;;  %s29_s17 = int_to_ptr.vmem [resolvable:$true] %s28_s17 }
   0x4   :  { %p2519_p0 = scmp.ne.s32.totalorder %s19_s14, %s2518_s18  ;;  %p2523_p1 = scmp.lt.s32.totalorder %s19_s14, %s19_s14 }
   0x5   :  { %p2524_p2 = scmp.lt.s32.totalorder %s2518_s18, %s2518_s18 }
   0x7   :  { %p2525_p3 = por %p2524_p2, %p2523_p1 }
   0x9   :  { %p2526_p4 = pnand %p2525_p3, %p2519_p0 }
   0xb   :  { %2529 = shalt.err (!%p2526_p4)
}
   0xc   :  { %s2546_s19 = smov [#allocation2]   ;;  %s2530_s20 = scalar_lea.vmem %s29_s17, 16 }
   0xd   :  { %21 = dma.vmem_to_smem %s19_s14, 32, %s2546_s19, [#allocation3]  }
   0xe   :  { %p2531_p5 = scmp.ne.s32.totalorder %s29_s17, %s2530_s20  ;;  %p2535_p6 = scmp.lt.s32.totalorder %s29_s17, %s29_s17 }
   0xf   :  { %p2536_p7 = scmp.lt.s32.totalorder %s2530_s20, %s2530_s20 }
  0x11   :  { %p2537_p8 = por %p2536_p7, %p2535_p6 }
  0x13   :  { %p2538_p9 = pnand %p2537_p8, %p2531_p5 }
  0x15   :  { %2541 = shalt.err (!%p2538_p9)
}
  0x16   :  { %s2547_s1 = smov [#allocation4]  }
  0x17   :  { %31 = dma.vmem_to_smem %s29_s17, 16, %s2547_s1, [#allocation5]  }
  0x18   :  { %2542 = dma.done.wait [#allocation3], 32  }
  0x19   :  { %2543 = vsyncadd [#allocation3], 4294967264 }
  0x1a   :  { %2544 = dma.done.wait [#allocation5], 16  }
  0x1b   :  { %2545 = vsyncadd [#allocation5], 4294967280 }
  0x1c   :  { %38 = sfence }
  0x1d   :  { %s2241_s2 = sld [smem:[#allocation2 + $0x2f]]  ;;  %s2240_s21 = sld [smem:[#allocation2 + $0x2]]  ;;  %v2578_v0 = vld [vmem:[%s5531_s0] sm:$0x7f]  ;;  %vm2092_vm0 = vcmask 55296  }
  0x1e   :  { %s2242_s22 = sld [smem:[#allocation2 + $0x5c]]  ;;  %v2583_v1 = vld [vmem:[%s5531_s0 + $0xa0] sm:$0x7f]  ;;  %s2243_s27 = sld [smem:[#allocation2 + $0x89]] }
  0x1f   :  { %s5535_s28 = smov 127   ;;  %s2244_s29 = sld [smem:[#allocation2 + $0xb6]]  ;;  %v2606_v17 = vld [vmem:[%s5531_s0 + $0xc0] sm:$0x7f] }
  0x20   :  { %s2245_s30 = sld [smem:[#allocation2 + $0xb]]  ;;  %s2246_s4 = sld [smem:[#allocation2 + $0x38]]  ;;  %v2611_v19 = vld [vmem:[%s5531_s0 + $0x20] sm:$0x7f] }
  0x21   :  { %s2247_s9 = sld [smem:[#allocation2 + $0x65]]  ;;  %s2248_s10 = sld [smem:[#allocation2 + $0x92]]  ;;  %v2652_v32 = vld [vmem:[%s5531_s0 + $0xe0] sm:$0x7f] }
  0x22   :  { %s2249_s11 = sld [smem:[#allocation2 + $0xbf]]  ;;  %s2621_s12 = sld [smem:[#allocation2 + $0x14]]  ;;  %v2667_v37 = vld [vmem:[%s5531_s0 + $0x40] sm:$0x7f] }
  0x23   :  { %v393_v2 = vstv %s2241_s2  ;;  %v379_v3 = vstv %s2240_s21  ;;  %s2623_s13 = sld [smem:[#allocation2 + $0x2d]]  ;;  %s2629_s14 = sld [smem:[#allocation2 + $0x36]]  ;;  %v2706_v51 = vld [vmem:[%s5531_s0 + $0x100] sm:$0x7f] }
  0x24   :  { %v394_v4 = vmul.f32 %v393_v2, %v2578_v0  ;;  %v380_v5 = vmul.f32 %v379_v3, %v2578_v0  ;;  %v395_v6 = vmul.f32 %v393_v2, %v2583_v1  ;;  %v381_v7 = vmul.f32 %v379_v3, %v2583_v1  ;;  %s2631_s15 = sld [smem:[#allocation2 + $0x41]]  ;;  %s2633_s16 = sld [smem:[#allocation2 + $0x3f]]  ;;  %v2713_v54 = vld [vmem:[%s5531_s0 + $0x120] sm:$0x7f] }
  0x25   :  { %v407_v8 = vstv %s2242_s22  ;;  %v421_v11 = vstv %s2243_s27  ;;  %v435_v14 = vstv %s2244_s29  ;;  %s2635_s17 = sld [smem:[#allocation4 + $0x1]]  ;;  %s2637_s18 = sld [smem:[#allocation2]] }
  0x26   :  { %398 = vrot.lane.b32.xlu1 %v394_v4, %s5535_s28  ;;  %384 = vrot.lane.b32.xlu0 %v380_v5, %s5535_s28  ;;  %v409_v9 = vmul.f32 %v407_v8, %v2583_v1  ;;  %v408_v10 = vmul.f32 %v407_v8, %v2578_v0  ;;  %v423_v12 = vmul.f32 %v421_v11, %v2583_v1  ;;  %v449_v18 = vstv %s2245_s30  ;;  %s2643_s19 = sld [smem:[#allocation2 + $0x48]]  ;;  %s2645_s20 = sld [smem:[#allocation2 + $0x9]] }
  0x27   :  { %v422_v13 = vmul.f32 %v421_v11, %v2578_v0  ;;  %v437_v15 = vmul.f32 %v435_v14, %v2583_v1  ;;  %v436_v16 = vmul.f32 %v435_v14, %v2578_v0  ;;  %v451_v20 = vmul.f32 %v2606_v17, %v449_v18  ;;  %s2647_s1 = sld [smem:[#allocation2 + $0x51]]  ;;  %s2656_s22 = sld [smem:[#allocation2 + $0x12]] }
  0x28   :  { %v450_v21 = vmul.f32 %v2611_v19, %v449_v18  ;;  %v463_v22 = vstv %s2246_s4  ;;  %v477_v25 = vstv %s2247_s9  ;;  %v491_v28 = vstv %s2248_s10  ;;  %s2658_s23 = sld [smem:[#allocation4]]  ;;  %s2669_s26 = sld [smem:[#allocation2 + $0x6e]] }
  0x29   :  { %v465_v23 = vmul.f32 %v2606_v17, %v463_v22  ;;  %v464_v24 = vmul.f32 %v2611_v19, %v463_v22  ;;  %v479_v26 = vmul.f32 %v2606_v17, %v477_v25  ;;  %v478_v27 = vmul.f32 %v2611_v19, %v477_v25  ;;  %s2675_s27 = sld [smem:[#allocation2 + $0x1b]]  ;;  %s2686_s29 = sld [smem:[#allocation2 + $0x24]] }
  0x2a   :  { %400 = vrot.lane.b32.xlu1 %v395_v6, %s5535_s28  ;;  %386 = vrot.lane.b32.xlu0 %v381_v7, %s5535_s28  ;;  %v493_v29 = vmul.f32 %v2606_v17, %v491_v28  ;;  %v492_v30 = vmul.f32 %v2611_v19, %v491_v28  ;;  %v505_v31 = vstv %s2249_s11  ;;  %v519_v33 = vstv %s2621_s12  ;;  %s2698_s30 = sld [smem:[#allocation2 + $0x5a]]  ;;  %s2701_s4 = sld [smem:[#allocation2 + $0x9b]] }
  0x2b   :  { %v58_v34 = vstv %s2623_s13  ;;  %v507_v35 = vmul.f32 %v2606_v17, %v505_v31  ;;  %v506_v36 = vmul.f32 %v2611_v19, %v505_v31  ;;  %v91_v39 = vstv %s2629_s14  ;;  %s2722_s9 = sld [smem:[#allocation2 + $0x63]]  ;;  %s2738_s10 = sld [smem:[#allocation2 + $0x6c]] }
  0x2c   :  { %v60_v38 = vmul.f32 %v58_v34, %v2583_v1  ;;  %v521_v40 = vmul.f32 %v2652_v32, %v519_v33  ;;  %v533_v41 = vstv %s2631_s15  ;;  %v93_v42 = vmul.f32 %v2606_v17, %v91_v39  ;;  %s2740_s11 = sld [smem:[#allocation2 + $0xc8]]  ;;  %s2746_s12 = sld [smem:[#allocation2 + $0x75]] }
  0x2d   :  { %v520_v43 = vmul.f32 %v2667_v37, %v519_v33  ;;  %v124_v44 = vstv %s2633_s16  ;;  %v42_v45 = vstv %s2635_s17  ;;  %v52_v46 = vstv %s2637_s18  ;;  %s2748_s15 = sld [smem:[#allocation4 + $0x2]]  ;;  %s2761_s2 = sld [smem:[#allocation2 + $0x7e]] }
  0x2e   :  { %414 = vrot.lane.b32.xlu1 %v409_v9, %s5535_s28  ;;  %412 = vrot.lane.b32.xlu0 %v408_v10, %s5535_s28  ;;  %v126_v47 = vmul.f32 %v2652_v32, %v124_v44  ;;  %v62_v48 = vadd.f32 %v60_v38, %v42_v45  ;;  %v54_v49 = vmul.f32 %v52_v46, %v2583_v1  ;;  %v157_v52 = vstv %s2643_s19  ;;  %s2764_s21 = sld [smem:[#allocation2 + $0x1d]]  ;;  %s2778_s24 = sld [smem:[#allocation2 + $0x4a]] }
  0x2f   :  { %v535_v50 = vmul.f32 %v2652_v32, %v533_v41  ;;  %v85_v53 = vstv %s2645_s20  ;;  %v190_v55 = vstv %s2647_s1  ;;  %v159_v56 = vmul.f32 %v2706_v51, %v157_v52  ;;  %s2783_s25 = sld [smem:[#allocation2 + $0x87]]  ;;  %s2810_s7 = sld [smem:[#allocation2 + $0x99]] }
  0x30   :  { %v95_v57 = vadd.f32 %v93_v42, %v62_v48  ;;  %v87_v58 = vmul.f32 %v2606_v17, %v85_v53  ;;  %v534_v59 = vmul.f32 %v2667_v37, %v533_v41  ;;  %v118_v60 = vstv %s2656_s22  ;;  %s2812_s8 = sld [smem:[#allocation4 + $0x3]]  ;;  %s2847_s6 = sld [smem:[#allocation2 + $0xb4]] }
  0x31   :  { %v40_v61 = vstv %s2658_s23  ;;  %v192_v62 = vmul.f32 %v2713_v54, %v190_v55  ;;  %v547_v63 = vstv %s2669_s26  ;;  %v120_v3 = vmul.f32 %v2652_v32, %v118_v60  ;;  %s2792_s26 = sld [smem:[#allocation2 + $0x90]]  ;;  %s2827_s5 = sld [smem:[#allocation2 + $0xab]] }
  0x32   :  { %428 = vrot.lane.b32.xlu1 %v423_v12, %s5535_s28  ;;  %426 = vrot.lane.b32.xlu0 %v422_v13, %s5535_s28  ;;  %v128_v2 = vadd.f32 %v126_v47, %v95_v57  ;;  %v56_v4 = vadd.f32 %v54_v49, %v40_v61  ;;  %v151_v5 = vstv %s2675_s27  ;;  %v549_v9 = vmul.f32 %v2652_v32, %v547_v63  ;;  %s2862_s3 = sld [smem:[#allocation2 + $0xbd]]  ;;  %s2886_s13 = sld [smem:[#allocation2 + $0xcf]] }
  0x33   :  { %v153_v7 = vmul.f32 %v2706_v51, %v151_v5  ;;  %v548_v10 = vmul.f32 %v2667_v37, %v547_v63  ;;  %v184_v11 = vstv %s2686_s29  ;;  %v130_v25 = vstv %s2738_s10  ;;  %s2896_s18 = sld [smem:[#allocation2 + $0xd8]]  ;;  %s2932_s16 = sld [smem:[#allocation2 + $0xda]] }
  0x34   :  { %v161_v6 = vadd.f32 %v159_v56, %v128_v2  ;;  %v89_v8 = vadd.f32 %v87_v58, %v56_v4  ;;  %v186_v13 = vmul.f32 %v2713_v54, %v184_v11  ;;  %v163_v28 = vstv %s2746_s12  ;;  %s2934_s20 = sld [smem:[#allocation2 + $0x5]]  ;;  %s2941_s23 = sld [smem:[#allocation2 + $0x32]] }
  0x35   :  { %v589_v38 = vstv %s2764_s21  ;;  %v165_v41 = vmul.f32 %v2706_v51, %v163_v28  ;;  %5555 = sst [smem:[#allocation8_spill]] %s2810_s7  ;;  %s2823_s21 = sld [smem:[#allocation2 + $0xa4]]  ;;  %v70_v57 = vstv %s2783_s25  ;;  %v5552_v4 = vstv %s2810_s7 }
  0x36   :  { %442 = vrot.lane.b32.xlu1 %v437_v15, %s5535_s28  ;;  %440 = vrot.lane.b32.xlu0 %v436_v16, %s5535_s28  ;;  %v2755_v12 = vadd.f32 %v192_v62, %v161_v6  ;;  %v122_v14 = vadd.f32 %v120_v3, %v89_v8  ;;  %v64_v15 = vstv %s2698_s30  ;;  %v561_v16 = vstv %s2701_s4  ;;  %s2798_s4 = sld [smem:[#allocation2 + $0x77]]  ;;  %s2875_s7 = sld [smem:[#allocation2 + $0x53]] }
  0x37   :  { %v563_v22 = vmul.f32 %v2652_v32, %v561_v16  ;;  %v591_v48 = vmul.f32 %v2706_v51, %v589_v38  ;;  %5557 = sst [smem:[#allocation10_spill]] %s2827_s5  ;;  %v72_v3 = vmul.f32 %v70_v57, %v2583_v1  ;;  %s2958_s22 = sld [smem:[#allocation2 + $0x37]] }
  0x38   :  { %v155_v18 = vadd.f32 %v153_v7, %v122_v14  ;;  %v46_v7 = vstv %s2812_s8  ;;  %v138_v14 = vmul.f32 %v2652_v32, %v5552_v4  ;;  %5560 = sst [smem:[#allocation12_spill]] %s2886_s13  ;;  %s2963_s19 = sld [smem:[#allocation2 + $0x5f]] }
  0x39   :  { %5561 = sst [smem:[#allocation13_spill]] %s2896_s18  ;;  %s2965_s14 = sld [smem:[#allocation2 + $0x8c]] }
  0x3a   :  { %456 = vrot.lane.b32.xlu1 %v451_v20, %s5535_s28  ;;  %454 = vrot.lane.b32.xlu0 %v450_v21, %s5535_s28  ;;  %v97_v20 = vstv %s2722_s9  ;;  %v66_v21 = vmul.f32 %v64_v15, %v2583_v1  ;;  %s2982_s17 = sld [smem:[#allocation2 + $0xa]]  ;;  %s3038_s27 = sld [smem:[#allocation2 + $0x25]] }
  0x3b   :  { %s3107_s9 = sld [smem:[#allocation2 + $0xe]]  ;;  %s5562_s12 = sld [smem:[#allocation8_spill]] }
  0x3c   :  { %v617_v2 = vstv %s2798_s4  ;;  %s5558_s4 = smov 127   ;;  %s3192_s30 = sld [smem:[#allocation2 + $0x88]] }
  0x3d   :  { %v619_v8 = vmul.f32 %v2706_v51, %v617_v2  ;;  %s3253_s1 = sld [smem:[#allocation2 + $0xa3]]  ;;  %s5575_s29 = sld [smem:[#allocation13_spill]] }
  0x3e   :  { %470 = vrot.lane.b32.xlu1 %v465_v23, %s5535_s28  ;;  %468 = vrot.lane.b32.xlu0 %v464_v24, %s5535_s28  ;;  %v562_v23 = vmul.f32 %v2667_v37, %v561_v16  ;;  %v2774_v24 = vadd.f32 %v186_v13, %v155_v18  ;;  %v631_v13 = vstv %s2823_s21  ;;  %v74_v16 = vadd.f32 %v72_v3, %v46_v7  ;;  %s2871_s21 = sld [smem:[#allocation2 + $0xc6]]  ;;  %s3345_s10 = sld [smem:[#allocation2 + $0xc2]] }
  0x3f   :  { %v59_v18 = vmul.f32 %v58_v34, %v2578_v0  ;;  %v673_v3 = vstv %s2875_s7  ;;  %s2951_s7 = sld [smem:[#allocation2 + $0x1]]  ;;  %s3356_s25 = sld [smem:[#allocation2 + $0x17]] }
  0x40   :  { %s3399_s8 = sld [smem:[#allocation2 + $0x4d]] }
  0x42   :  { %484 = vrot.lane.b32.xlu1 %v479_v26, %s5535_s28  ;;  %482 = vrot.lane.b32.xlu0 %v478_v27, %s5535_s28  ;;  %v575_v26 = vstv %s2740_s11  ;;  %v99_v27 = vmul.f32 %v2606_v17, %v97_v20  ;;  %s2817_s11 = sld [smem:[#allocation2 + $0xa2]] }
  0x43   :  { %v577_v33 = vmul.f32 %v2652_v32, %v575_v26 }
  0x44   :  { %5559 = sst [smem:[#allocation11_spill]] %s2871_s21 }
  0x46   :  { %498 = vrot.lane.b32.xlu1 %v493_v29, %s5535_s28  ;;  %496 = vrot.lane.b32.xlu0 %v492_v30, %s5535_s28  ;;  %v44_v29 = vstv %s2748_s15  ;;  %v132_v30 = vmul.f32 %v2652_v32, %v130_v25  ;;  %s5571_s15 = sld [smem:[#allocation11_spill]] }
  0x47   :  { %v68_v31 = vadd.f32 %v66_v21, %v44_v29  ;;  %v5547_v21 = vstv %s2827_s5  ;;  %s2910_s5 = sld [smem:[#allocation2 + $0xad]] }
  0x48   :  { %5556 = sst [smem:[#allocation9_spill]] %s2817_s11 }
  0x49   :  { %v101_v42 = vadd.f32 %v99_v27, %v68_v31  ;;  %v204_v31 = vmul.f32 %v2713_v54, %v5547_v21 }
  0x4a   :  { %512 = vrot.lane.b32.xlu1 %v507_v35, %s5535_s28  ;;  %510 = vrot.lane.b32.xlu0 %v506_v36, %s5535_s28  ;;  %v576_v35 = vmul.f32 %v2667_v37, %v575_v26  ;;  %v196_v36 = vstv %s2761_s2  ;;  %v633_v26 = vmul.f32 %v2706_v51, %v631_v13  ;;  %s3227_s2 = sld [smem:[#allocation2 + $0x3b]] }
  0x4b   :  { %v134_v47 = vadd.f32 %v132_v30, %v101_v42  ;;  %v53_v30 = vmul.f32 %v52_v46, %v2578_v0  ;;  %v5551_v42 = vstv %s2847_s6 }
  0x4d   :  { %v167_v56 = vadd.f32 %v165_v41, %v134_v47 }
  0x4e   :  { %526 = vrot.lane.b32.xlu1 %v521_v40, %s5535_s28  ;;  %524 = vrot.lane.b32.xlu0 %v520_v43, %s5535_s28  ;;  %v2805_v40 = vld [vmem:[%s5531_s0 + $0x60] sm:$0x7f]  ;;  %v198_v43 = vmul.f32 %v2713_v54, %v196_v36 }
  0x4f   :  { %v590_v49 = vmul.f32 %v2805_v40, %v589_v38  ;;  %v632_v27 = vmul.f32 %v2805_v40, %v631_v13  ;;  %v61_v38 = vadd.f32 %v59_v18, %v42_v45  ;;  %v86_v45 = vmul.f32 %v2611_v19, %v85_v53 }
  0x50   :  { %v2829_v58 = vadd.f32 %v198_v43, %v167_v56  ;;  %v125_v56 = vmul.f32 %v2667_v37, %v124_v44  ;;  %v158_v13 = vmul.f32 %v2805_v40, %v157_v52  ;;  %v675_v18 = vmul.f32 %v2713_v54, %v673_v3 }
  0x52   :  { %540 = vrot.lane.b32.xlu1 %v535_v50, %s5535_s28  ;;  %538 = vrot.lane.b32.xlu0 %v534_v59, %s5535_s28  ;;  %v603_v50 = vstv %s2778_s24  ;;  %v103_v59 = vstv %s2792_s26  ;;  %s2837_s24 = sld [smem:[#allocation2 + $0xd1]]  ;;  %s3393_s26 = sld [smem:[#allocation2 + $0x20]] }
  0x53   :  { %v605_v62 = vmul.f32 %v2706_v51, %v603_v50  ;;  %v604_v63 = vmul.f32 %v2805_v40, %v603_v50  ;;  %v105_v6 = vmul.f32 %v2606_v17, %v103_v59  ;;  %v5549_v50 = vstv %s2862_s3 }
  0x54   :  { %v111_v44 = vmul.f32 %v2606_v17, %v5549_v50 }
  0x56   :  { %554 = vrot.lane.b32.xlu1 %v549_v9, %s5535_s28  ;;  %552 = vrot.lane.b32.xlu0 %v548_v10, %s5535_s28  ;;  %v5550_v9 = vstv %s2817_s11  ;;  %v618_v10 = vmul.f32 %v2805_v40, %v617_v2  ;;  %s2888_s11 = sld [smem:[#allocation4 + $0x4]]  ;;  %v5546_v2 = vstv %s2871_s21  ;;  %s3005_s21 = sld [smem:[#allocation2 + $0x52]] }
  0x57   :  { %v144_v17 = vmul.f32 %v2652_v32, %v5546_v2 }
  0x58   :  { %v645_v34 = vstv %s2837_s24  ;;  %s2901_s24 = sld [smem:[#allocation2 + $0x80]] }
  0x59   :  { %v647_v46 = vmul.f32 %v2706_v51, %v645_v34  ;;  %v646_v43 = vmul.f32 %v2805_v40, %v645_v34 }
  0x5a   :  { %568 = vrot.lane.b32.xlu1 %v563_v22, %s5535_s28  ;;  %566 = vrot.lane.b32.xlu0 %v562_v23, %s5535_s28  ;;  %v171_v22 = vmul.f32 %v2706_v51, %v5550_v9  ;;  %v107_v23 = vadd.f32 %v105_v6, %v74_v16 }
  0x5e   :  { %582 = vrot.lane.b32.xlu1 %v577_v33, %s5535_s28  ;;  %580 = vrot.lane.b32.xlu0 %v576_v35, %s5535_s28  ;;  %v140_v33 = vadd.f32 %v138_v14, %v107_v23  ;;  %v92_v35 = vmul.f32 %v2611_v19, %v91_v39  ;;  %v2908_v39 = vld [vmem:[%s5531_s0 + $0x80] sm:$0x7f] }
  0x5f   :  { %v674_v32 = vmul.f32 %v2908_v39, %v673_v3 }
  0x60   :  { %v173_v41 = vadd.f32 %v171_v22, %v140_v33  ;;  %v687_v22 = vstv %s2901_s24  ;;  %s2980_s24 = sld [smem:[#allocation2 + $0x40]] }
  0x62   :  { %596 = vrot.lane.b32.xlu1 %v591_v48, %s5535_s28  ;;  %594 = vrot.lane.b32.xlu0 %v590_v49, %s5535_s28  ;;  %s2850_s28 = sld [smem:[#allocation2 + $0x26]]  ;;  %v55_v48 = vadd.f32 %v53_v30, %v40_v61  ;;  %v2917_v49 = vadd.f32 %v204_v31, %v173_v41  ;;  %v191_v30 = vmul.f32 %v2908_v39, %v190_v55 }
  0x64   :  { %v88_v6 = vadd.f32 %v86_v45, %v55_v48 }
  0x66   :  { %610 = vrot.lane.b32.xlu1 %v605_v62, %s5558_s4  ;;  %608 = vrot.lane.b32.xlu0 %v604_v63, %s5558_s4  ;;  %v94_v62 = vadd.f32 %v92_v35, %v61_v38  ;;  %v78_v63 = vmul.f32 %v5551_v42, %v2583_v1  ;;  %v119_v1 = vmul.f32 %v2667_v37, %v118_v60  ;;  %v5544_v60 = vstv %s2896_s18  ;;  %s3021_s18 = sld [smem:[#allocation2 + $0x13]] }
  0x67   :  { %v210_v31 = vmul.f32 %v2713_v54, %v5544_v60  ;;  %v689_v35 = vmul.f32 %v2713_v54, %v687_v22  ;;  %v688_v38 = vmul.f32 %v2908_v39, %v687_v22  ;;  %v65_v22 = vmul.f32 %v64_v15, %v2578_v0  ;;  %v3062_v15 = vld [vmem:[%s5531_s0 + $0x48] sm:$0x7f] }
  0x68   :  { %v659_v47 = vstv %s2850_s28  ;;  %s2926_s28 = sld [smem:[#allocation2 + $0x2e]]  ;;  %v127_v14 = vadd.f32 %v125_v56, %v94_v62  ;;  %v121_v34 = vadd.f32 %v119_v1, %v88_v6  ;;  %v3013_v56 = vld [vmem:[%s5531_s0 + $0x10] sm:$0x7f]  ;;  %v1073_v62 = vstv %s2941_s23  ;;  %s3151_s23 = sld [smem:[#allocation2 + $0x64]] }
  0x69   :  { %v661_v53 = vmul.f32 %v2713_v54, %v659_v47  ;;  %v660_v61 = vmul.f32 %v2908_v39, %v659_v47  ;;  %v1059_v47 = vstv %s2934_s20  ;;  %s3023_s20 = sld [smem:[#allocation2 + $0x1c]] }
  0x6a   :  { %624 = vrot.lane.b32.xlu1 %v619_v8, %s5558_s4  ;;  %622 = vrot.lane.b32.xlu0 %v618_v10, %s5558_s4  ;;  %v5545_v8 = vstv %s2886_s13  ;;  %v5548_v10 = vstv %s2888_s11  ;;  %s3003_s13 = sld [smem:[#allocation2 + $0x49]] }
  0x6b   :  { %v80_v16 = vadd.f32 %v78_v63, %v5548_v10  ;;  %v177_v52 = vmul.f32 %v2706_v51, %v5545_v8  ;;  %v160_v51 = vadd.f32 %v158_v13, %v127_v14  ;;  %v185_v63 = vmul.f32 %v2908_v39, %v184_v11  ;;  %v3035_v14 = vld [vmem:[%s5531_s0 + $0x28] sm:$0x7f] }
  0x6c   :  { %v283_v8 = vstv %s3021_s18  ;;  %s3323_s18 = sld [smem:[#allocation2 + $0xd0]] }
  0x6d   :  { %v113_v23 = vadd.f32 %v111_v44, %v80_v16  ;;  %v193_v3 = vadd.f32 %v191_v30, %v160_v51  ;;  %v217_v44 = vstv %s2951_s7  ;;  %v3041_v16 = vmul.f32 %v3013_v56, %v1059_v47  ;;  %s3598_s7 = sld [smem:[#allocation2 + $0x5d]] }
  0x6e   :  { %638 = vrot.lane.b32.xlu1 %v633_v26, %s5558_s4  ;;  %636 = vrot.lane.b32.xlu0 %v632_v27, %s5558_s4  ;;  %v701_v26 = vstv %s2910_s5  ;;  %v152_v27 = vmul.f32 %v2805_v40, %v151_v5  ;;  %v2992_v5 = vld [vmem:[%s5531_s0 + $0x8] sm:$0x7f]  ;;  %s3045_s5 = sld [smem:[#allocation2 + $0xb9]]  ;;  %v3067_v51 = vmul.f32 %v3013_v56, %v1073_v62  ;;  %v284_v10 = vmul.f32 %v3062_v15, %v283_v8 }
  0x6f   :  { %v146_v33 = vadd.f32 %v144_v17, %v113_v23  ;;  %v223_v55 = vstv %s2926_s28  ;;  %v703_v41 = vmul.f32 %v2713_v54, %v701_v26  ;;  %v702_v48 = vmul.f32 %v2908_v39, %v701_v26  ;;  %s3259_s28 = sld [smem:[#allocation2 + $0xac]] }
  0x70   :  { %v256_v17 = vstv %s2958_s22  ;;  %v218_v23 = vmul.f32 %v2992_v5, %v217_v44  ;;  %v250_v30 = vstv %s2982_s17  ;;  %v316_v2 = vstv %s3023_s20  ;;  %s3190_s22 = sld [smem:[#allocation2 + $0x7f]]  ;;  %s3251_s17 = sld [smem:[#allocation2 + $0x9a]] }
  0x71   :  { %v179_v45 = vadd.f32 %v177_v52, %v146_v33  ;;  %v257_v26 = vmul.f32 %v3035_v14, %v256_v17  ;;  %s3325_s20 = sld [smem:[#allocation2 + $0xd9]] }
  0x72   :  { %652 = vrot.lane.b32.xlu1 %v647_v46, %s5558_s4  ;;  %650 = vrot.lane.b32.xlu0 %v646_v43, %s5558_s4  ;;  %v715_v46 = vstv %s2932_s16  ;;  %v3000_v43 = vld [vmem:[%s5531_s0 + $0xb0] sm:$0x7f]  ;;  %s3315_s16 = sld [smem:[#allocation2 + $0x95]] }
  0x73   :  { %v3025_v1 = vadd.f32 %v210_v31, %v179_v45  ;;  %v717_v6 = vmul.f32 %v2713_v54, %v715_v46  ;;  %v716_v13 = vmul.f32 %v2908_v39, %v715_v46  ;;  %v3030_v11 = vmul.f32 %v3000_v43, %v1059_v47  ;;  %v3086_v46 = vld [vmem:[%s5531_s0 + $0x68] sm:$0x7f] }
  0x74   :  { %v1101_v54 = vstv %s2965_s14  ;;  %v3053_v52 = vmul.f32 %v3000_v43, %v1073_v62  ;;  %v322_v47 = vstv %s3003_s13  ;;  %v3092_v45 = vld [vmem:[%s5531_s0 + $0x88] sm:$0x7f]  ;;  %v355_v62 = vstv %s3005_s21  ;;  %s3120_s13 = sld [smem:[#allocation2 + $0x5b]]  ;;  %s5564_s14 = sld [smem:[#allocation9_spill]] }
  0x75   :  { %v317_v50 = vmul.f32 %v3086_v46, %v316_v2  ;;  %s5573_s21 = sld [smem:[#allocation12_spill]] }
  0x76   :  { %666 = vrot.lane.b32.xlu1 %v661_v53, %s5558_s4  ;;  %664 = vrot.lane.b32.xlu0 %v660_v61, %s5558_s4  ;;  %v154_v53 = vadd.f32 %v152_v27, %v121_v34  ;;  %v224_v61 = vmul.f32 %v2992_v5, %v223_v55  ;;  %v289_v27 = vstv %s2980_s24  ;;  %s3229_s24 = sld [smem:[#allocation2 + $0x91]] }
  0x78   :  { %v226_v34 = vadd.f32 %v224_v61, %v193_v3  ;;  %v290_v61 = vmul.f32 %v3062_v15, %v289_v27  ;;  %v251_v3 = vmul.f32 %v3035_v14, %v250_v30 }
  0x7a   :  { %680 = vrot.lane.b32.xlu1 %v675_v18, %s5558_s4  ;;  %678 = vrot.lane.b32.xlu0 %v674_v32, %s5558_s4  ;;  %v1087_v18 = vstv %s2963_s19  ;;  %v187_v32 = vadd.f32 %v185_v63, %v154_v53  ;;  %v98_v63 = vmul.f32 %v2611_v19, %v97_v20  ;;  %v67_v53 = vadd.f32 %v65_v22, %v44_v29  ;;  %v3118_v22 = vld [vmem:[%s5531_s0 + $0xc8] sm:$0x7f]  ;;  %s3614_s19 = sld [smem:[#allocation2 + $0x66]] }
  0x7b   :  { %v3070_v31 = vmul.f32 %v3000_v43, %v1087_v18  ;;  %v3073_v33 = vmul.f32 %v3013_v56, %v1087_v18  ;;  %v259_v60 = vadd.f32 %v257_v26, %v226_v34  ;;  %v3110_v20 = vmul.f32 %v3013_v56, %v1101_v54 }
  0x7c   :  { %v220_v18 = vadd.f32 %v218_v23, %v187_v32  ;;  %v323_v29 = vmul.f32 %v3086_v46, %v322_v47  ;;  %v1115_v23 = vstv %s3045_s5  ;;  %v131_v32 = vmul.f32 %v2667_v37, %v130_v25  ;;  %s3163_s5 = sld [smem:[#allocation2 + $0x76]] }
  0x7d   :  { %v100_v26 = vadd.f32 %v98_v63, %v67_v53  ;;  %v71_v34 = vmul.f32 %v70_v57, %v2578_v0  ;;  %v292_v42 = vadd.f32 %v290_v61, %v259_v60  ;;  %v258_v25 = vmul.f32 %v3118_v22, %v256_v17  ;;  %v3148_v57 = vld [vmem:[%s5531_s0 + $0x128] sm:$0x7f] }
  0x7e   :  { %694 = vrot.lane.b32.xlu1 %v689_v35, %s5558_s4  ;;  %692 = vrot.lane.b32.xlu0 %v688_v38, %s5558_s4  ;;  %v3076_v35 = vmul.f32 %v3000_v43, %v1101_v54  ;;  %v3081_v38 = vld [vmem:[%s5531_s0 + $0xa8] sm:$0x7f]  ;;  %v253_v9 = vadd.f32 %v251_v3, %v220_v18  ;;  %v3157_v63 = vmul.f32 %v3013_v56, %v1115_v23  ;;  %v1129_v18 = vstv %s3107_s9  ;;  %s3261_s9 = sld [smem:[#allocation2 + $0xb5]] }
  0x7f   :  { %v225_v21 = vmul.f32 %v3081_v38, %v223_v55  ;;  %v3126_v55 = vld [vmem:[%s5531_s0 + $0xe8] sm:$0x7f]  ;;  %v104_v53 = vmul.f32 %v2611_v19, %v103_v59  ;;  %v73_v61 = vadd.f32 %v71_v34, %v46_v7  ;;  %v325_v3 = vadd.f32 %v323_v29, %v292_v42 }
  0x80   :  { %v3131_v54 = vld [vmem:[%s5531_s0 + $0x108] sm:$0x7f]  ;;  %v291_v60 = vmul.f32 %v3126_v55, %v289_v27  ;;  %v286_v27 = vadd.f32 %v284_v10, %v253_v9  ;;  %v252_v7 = vmul.f32 %v3118_v22, %v250_v30  ;;  %v285_v9 = vmul.f32 %v3126_v55, %v283_v8 }
  0x81   :  { %v324_v17 = vmul.f32 %v3131_v54, %v322_v47  ;;  %v3178_v47 = vmul.f32 %v3148_v57, %v355_v62  ;;  %v3196_v10 = vmul.f32 %v3131_v54, %v316_v2  ;;  %v197_v30 = vmul.f32 %v2908_v39, %v196_v36 }
  0x82   :  { %708 = vrot.lane.b32.xlu1 %v703_v41, %s5558_s4  ;;  %706 = vrot.lane.b32.xlu0 %v702_v48, %s5558_s4  ;;  %v356_v41 = vmul.f32 %v3092_v45, %v355_v62  ;;  %v349_v48 = vstv %s3038_s27  ;;  %s3161_s27 = sld [smem:[#allocation2 + $0x6d]]  ;;  %v5563_v29 = vstv %s5562_s12  ;;  %v106_v8 = vadd.f32 %v104_v53, %v73_v61  ;;  %s3384_s12 = sld [smem:[#allocation2 + $0xcb]] }
  0x83   :  { %v350_v4 = vmul.f32 %v3092_v45, %v349_v48  ;;  %v3199_v42 = vmul.f32 %v3148_v57, %v349_v48  ;;  %v137_v2 = vmul.f32 %v2667_v37, %v5563_v29  ;;  %v319_v48 = vadd.f32 %v317_v50, %v286_v27 }
  0x85   :  { %v139_v53 = vadd.f32 %v137_v2, %v106_v8  ;;  %v3245_v61 = vadd.f32 %v350_v4, %v319_v48  ;;  %v5568_v4 = vstv %s2862_s3  ;;  %s3286_s3 = sld [smem:[#allocation2 + $0x68]] }
  0x86   :  { %722 = vrot.lane.b32.xlu1 %v717_v6, %s5558_s4  ;;  %720 = vrot.lane.b32.xlu0 %v716_v13, %s5558_s4  ;;  %v227_v6 = vadd.f32 %v225_v21, %v2755_v12  ;;  %v3154_v13 = vmul.f32 %v3000_v43, %v1115_v23  ;;  %v164_v12 = vmul.f32 %v2805_v40, %v163_v28 }
  0x87   :  { %v133_v21 = vadd.f32 %v131_v32, %v100_v26  ;;  %v219_v28 = vmul.f32 %v3081_v38, %v217_v44  ;;  %v3204_v44 = vld [vmem:[%s5531_s0 + $0x30] sm:$0x7f]  ;;  %v3221_v32 = vadd.f32 %v356_v41, %v325_v3 }
  0x88   :  { %v260_v59 = vadd.f32 %v258_v25, %v227_v6  ;;  %v3224_v34 = vmul.f32 %v3204_v44, %v1129_v18  ;;  %v262_v25 = vstv %s3151_s23  ;;  %v295_v50 = vstv %s3161_s27  ;;  %s3360_s23 = sld [smem:[#allocation2 + $0x44]]  ;;  %s3367_s27 = sld [smem:[#allocation2 + $0x71]] }
  0x89   :  { %v166_v62 = vadd.f32 %v164_v12, %v133_v21  ;;  %v221_v23 = vadd.f32 %v219_v28, %v2774_v24  ;;  %v328_v24 = vstv %s3163_s5  ;;  %v5566_v12 = vstv %s5564_s14  ;;  %s3375_s5 = sld [smem:[#allocation2 + $0x9e]]  ;;  %s3616_s14 = sld [smem:[#allocation2 + $0x6f]] }
  0x8a   :  { %1066 = vrot.lane.b32.xlu1 %v3030_v11, %s5558_s4  ;;  %1064 = vrot.lane.b32.xlu0 %v3041_v16, %s5558_s4  ;;  %v3187_v11 = vld [vmem:[%s5531_s0 + $0xd0] sm:$0x7f]  ;;  %v229_v16 = vstv %s3120_s13  ;;  %v293_v26 = vadd.f32 %v291_v60, %v260_v59  ;;  %v170_v21 = vmul.f32 %v2805_v40, %v5566_v12  ;;  %v297_v3 = vmul.f32 %v3126_v55, %v295_v50  ;;  %s3309_s13 = sld [smem:[#allocation2 + $0xc7]] }
  0x8b   :  { %v3219_v36 = vmul.f32 %v3187_v11, %v1129_v18  ;;  %v230_v41 = vmul.f32 %v2992_v5, %v229_v16  ;;  %v199_v60 = vadd.f32 %v197_v30, %v166_v62  ;;  %v254_v27 = vadd.f32 %v252_v7, %v221_v23 }
  0x8c   :  { %v326_v28 = vadd.f32 %v324_v17, %v293_v26  ;;  %v361_v59 = vstv %s3190_s22  ;;  %v235_v18 = vstv %s3192_s30  ;;  %v110_v17 = vmul.f32 %v2611_v19, %v5568_v4  ;;  %s3401_s22 = sld [smem:[#allocation2 + $0x7a]]  ;;  %s3408_s30 = sld [smem:[#allocation2 + $0xa7]] }
  0x8d   :  { %v5569_v7 = vstv %s2888_s11  ;;  %v232_v62 = vadd.f32 %v230_v41, %v199_v60  ;;  %v172_v8 = vadd.f32 %v170_v21, %v139_v53  ;;  %v287_v48 = vadd.f32 %v285_v9, %v254_v27  ;;  %s3296_s11 = sld [smem:[#allocation2 + $0xbe]] }
  0x8e   :  { %1080 = vrot.lane.b32.xlu1 %v3053_v52, %s5558_s4  ;;  %1078 = vrot.lane.b32.xlu0 %v3067_v51, %s5558_s4  ;;  %v231_v52 = vmul.f32 %v3081_v38, %v229_v16  ;;  %v5565_v51 = vstv %s2847_s6  ;;  %s5567_s6 = sld [smem:[#allocation10_spill]]  ;;  %v3277_v23 = vmul.f32 %v3148_v57, %v361_v59  ;;  %v237_v19 = vmul.f32 %v3081_v38, %v235_v18 }
  0x8f   :  { %v77_v6 = vmul.f32 %v5565_v51, %v2578_v0  ;;  %v264_v0 = vmul.f32 %v3118_v22, %v262_v25  ;;  %v296_v26 = vmul.f32 %v3062_v15, %v295_v50  ;;  %v3294_v9 = vmul.f32 %v3092_v45, %v361_v59 }
  0x90   :  { %v233_v30 = vadd.f32 %v231_v52, %v2829_v58  ;;  %v3281_v58 = vadd.f32 %v3178_v47, %v326_v28  ;;  %v268_v52 = vstv %s3229_s24  ;;  %v5572_v47 = vstv %s5571_s15  ;;  %s3427_s24 = sld [smem:[#allocation2 + $0xd4]]  ;;  %s3469_s15 = sld [smem:[#allocation2 + $0xb0]] }
  0x91   :  { %v79_v16 = vadd.f32 %v77_v6, %v5569_v7  ;;  %v143_v50 = vmul.f32 %v2667_v37, %v5572_v47  ;;  %v236_v12 = vmul.f32 %v2992_v5, %v235_v18  ;;  %v270_v53 = vmul.f32 %v3118_v22, %v268_v52 }
  0x92   :  { %1094 = vrot.lane.b32.xlu1 %v3070_v31, %s5558_s4  ;;  %1092 = vrot.lane.b32.xlu0 %v3073_v33, %s5558_s4  ;;  %v3256_v31 = vmul.f32 %v3131_v54, %v328_v24  ;;  %v263_v33 = vmul.f32 %v3035_v14, %v262_v25  ;;  %v1143_v25 = vstv %s3227_s2  ;;  %v266_v41 = vadd.f32 %v264_v0, %v233_v30  ;;  %s3628_s2 = sld [smem:[#allocation2 + $0x78]] }
  0x93   :  { %v112_v6 = vadd.f32 %v110_v17, %v79_v16  ;;  %v239_v37 = vadd.f32 %v237_v19, %v2917_v49  ;;  %v1145_v27 = vmul.f32 %v3187_v11, %v1143_v25  ;;  %v1144_v0 = vmul.f32 %v3204_v44, %v1143_v25 }
  0x94   :  { %v5570_v29 = vstv %s5567_s6  ;;  %v265_v60 = vadd.f32 %v263_v33, %v232_v62  ;;  %v301_v28 = vstv %s3251_s17  ;;  %v334_v59 = vstv %s3253_s1  ;;  %s3436_s6 = sld [smem:[#allocation2 + $0x29]]  ;;  %s3446_s17 = sld [smem:[#allocation2 + $0x56]] }
  0x95   :  { %v203_v2 = vmul.f32 %v2908_v39, %v5570_v29  ;;  %v367_v18 = vstv %s3259_s28  ;;  %v5574_v49 = vstv %s5573_s21  ;;  %v145_v4 = vadd.f32 %v143_v50, %v112_v6  ;;  %s3451_s1 = sld [smem:[#allocation2 + $0x83]]  ;;  %s3682_s28 = sld [smem:[#allocation2 + $0x9c]] }
  0x96   :  { %1108 = vrot.lane.b32.xlu1 %v3076_v35, %s5558_s4  ;;  %1106 = vrot.lane.b32.xlu0 %v3110_v20, %s5558_s4  ;;  %v329_v20 = vmul.f32 %v3086_v46, %v328_v24  ;;  %v320_v24 = vadd.f32 %v3196_v10, %v287_v48  ;;  %v241_v10 = vstv %s3261_s9  ;;  %v176_v33 = vmul.f32 %v2805_v40, %v5574_v49  ;;  %s3700_s9 = sld [smem:[#allocation2 + $0xa5]]  ;;  %s4194_s21 = sld [smem:[#allocation2 + $0xc1]] }
  0x97   :  { %v205_v21 = vadd.f32 %v203_v2, %v172_v8  ;;  %v299_v17 = vadd.f32 %v297_v3, %v266_v41  ;;  %v298_v7 = vadd.f32 %v296_v26, %v265_v60  ;;  %v269_v16 = vmul.f32 %v3035_v14, %v268_v52 }
  0x98   :  { %v3288_v51 = vpop.permute.xlu1 %398  ;;  %v3290_v35 = vpop.permute.xlu0 %384  ;;  %v3332_v62 = vadd.f32 %v3199_v42, %v320_v24  ;;  %v303_v29 = vmul.f32 %v3126_v55, %v301_v28  ;;  %v272_v40 = vadd.f32 %v270_v53, %v239_v37  ;;  %v336_v3 = vmul.f32 %v3131_v54, %v334_v59 }
  0x99   :  { %v238_v30 = vadd.f32 %v236_v12, %v205_v21  ;;  %v3341_v2 = vmul.f32 %v3148_v57, %v367_v18  ;;  %v1157_v8 = vstv %s3286_s3  ;;  %v243_v48 = vmul.f32 %v3081_v38, %v241_v10  ;;  %s3471_s3 = sld [smem:[#allocation2 + $0x3]] }
  0x9a   :  { %1122 = vrot.lane.b32.xlu1 %v3154_v13, %s5558_s4  ;;  %1120 = vrot.lane.b32.xlu0 %v3157_v63, %s5558_s4  ;;  %v5576_v26 = vstv %s5575_s29  ;;  %v178_v52 = vadd.f32 %v176_v33, %v145_v4  ;;  %v332_v47 = vadd.f32 %v3256_v31, %v299_v17  ;;  %v331_v38 = vadd.f32 %v329_v20, %v298_v7  ;;  %s3524_s29 = sld [smem:[#allocation2 + $0xdd]] }
  0x9b   :  { %v209_v25 = vmul.f32 %v2908_v39, %v5576_v26  ;;  %v335_v50 = vmul.f32 %v3086_v46, %v334_v59  ;;  %v271_v6 = vadd.f32 %v269_v16, %v238_v30  ;;  %v305_v41 = vadd.f32 %v303_v29, %v272_v40  ;;  %v3425_v40 = vld [vmem:[%s5531_s0 + $0x50] sm:$0x7f] }
  0x9c   :  { %v3317_v13 = vpop.permute.xlu1 %400  ;;  %v3319_v63 = vpop.permute.xlu0 %386  ;;  %v1159_v39 = vmul.f32 %v3187_v11, %v1157_v8  ;;  %v1158_v60 = vmul.f32 %v3204_v44, %v1157_v8  ;;  %v307_v12 = vstv %s3309_s13  ;;  %v3370_v31 = vmul.f32 %v3092_v45, %v367_v18  ;;  %s3488_s13 = sld [smem:[#allocation2 + $0xc]] }
  0x9d   :  { %v245_v21 = vadd.f32 %v243_v48, %v3025_v1  ;;  %v1171_v24 = vstv %s3315_s16  ;;  %v211_v59 = vadd.f32 %v209_v25, %v178_v52  ;;  %v3387_v18 = vadd.f32 %v3277_v23, %v332_v47  ;;  %s3490_s16 = sld [smem:[#allocation2 + $0x15]] }
  0x9e   :  { %1136 = vrot.lane.b32.xlu1 %v3219_v36, %s5558_s4  ;;  %1134 = vrot.lane.b32.xlu0 %v3224_v34, %s5558_s4  ;;  %v302_v36 = vmul.f32 %v3062_v15, %v301_v28  ;;  %v274_v34 = vstv %s3296_s11  ;;  %v242_v28 = vmul.f32 %v2992_v5, %v241_v10  ;;  %v3390_v1 = vadd.f32 %v3294_v9, %v331_v38  ;;  %s4192_s11 = sld [smem:[#allocation2 + $0xb8]] }
  0x9f   :  { %v276_v20 = vmul.f32 %v3118_v22, %v274_v34  ;;  %v309_v49 = vmul.f32 %v3126_v55, %v307_v12  ;;  %v338_v33 = vadd.f32 %v336_v3, %v305_v41  ;;  %v1173_v5 = vmul.f32 %v3187_v11, %v1171_v24 }
  0xa0   :  { %v3347_v42 = vpop.permute.xlu1 %414  ;;  %v3349_v19 = vpop.permute.xlu0 %412  ;;  %v304_v22 = vadd.f32 %v302_v36, %v271_v6  ;;  %v1172_v10 = vmul.f32 %v3204_v44, %v1171_v24  ;;  %v1185_v4 = vstv %s3345_s10  ;;  %v275_v7 = vmul.f32 %v3035_v14, %v274_v34  ;;  %v3486_v24 = vld [vmem:[%s5531_s0 + $0x70] sm:$0x7f]  ;;  %s3776_s10 = sld [smem:[#allocation2 + $0xd2]] }
  0xa1   :  { %v278_v9 = vadd.f32 %v276_v20, %v245_v21  ;;  %v308_v16 = vmul.f32 %v3062_v15, %v307_v12  ;;  %v244_v29 = vadd.f32 %v242_v28, %v211_v59  ;;  %v1213_v8 = vstv %s3360_s23  ;;  %s3541_s23 = sld [smem:[#allocation2 + $0x30]] }
  0xa2   :  { %1150 = vrot.lane.b32.xlu1 %v1145_v27, %s5558_s4  ;;  %1148 = vrot.lane.b32.xlu0 %v1144_v0, %s5558_s4  ;;  %v340_v27 = vstv %s3323_s18  ;;  %v373_v0 = vstv %s3325_s20  ;;  %v337_v14 = vadd.f32 %v335_v50, %v304_v22  ;;  %v3439_v48 = vadd.f32 %v3341_v2, %v338_v33  ;;  %s3502_s18 = sld [smem:[#allocation2 + $0x1e]]  ;;  %s3511_s20 = sld [smem:[#allocation2 + $0x27]] }
  0xa3   :  { %v342_v23 = vmul.f32 %v3131_v54, %v340_v27  ;;  %v3405_v55 = vmul.f32 %v3148_v57, %v373_v0  ;;  %v3419_v54 = vld [vmem:[%s5531_s0 + $0xf0] sm:$0x7f]  ;;  %v1199_v57 = vstv %s3356_s25  ;;  %v3430_v15 = vmul.f32 %v3086_v46, %v340_v27  ;;  %s3778_s25 = sld [smem:[#allocation2 + $0xdb]] }
  0xa4   :  { %v3377_v53 = vpop.permute.xlu1 %428  ;;  %v3379_v37 = vpop.permute.xlu0 %426  ;;  %v3433_v3 = vmul.f32 %v3092_v45, %v373_v0  ;;  %v1187_v36 = vmul.f32 %v3187_v11, %v1185_v4  ;;  %v1186_v34 = vmul.f32 %v3204_v44, %v1185_v4  ;;  %v1227_v46 = vstv %s3367_s27  ;;  %s3543_s27 = sld [smem:[#allocation2 + $0x39]] }
  0xa5   :  { %v311_v45 = vadd.f32 %v309_v49, %v278_v9  ;;  %v1201_v26 = vmul.f32 %v3419_v54, %v1199_v57  ;;  %v1200_v25 = vmul.f32 %v3425_v40, %v1199_v57  ;;  %v1241_v2 = vstv %s3375_s5  ;;  %s3830_s5 = sld [smem:[#allocation2 + $0xd]] }
  0xa6   :  { %1164 = vrot.lane.b32.xlu1 %v1159_v39, %s5558_s4  ;;  %1162 = vrot.lane.b32.xlu0 %v1158_v60, %s5558_s4  ;;  %v277_v52 = vadd.f32 %v275_v7, %v244_v29  ;;  %v3458_v50 = vmul.f32 %v3419_v54, %v1213_v8  ;;  %v3461_v6 = vmul.f32 %v3425_v40, %v1213_v8  ;;  %v1255_v41 = vstv %s3384_s12  ;;  %v3467_v39 = vld [vmem:[%s5531_s0 + $0x110] sm:$0x7f]  ;;  %s3847_s12 = sld [smem:[#allocation2 + $0x16]] }
  0xa7   :  { %v3474_v60 = vadd.f32 %v3370_v31, %v337_v14  ;;  %v3477_v12 = vmul.f32 %v3419_v54, %v1227_v46  ;;  %v3480_v20 = vmul.f32 %v3425_v40, %v1227_v46  ;;  %v1269_v21 = vstv %s3393_s26  ;;  %v3538_v14 = vld [vmem:[%s5531_s0 + $0x130] sm:$0x7f]  ;;  %s3562_s26 = sld [smem:[#allocation2 + $0x42]] }
  0xa8   :  { %v3410_v17 = vpop.permute.xlu1 %442  ;;  %v3414_v30 = vpop.permute.xlu0 %440  ;;  %v3495_v31 = vmul.f32 %v3419_v54, %v1241_v2  ;;  %v3498_v27 = vmul.f32 %v3425_v40, %v1241_v2  ;;  %v1283_v0 = vstv %s3399_s8  ;;  %v1297_v28 = vstv %s3401_s22  ;;  %s3564_s8 = sld [smem:[#allocation2 + $0x4b]]  ;;  %s3576_s22 = sld [smem:[#allocation2 + $0x54]] }
  0xa9   :  { %v344_v59 = vadd.f32 %v342_v23, %v311_v45  ;;  %v3505_v22 = vmul.f32 %v3419_v54, %v1255_v41  ;;  %v3508_v49 = vmul.f32 %v3425_v40, %v1255_v41  ;;  %v1311_v33 = vstv %s3408_s30  ;;  %v3559_v45 = vld [vmem:[%s5531_s0 + $0x90] sm:$0x7f]  ;;  %s3596_s30 = sld [smem:[#allocation2 + $0x8]] }
  0xaa   :  { %1178 = vrot.lane.b32.xlu1 %v1173_v5, %s5558_s4  ;;  %1176 = vrot.lane.b32.xlu0 %v1172_v10, %s5558_s4  ;;  %v310_v5 = vadd.f32 %v308_v16, %v277_v52  ;;  %v3518_v4 = vmul.f32 %v3467_v39, %v1269_v21  ;;  %v3521_v23 = vmul.f32 %v3486_v24, %v1269_v21  ;;  %v1325_v7 = vstv %s3427_s24  ;;  %s3646_s24 = sld [smem:[#allocation2 + $0x81]] }
  0xab   :  { %v3527_v29 = vmul.f32 %v3467_v39, %v1283_v0  ;;  %v3530_v57 = vmul.f32 %v3486_v24, %v1283_v0  ;;  %v3533_v16 = vmul.f32 %v3467_v39, %v1297_v28  ;;  %v1339_v8 = vstv %s3436_s6  ;;  %s3654_s6 = sld [smem:[#allocation2 + $0x35]] }
  0xac   :  { %v3453_v47 = vpop.permute.xlu1 %456  ;;  %v3455_v38 = vpop.permute.xlu0 %454  ;;  %v3554_v46 = vmul.f32 %v3486_v24, %v1311_v33  ;;  %v1353_v2 = vstv %s3446_s17  ;;  %v3573_v52 = vmul.f32 %v3486_v24, %v1325_v7  ;;  %v1367_v41 = vstv %s3451_s1  ;;  %s3668_s17 = sld [smem:[#allocation2 + $0x8a]]  ;;  %s3670_s1 = sld [smem:[#allocation2 + $0x93]] }
  0xad   :  { %5577 = vst [vmem:[#allocation14_spill] sm:$0xff] %v3455_v38  ;;  %v343_v21 = vadd.f32 %v3430_v15, %v310_v5  ;;  %v798_v38 = vstv %s3490_s16  ;;  %v3605_v15 = vmul.f32 %v3559_v45, %v1353_v2  ;;  %v3608_v5 = vmul.f32 %v3538_v14, %v1367_v41  ;;  %s3744_s16 = sld [smem:[#allocation2 + $0x62]] }
  0xae   :  { %1192 = vrot.lane.b32.xlu1 %v1187_v36, %s5558_s4  ;;  %1190 = vrot.lane.b32.xlu0 %v1186_v34, %s5558_s4  ;;  %v3548_v36 = vmul.f32 %v3486_v24, %v1297_v28  ;;  %v3551_v34 = vmul.f32 %v3467_v39, %v1311_v33  ;;  %v3584_v33 = vmul.f32 %v3538_v14, %v1339_v8 }
  0xaf   :  { %5582 = vst [vmem:[#allocation19_spill] sm:$0xff] %v3608_v5 }
  0xb0   :  { %v3513_v10 = vpop.permute.xlu1 %470  ;;  %v3515_v9 = vpop.permute.xlu0 %468 }
  0xb1   :  { %5578 = vst [vmem:[#allocation15_spill] sm:$0xff] %v3513_v10  ;;  %5579 = vst [vmem:[#allocation16_spill] sm:$0xff] %v3515_v9  ;;  %v3589_v9 = vmul.f32 %v3559_v45, %v1339_v8  ;;  %v765_v10 = vstv %s3488_s13  ;;  %v3611_v8 = vmul.f32 %v3559_v45, %v1367_v41  ;;  %v3631_v41 = vadd.f32 %v3433_v3, %v343_v21  ;;  %s4212_s13 = sld [smem:[#allocation2 + $0xca]] }
  0xb2   :  { %1206 = vrot.lane.b32.xlu1 %v1201_v26, %s5558_s4  ;;  %1204 = vrot.lane.b32.xlu0 %v1200_v25, %s5558_s4  ;;  %v3567_v26 = vadd.f32 %v3405_v55, %v344_v59  ;;  %v3570_v25 = vmul.f32 %v3467_v39, %v1325_v7  ;;  %v1381_v55 = vstv %s3469_s15  ;;  %v732_v59 = vstv %s3471_s3  ;;  %s3702_s15 = sld [smem:[#allocation2 + $0xae]]  ;;  %s3954_s3 = sld [smem:[#allocation2 + $0x55]] }
  0xb3   :  { %v3592_v7 = vmul.f32 %v3538_v14, %v1353_v2  ;;  %5583 = vst [vmem:[#allocation20_spill] sm:$0xff] %v3611_v8  ;;  %v3625_v2 = vmul.f32 %v3000_v43, %v732_v59  ;;  %v1395_v21 = vstv %s3524_s29  ;;  %s3764_s29 = sld [smem:[#allocation2 + $0xc9]] }
  0xb4   :  { %v3579_v0 = vpop.permute.xlu1 %484  ;;  %v3581_v28 = vpop.permute.xlu0 %482 }
  0xb5   :  { %5580 = vst [vmem:[#allocation17_spill] sm:$0xff] %v3579_v0  ;;  %5581 = vst [vmem:[#allocation18_spill] sm:$0xff] %v3581_v28  ;;  %v831_v28 = vstv %s3502_s18  ;;  %v864_v0 = vstv %s3511_s20  ;;  %s3746_s18 = sld [smem:[#allocation2 + $0xb7]]  ;;  %s3762_s20 = sld [smem:[#allocation2 + $0xc0]] }
  0xb6   :  { %1220 = vrot.lane.b32.xlu1 %v3458_v50, %s5558_s4  ;;  %1218 = vrot.lane.b32.xlu0 %v3461_v6, %s5558_s4  ;;  %v3619_v50 = vmul.f32 %v3538_v14, %v1381_v55  ;;  %v3622_v6 = vmul.f32 %v3559_v45, %v1381_v55  ;;  %5586 = vst [vmem:[#allocation23_spill] sm:$0xff] %v3625_v2 }
  0xb7   :  { %v3641_v55 = vmul.f32 %v3419_v54, %v798_v38  ;;  %v3644_v2 = vmul.f32 %v3013_v56, %v732_v59  ;;  %v3649_v3 = vmul.f32 %v3467_v39, %v831_v28  ;;  %v3661_v59 = vmul.f32 %v3538_v14, %v864_v0 }
  0xb8   :  { %5584 = vst [vmem:[#allocation21_spill] sm:$0xff] %v3619_v50  ;;  %5585 = vst [vmem:[#allocation22_spill] sm:$0xff] %v3622_v6  ;;  %v3633_v8 = vpop.permute.xlu1 %498  ;;  %v3635_v5 = vpop.permute.xlu0 %496  ;;  %v3638_v50 = vmul.f32 %v3187_v11, %v765_v10  ;;  %v771_v6 = vstv %s3543_s27  ;;  %s3828_s27 = sld [smem:[#allocation2 + $0x8f]] }
  0xb9   :  { %5587 = vst [vmem:[#allocation24_spill] sm:$0xff] %v3633_v8  ;;  %5588 = vst [vmem:[#allocation25_spill] sm:$0xff] %v3635_v5  ;;  %v738_v8 = vstv %s3541_s23  ;;  %v3689_v5 = vmul.f32 %v3538_v14, %v1395_v21  ;;  %s3814_s23 = sld [smem:[#allocation2 + $0x4]] }
  0xba   :  { %5589 = vst [vmem:[#allocation26_spill] sm:$0xff] %v3638_v50  ;;  %5590 = vst [vmem:[#allocation27_spill] sm:$0xff] %v3641_v55  ;;  %1234 = vrot.lane.b32.xlu1 %v3477_v12, %s5558_s4  ;;  %1232 = vrot.lane.b32.xlu0 %v3480_v20, %s5558_s4  ;;  %v3664_v55 = vmul.f32 %v3204_v44, %v765_v10  ;;  %v804_v50 = vstv %s3562_s26  ;;  %v3676_v12 = vmul.f32 %v3486_v24, %v831_v28  ;;  %s3849_s26 = sld [smem:[#allocation2 + $0x1f]] }
  0xbb   :  { %5591 = vst [vmem:[#allocation28_spill] sm:$0xff] %v3644_v2  ;;  %5592 = vst [vmem:[#allocation29_spill] sm:$0xff] %v3649_v3  ;;  %v837_v3 = vstv %s3564_s8  ;;  %v3673_v2 = vmul.f32 %v3425_v40, %v798_v38  ;;  %v3679_v20 = vmul.f32 %v3559_v45, %v864_v0  ;;  %v3692_v38 = vmul.f32 %v3559_v45, %v1395_v21  ;;  %v3713_v21 = vld [vmem:[%s5531_s0 + $0xa1] sm:$0x7f]  ;;  %s3861_s8 = sld [smem:[#allocation2 + $0x28]] }
  0xbc   :  { %5593 = vst [vmem:[#allocation30_spill] sm:$0xff] %v3661_v59  ;;  %5594 = vst [vmem:[#allocation31_spill] sm:$0xff] %v3664_v55  ;;  %v870_v59 = vstv %s3576_s22  ;;  %v3684_v10 = vpop.permute.xlu1 %512  ;;  %v3686_v55 = vpop.permute.xlu0 %510  ;;  %v3695_v28 = vmul.f32 %v3000_v43, %v738_v8  ;;  %v3698_v0 = vmul.f32 %v3187_v11, %v771_v6  ;;  %s3881_s22 = sld [smem:[#allocation2 + $0xbc]] }
  0xbd   :  { %5595 = vst [vmem:[#allocation32_spill] sm:$0xff] %v3673_v2  ;;  %5596 = vst [vmem:[#allocation33_spill] sm:$0xff] %v3676_v12  ;;  %v3708_v12 = vmul.f32 %v3467_v39, %v837_v3  ;;  %v744_v2 = vstv %s3598_s7  ;;  %s3898_s7 = sld [smem:[#allocation2 + $0x3a]] }
  0xbe   :  { %5597 = vst [vmem:[#allocation34_spill] sm:$0xff] %v3679_v20  ;;  %5598 = vst [vmem:[#allocation35_spill] sm:$0xff] %v3684_v10  ;;  %v3705_v20 = vmul.f32 %v3419_v54, %v804_v50  ;;  %1248 = vrot.lane.b32.xlu1 %v3495_v31, %s5558_s4  ;;  %1246 = vrot.lane.b32.xlu0 %v3498_v27, %s5558_s4  ;;  %v810_v10 = vstv %s3616_s14  ;;  %v3741_v31 = vmul.f32 %v3486_v24, %v837_v3  ;;  %s4050_s14 = sld [smem:[#allocation2 + $0x79]] }
  0xbf   :  { %5599 = vst [vmem:[#allocation36_spill] sm:$0xff] %v3686_v55  ;;  %5600 = vst [vmem:[#allocation37_spill] sm:$0xff] %v3689_v5  ;;  %v777_v55 = vstv %s3614_s19  ;;  %v3738_v5 = vmul.f32 %v3425_v40, %v804_v50  ;;  %v843_v27 = vstv %s3628_s2  ;;  %v876_v3 = vstv %s3646_s24  ;;  %s4052_s2 = sld [smem:[#allocation2 + $0x82]]  ;;  %s4123_s24 = sld [smem:[#allocation2 + $0x9d]] }
  0xc0   :  { %5601 = vst [vmem:[#allocation38_spill] sm:$0xff] %v3692_v38  ;;  %5602 = vst [vmem:[#allocation39_spill] sm:$0xff] %v3695_v28  ;;  %v1729_v28 = vstv %s3596_s30  ;;  %v3735_v38 = vmul.f32 %v3204_v44, %v771_v6  ;;  %s3896_s30 = sld [smem:[#allocation2 + $0x31]]  ;;  %s4566_s19 = sld [smem:[#allocation2 + $0xce]] }
  0xc1   :  { %5603 = vst [vmem:[#allocation40_spill] sm:$0xff] %v3698_v0  ;;  %5604 = vst [vmem:[#allocation41_spill] sm:$0xff] %v3705_v20  ;;  %v3719_v0 = vld [vmem:[%s5531_s0 + $0x1] sm:$0x7f]  ;;  %v3730_v20 = vmul.f32 %v3013_v56, %v738_v8  ;;  %v3750_v8 = vpop.permute.xlu0 %524  ;;  %v3756_v50 = vmul.f32 %v1729_v28, %v3713_v21 }
  0xc2   :  { %5605 = vst [vmem:[#allocation42_spill] sm:$0xff] %v3708_v12  ;;  %v3727_v12 = vmul.f32 %v3538_v14, %v870_v59  ;;  %5608 = vst [vmem:[#allocation45_spill] sm:$0xff] %v3735_v38  ;;  %v3759_v6 = vmul.f32 %v1729_v28, %v3719_v0  ;;  %1262 = vrot.lane.b32.xlu1 %v3505_v22, %s5558_s4  ;;  %1260 = vrot.lane.b32.xlu0 %v3508_v49, %s5558_s4  ;;  %v816_v22 = vstv %s3682_s28  ;;  %s4606_s28 = sld [smem:[#allocation2 + $0x86]] }
  0xc3   :  { %5607 = vst [vmem:[#allocation44_spill] sm:$0xff] %v3730_v20  ;;  %5609 = vst [vmem:[#allocation46_spill] sm:$0xff] %v3738_v5  ;;  %v3753_v20 = vmul.f32 %v3559_v45, %v870_v59  ;;  %v3770_v59 = vmul.f32 %v3187_v11, %v777_v55  ;;  %v1743_v5 = vstv %s3654_s6  ;;  %v3785_v28 = vmul.f32 %v3467_v39, %v843_v27  ;;  %s3924_s6 = sld [smem:[#allocation2 + $0x43]] }
  0xc4   :  { %5606 = vst [vmem:[#allocation43_spill] sm:$0xff] %v3727_v12  ;;  %5610 = vst [vmem:[#allocation47_spill] sm:$0xff] %v3741_v31  ;;  %v3748_v12 = vpop.permute.xlu1 %526  ;;  %v3767_v31 = vmul.f32 %v3000_v43, %v744_v2  ;;  %v3793_v38 = vmul.f32 %v3538_v14, %v876_v3 }
  0xc5   :  { %5611 = vst [vmem:[#allocation48_spill] sm:$0xff] %v3748_v12  ;;  %5612 = vst [vmem:[#allocation49_spill] sm:$0xff] %v3750_v8  ;;  %v3804_v49 = vpop.permute.xlu0 %538  ;;  %v882_v12 = vstv %s3702_s15  ;;  %s3952_s15 = sld [smem:[#allocation2 + $0x4c]] }
  0xc6   :  { %5613 = vst [vmem:[#allocation50_spill] sm:$0xff] %v3753_v20  ;;  %5614 = vst [vmem:[#allocation51_spill] sm:$0xff] %v3756_v50  ;;  %v3773_v20 = vmul.f32 %v3419_v54, %v810_v10  ;;  %v3799_v50 = vmul.f32 %v3425_v40, %v810_v10  ;;  %v3820_v10 = vmul.f32 %v1743_v5, %v3719_v0  ;;  %1276 = vrot.lane.b32.xlu1 %v3518_v4, %s5558_s4 }
  0xc7   :  { %5615 = vst [vmem:[#allocation52_spill] sm:$0xff] %v3759_v6  ;;  %5616 = vst [vmem:[#allocation53_spill] sm:$0xff] %v3767_v31  ;;  %v783_v31 = vstv %s3670_s1  ;;  %v3796_v6 = vmul.f32 %v3204_v44, %v777_v55  ;;  %v3817_v55 = vmul.f32 %v1743_v5, %v3713_v21  ;;  %1274 = vrot.lane.b32.xlu0 %v3521_v23, %s5558_s4  ;;  %s4791_s1 = sld [smem:[#allocation2 + $0x8d]] }
  0xc8   :  { %5617 = vst [vmem:[#allocation54_spill] sm:$0xff] %v3770_v59  ;;  %5618 = vst [vmem:[#allocation55_spill] sm:$0xff] %v3773_v20  ;;  %v3788_v59 = vmul.f32 %v3013_v56, %v744_v2  ;;  %v750_v20 = vstv %s3668_s17  ;;  %v3802_v8 = vpop.permute.xlu1 %540  ;;  %v3810_v2 = vmul.f32 %v3559_v45, %v876_v3  ;;  %v3834_v3 = vadd.f32 %v3288_v51, %v3221_v32  ;;  %s5154_s17 = sld [smem:[#allocation2 + $0xb2]] }
  0xc9   :  { %5619 = vst [vmem:[#allocation56_spill] sm:$0xff] %v3785_v28  ;;  %5621 = vst [vmem:[#allocation58_spill] sm:$0xff] %v3793_v38  ;;  %v3807_v28 = vmul.f32 %v3486_v24, %v843_v27  ;;  %v3823_v38 = vmul.f32 %v3000_v43, %v750_v20  ;;  %v3826_v27 = vmul.f32 %v3187_v11, %v783_v31  ;;  %v3865_v23 = vpop.permute.xlu0 %552 }
  0xca   :  { %5620 = vst [vmem:[#allocation57_spill] sm:$0xff] %v3788_v59  ;;  %5622 = vst [vmem:[#allocation59_spill] sm:$0xff] %v3799_v50  ;;  %v849_v59 = vstv %s3700_s9  ;;  %v3845_v5 = vmul.f32 %v3419_v54, %v816_v22  ;;  %v3858_v51 = vmul.f32 %v3013_v56, %v750_v20  ;;  %v822_v20 = vstv %s3764_s29  ;;  %1290 = vrot.lane.b32.xlu1 %v3527_v29, %s5558_s4  ;;  %s4476_s29 = sld [smem:[#allocation2 + $0xc5]]  ;;  %s4803_s9 = sld [smem:[#allocation2 + $0x9f]] }
  0xcb   :  { %5623 = vst [vmem:[#allocation60_spill] sm:$0xff] %v3807_v28  ;;  %5624 = vst [vmem:[#allocation61_spill] sm:$0xff] %v3810_v2  ;;  %v3838_v2 = vadd.f32 %v3290_v35, %v3245_v61  ;;  %v3852_v32 = vmul.f32 %v3467_v39, %v849_v59  ;;  %v3855_v61 = vmul.f32 %v3538_v14, %v882_v12  ;;  %v1757_v35 = vstv %s3744_s16  ;;  %s4220_s16 = sld [smem:[#allocation2 + $0xd3]] }
  0xcc   :  { %5625 = vst [vmem:[#allocation62_spill] sm:$0xff] %v3826_v27  ;;  %5626 = vst [vmem:[#allocation63_spill] sm:$0xff] %v3845_v5  ;;  %v3863_v4 = vpop.permute.xlu1 %554  ;;  %v3868_v5 = vmul.f32 %v3204_v44, %v783_v31  ;;  %v3871_v28 = vmul.f32 %v3425_v40, %v816_v22  ;;  %v789_v27 = vstv %s3762_s20  ;;  %v855_v50 = vstv %s3776_s10  ;;  %1288 = vrot.lane.b32.xlu0 %v3530_v57, %s5558_s4  ;;  %s4374_s20 = sld [smem:[#allocation2 + $0x98]]  ;;  %s4497_s10 = sld [smem:[#allocation2 + $0x1a]] }
  0xcd   :  { %5627 = vst [vmem:[#allocation64_spill] sm:$0xff] %v3852_v32  ;;  %5628 = vst [vmem:[#allocation65_spill] sm:$0xff] %v3855_v61  ;;  %v756_v32 = vstv %s3746_s18  ;;  %v3876_v61 = vmul.f32 %v3486_v24, %v849_v59  ;;  %v3888_v31 = vmul.f32 %v3559_v45, %v882_v12  ;;  %v3891_v22 = vmul.f32 %v1757_v35, %v3713_v21  ;;  %s4222_s18 = sld [smem:[#allocation2 + $0xdc]] }
  0xce   :  { %5629 = vst [vmem:[#allocation66_spill] sm:$0xff] %v3858_v51  ;;  %5630 = vst [vmem:[#allocation67_spill] sm:$0xff] %v3868_v5  ;;  %v888_v51 = vstv %s3778_s25  ;;  %v3894_v59 = vmul.f32 %v1757_v35, %v3719_v0  ;;  %v3906_v29 = vadd.f32 %v3319_v63, %v3332_v62  ;;  %v3909_v57 = vmul.f32 %v3000_v43, %v756_v32  ;;  %v3917_v35 = vld [vmem:[%s5531_s0 + $0xb8] sm:$0x7f]  ;;  %s4006_s25 = sld [smem:[#allocation2 + $0x11]] }
  0xcf   :  { %5631 = vst [vmem:[#allocation68_spill] sm:$0xff] %v3871_v28  ;;  %5632 = vst [vmem:[#allocation69_spill] sm:$0xff] %v3876_v61  ;;  %v3902_v61 = vadd.f32 %v3317_v13, %v3281_v58  ;;  %v3912_v12 = vmul.f32 %v3187_v11, %v789_v27  ;;  %v3922_v58 = vld [vmem:[%s5531_s0 + $0x18] sm:$0x7f]  ;;  %v3928_v13 = vpop.permute.xlu0 %566  ;;  %v3931_v11 = vmul.f32 %v3419_v54, %v822_v20  ;;  %1304 = vrot.lane.b32.xlu1 %v3533_v16, %s5558_s4 }
  0xd0   :  { %5633 = vst [vmem:[#allocation70_spill] sm:$0xff] %v3888_v31  ;;  %5634 = vst [vmem:[#allocation71_spill] sm:$0xff] %v3909_v57  ;;  %v3926_v43 = vpop.permute.xlu1 %568  ;;  %v3934_v63 = vmul.f32 %v3467_v39, %v855_v50  ;;  %v3937_v62 = vmul.f32 %v3538_v14, %v888_v51  ;;  %v3940_v31 = vmul.f32 %v3013_v56, %v756_v32  ;;  %v3950_v54 = vld [vmem:[%s5531_s0 + $0xf8] sm:$0x7f]  ;;  %v1771_v56 = vstv %s3828_s27  ;;  %s4682_s27 = sld [smem:[#allocation2 + $0x33]] }
  0xd1   :  { %5635 = vst [vmem:[#allocation72_spill] sm:$0xff] %v3912_v12  ;;  %5636 = vst [vmem:[#allocation73_spill] sm:$0xff] %v3931_v11  ;;  %v3945_v12 = vld [vmem:[%s5531_s0 + $0xd8] sm:$0x7f]  ;;  %v3957_v39 = vmul.f32 %v3204_v44, %v789_v27  ;;  %v897_v14 = vstv %s3814_s23  ;;  %v930_v32 = vstv %s3830_s5  ;;  %1302 = vrot.lane.b32.xlu0 %v3548_v36, %s5558_s4  ;;  %v3977_v44 = vmul.f32 %v3425_v40, %v822_v20  ;;  %s4008_s23 = sld [smem:[#allocation2 + $0x5e]]  ;;  %s4694_s5 = sld [smem:[#allocation2 + $0x3c]] }
  0xd2   :  { %5637 = vst [vmem:[#allocation74_spill] sm:$0xff] %v3934_v63  ;;  %5638 = vst [vmem:[#allocation75_spill] sm:$0xff] %v3937_v62  ;;  %v3965_v62 = vld [vmem:[%s5531_s0 + $0x118] sm:$0x7f]  ;;  %v3980_v27 = vmul.f32 %v3486_v24, %v855_v50  ;;  %v963_v11 = vstv %s3847_s12  ;;  %v3991_v57 = vadd.f32 %v3347_v42, %v3387_v18  ;;  %v3995_v16 = vadd.f32 %v3349_v19, %v3390_v1  ;;  %s4031_s12 = sld [smem:[#allocation2 + $0x67]] }
  0xd3   :  { %5639 = vst [vmem:[#allocation76_spill] sm:$0xff] %v3940_v31  ;;  %5640 = vst [vmem:[#allocation77_spill] sm:$0xff] %v3957_v39  ;;  %v3970_v63 = vld [vmem:[%s5531_s0 + $0x38] sm:$0x7f]  ;;  %v996_v39 = vstv %s3849_s26  ;;  %v3998_v40 = vmul.f32 %v3559_v45, %v888_v51  ;;  %v1029_v36 = vstv %s3861_s8  ;;  %v4012_v18 = vpop.permute.xlu0 %580  ;;  %v4015_v19 = vmul.f32 %v1771_v56, %v3713_v21  ;;  %s4033_s26 = sld [smem:[#allocation2 + $0x70]]  ;;  %1318 = vrot.lane.b32.xlu1 %v3551_v34, %s5558_s4  ;;  %s4564_s8 = sld [smem:[#allocation2 + $0xa1]] }
  0xd4   :  { %5641 = vst [vmem:[#allocation78_spill] sm:$0xff] %v3977_v44  ;;  %5642 = vst [vmem:[#allocation79_spill] sm:$0xff] %v3980_v27  ;;  %v3987_v31 = vld [vmem:[%s5531_s0 + $0x58] sm:$0x7f]  ;;  %v4010_v42 = vpop.permute.xlu1 %582  ;;  %v4018_v1 = vmul.f32 %v1771_v56, %v3719_v0  ;;  %v4021_v45 = vmul.f32 %v3917_v35, %v897_v14  ;;  %v4024_v50 = vmul.f32 %v3922_v58, %v897_v14  ;;  %v1785_v27 = vstv %s3881_s22  ;;  %s4090_s22 = sld [smem:[#allocation2 + $0x8b]] }
  0xd5   :  { %5643 = vst [vmem:[#allocation80_spill] sm:$0xff] %v3998_v40  ;;  %v4003_v24 = vld [vmem:[%s5531_s0 + $0x138] sm:$0x7f]  ;;  %5644 = vst [vmem:[#allocation81_spill] sm:$0xff] %v4015_v19  ;;  %v4036_v20 = vmul.f32 %v3945_v12, %v930_v32  ;;  %v4039_v56 = vmul.f32 %v3950_v54, %v963_v11  ;;  %v4042_v14 = vmul.f32 %v3965_v62, %v996_v39  ;;  %1316 = vrot.lane.b32.xlu0 %v3554_v46, %s5558_s4 }
  0xd6   :  { %5645 = vst [vmem:[#allocation82_spill] sm:$0xff] %v4018_v1  ;;  %5646 = vst [vmem:[#allocation83_spill] sm:$0xff] %v4024_v50  ;;  %v4029_v51 = vld [vmem:[%s5531_s0 + $0x78] sm:$0x7f]  ;;  %v4059_v44 = vmul.f32 %v4003_v24, %v1029_v36  ;;  %v903_v28 = vstv %s3896_s30  ;;  %v4068_v1 = vadd.f32 %v3377_v53, %v3439_v48  ;;  %v4072_v19 = vadd.f32 %v3379_v37, %v3474_v60  ;;  %s4104_s30 = sld [smem:[#allocation2 + $0x3e]] }
  0xd7   :  { %5647 = vst [vmem:[#allocation84_spill] sm:$0xff] %v4039_v56  ;;  %5648 = vst [vmem:[#allocation85_spill] sm:$0xff] %v4042_v14  ;;  %v4047_v40 = vld [vmem:[%s5531_s0 + $0x98] sm:$0x7f]  ;;  %v4062_v14 = vmul.f32 %v3970_v63, %v930_v32  ;;  %v936_v56 = vstv %s3898_s7  ;;  %v4075_v34 = vmul.f32 %v3987_v31, %v963_v11  ;;  %v969_v46 = vstv %s3924_s6  ;;  %s4106_s7 = sld [smem:[#allocation2 + $0x94]]  ;;  %1332 = vrot.lane.b32.xlu1 %v3570_v25, %s5558_s4  ;;  %s4125_s6 = sld [smem:[#allocation2 + $0xa6]] }
  0xd8   :  { %5649 = vst [vmem:[#allocation86_spill] sm:$0xff] %v4047_v40  ;;  %5650 = vst [vmem:[#allocation87_spill] sm:$0xff] %v4059_v44  ;;  %v4078_v5 = vpop.permute.xlu1 %596  ;;  %v4080_v44 = vpop.permute.xlu0 %594  ;;  %v4083_v32 = vmul.f32 %v4029_v51, %v996_v39  ;;  %v1002_v53 = vstv %s3952_s15  ;;  %v1035_v48 = vstv %s3954_s3  ;;  %v4093_v37 = vmul.f32 %v1785_v27, %v3713_v21  ;;  %v4139_v25 = vld [vmem:[%s5531_s0 + $0xc1] sm:$0x7f]  ;;  %s4147_s15 = sld [smem:[#allocation2 + $0xaf]]  ;;  %s4167_s3 = sld [smem:[#allocation2 + $0x6b]] }
  0xd9   :  { %5651 = vst [vmem:[#allocation88_spill] sm:$0xff] %v4062_v14  ;;  %5652 = vst [vmem:[#allocation89_spill] sm:$0xff] %v4075_v34  ;;  %v4086_v14 = vmul.f32 %v4047_v40, %v1029_v36  ;;  %v4096_v60 = vmul.f32 %v1785_v27, %v3719_v0  ;;  %v4099_v11 = vmul.f32 %v3917_v35, %v903_v28  ;;  %1330 = vrot.lane.b32.xlu0 %v3573_v52, %s5558_s4  ;;  %v5700_v50 = vld [vmem:[#allocation21_spill] sm:$0xff] }
  0xda   :  { %5653 = vst [vmem:[#allocation90_spill] sm:$0xff] %v4083_v32  ;;  %5655 = vst [vmem:[#allocation92_spill] sm:$0xff] %v4093_v37  ;;  %v4102_v39 = vmul.f32 %v3945_v12, %v936_v56  ;;  %v4110_v36 = vadd.f32 %v3410_v17, %v3567_v26  ;;  %v4114_v21 = vadd.f32 %v3414_v30, %v3631_v41  ;;  %v1799_v52 = vstv %s4006_s25  ;;  %v4145_v41 = vld [vmem:[%s5531_s0 + $0x21] sm:$0x7f]  ;;  %s4519_s25 = sld [smem:[#allocation2 + $0x47]] }
  0xdb   :  { %5654 = vst [vmem:[#allocation91_spill] sm:$0xff] %v4086_v14  ;;  %5656 = vst [vmem:[#allocation93_spill] sm:$0xff] %v4096_v60  ;;  %v4121_v0 = vmul.f32 %v3950_v54, %v969_v46  ;;  %v4128_v17 = vmul.f32 %v3965_v62, %v1002_v53  ;;  %v4131_v30 = vmul.f32 %v4003_v24, %v1035_v48  ;;  %v909_v14 = vstv %s4008_s23  ;;  %s4936_s23 = sld [smem:[#allocation2 + $0x2b]] }
  0xdc   :  { %5657 = vst [vmem:[#allocation94_spill] sm:$0xff] %v4099_v11  ;;  %5658 = vst [vmem:[#allocation95_spill] sm:$0xff] %v4102_v39  ;;  %v4134_v26 = vmul.f32 %v3922_v58, %v903_v28  ;;  %v4149_v27 = vpop.permute.xlu1 %610  ;;  %v4154_v28 = vmul.f32 %v3970_v63, %v936_v56  ;;  %v975_v39 = vstv %s4033_s26  ;;  %v1008_v32 = vstv %s4050_s14  ;;  %1346 = vrot.lane.b32.xlu1 %v3584_v33, %s5558_s4  ;;  %s4551_s26 = sld [smem:[#allocation2 + $0x74]]  ;;  %s4572_s14 = sld [smem:[#allocation2 + $0x23]] }
  0xdd   :  { %5659 = vst [vmem:[#allocation96_spill] sm:$0xff] %v4121_v0  ;;  %5660 = vst [vmem:[#allocation97_spill] sm:$0xff] %v4128_v17  ;;  %v4151_v17 = vpop.permute.xlu0 %608  ;;  %v942_v0 = vstv %s4031_s12  ;;  %v1041_v11 = vstv %s4052_s2  ;;  %1344 = vrot.lane.b32.xlu0 %v3589_v9, %s5558_s4  ;;  %v4174_v56 = vmul.f32 %v4047_v40, %v1035_v48  ;;  %v4187_v9 = vmul.f32 %v3917_v35, %v909_v14  ;;  %s4579_s2 = sld [smem:[#allocation2 + $0x50]]  ;;  %s4696_s12 = sld [smem:[#allocation2 + $0x45]] }
  0xde   :  { %5661 = vst [vmem:[#allocation98_spill] sm:$0xff] %v4131_v30  ;;  %5662 = vst [vmem:[#allocation99_spill] sm:$0xff] %v4134_v26  ;;  %v4157_v30 = vmul.f32 %v3987_v31, %v969_v46  ;;  %v4162_v26 = vmul.f32 %v4029_v51, %v1002_v53  ;;  %v4177_v46 = vmul.f32 %v4139_v25, %v1799_v52  ;;  %v1047_v60 = vstv %s4147_s15  ;;  %s4839_s15 = sld [smem:[#allocation2 + $0xa8]] }
  0xdf   :  { %5663 = vst [vmem:[#allocation100_spill] sm:$0xff] %v4154_v28  ;;  %5666 = vst [vmem:[#allocation103_spill] sm:$0xff] %v4174_v56  ;;  %v4180_v53 = vmul.f32 %v4145_v41, %v1799_v52  ;;  %v4190_v48 = vmul.f32 %v3945_v12, %v942_v0  ;;  %v948_v28 = vstv %s4106_s7  ;;  %s4589_s7 = sld [smem:[#allocation2 + $0xd7]] }
  0xe0   :  { %5664 = vst [vmem:[#allocation101_spill] sm:$0xff] %v4157_v30  ;;  %5665 = vst [vmem:[#allocation102_spill] sm:$0xff] %v4162_v26  ;;  %v461_v26 = vadd.f32 %v3453_v47, %v3906_v29  ;;  %v5669_v30 = vld [vmem:[#allocation14_spill] sm:$0xff]  ;;  %v4196_v52 = vpop.permute.xlu1 %624  ;;  %v4201_v47 = vmul.f32 %v3950_v54, %v975_v39  ;;  %v4207_v29 = vmul.f32 %v4003_v24, %v1041_v11  ;;  %1360 = vrot.lane.b32.xlu1 %v3592_v7, %s5558_s4 }
  0xe1   :  { %5667 = vst [vmem:[#allocation104_spill] sm:$0xff] %v4177_v46  ;;  %5668 = vst [vmem:[#allocation105_spill] sm:$0xff] %v4180_v53  ;;  %v460_v33 = vadd.f32 %v5669_v30, %v3838_v2  ;;  %v4198_v56 = vpop.permute.xlu0 %622  ;;  %v4204_v2 = vmul.f32 %v3965_v62, %v1008_v32  ;;  %v4210_v30 = vmul.f32 %v3922_v58, %v909_v14  ;;  %v1813_v53 = vstv %s4104_s30  ;;  %s4583_s30 = sld [smem:[#allocation2 + $0xaa]] }
  0xe2   :  { %5670 = vst [vmem:[#allocation14_spill] sm:$0xff] %v4187_v9  ;;  %5671 = vst [vmem:[#allocation106_spill] sm:$0xff] %v4190_v48  ;;  %v4215_v48 = vmul.f32 %v3970_v63, %v942_v0  ;;  %v915_v46 = vstv %s4090_s22  ;;  %1358 = vrot.lane.b32.xlu0 %v3605_v15, %s5558_s4  ;;  %v4229_v14 = vmul.f32 %v3987_v31, %v975_v39  ;;  %v981_v0 = vstv %s4123_s24  ;;  %s4581_s22 = sld [smem:[#allocation2 + $0x7d]]  ;;  %s4591_s24 = sld [smem:[#allocation2 + $0x2c]] }
  0xe3   :  { %5672 = vst [vmem:[#allocation107_spill] sm:$0xff] %v4201_v47  ;;  %5673 = vst [vmem:[#allocation108_spill] sm:$0xff] %v4204_v2  ;;  %v1014_v2 = vstv %s4125_s6  ;;  %v5679_v47 = vld [vmem:[#allocation15_spill] sm:$0xff]  ;;  %v4241_v7 = vmul.f32 %v4047_v40, %v1041_v11  ;;  %v4261_v11 = vmul.f32 %v3945_v12, %v948_v28  ;;  %s4598_s6 = sld [smem:[#allocation2 + $0x59]] }
  0xe4   :  { %5674 = vst [vmem:[#allocation109_spill] sm:$0xff] %v4207_v29  ;;  %5675 = vst [vmem:[#allocation110_spill] sm:$0xff] %v4210_v30  ;;  %v4232_v29 = vmul.f32 %v4029_v51, %v1008_v32  ;;  %v5680_v30 = vld [vmem:[#allocation16_spill] sm:$0xff]  ;;  %v4244_v15 = vpop.permute.xlu1 %638  ;;  %v4249_v32 = vmul.f32 %v4139_v25, %v1813_v53 }
  0xe5   :  { %5676 = vst [vmem:[#allocation111_spill] sm:$0xff] %v4215_v48  ;;  %5677 = vst [vmem:[#allocation112_spill] sm:$0xff] %v4229_v14  ;;  %v475_v48 = vadd.f32 %v5679_v47, %v3902_v61  ;;  %v474_v9 = vadd.f32 %v5680_v30, %v3834_v3  ;;  %v4246_v39 = vpop.permute.xlu0 %636  ;;  %v4255_v61 = vmul.f32 %v3917_v35, %v915_v46  ;;  %v921_v14 = vstv %s4192_s11  ;;  %s4620_s11 = sld [smem:[#allocation2 + $0x6]] }
  0xe6   :  { %5678 = vst [vmem:[#allocation113_spill] sm:$0xff] %v4232_v29  ;;  %5681 = vst [vmem:[#allocation15_spill] sm:$0xff] %v4241_v7  ;;  %v4252_v29 = vmul.f32 %v4145_v41, %v1813_v53  ;;  %v4258_v3 = vmul.f32 %v3922_v58, %v915_v46  ;;  %v4264_v47 = vmul.f32 %v3950_v54, %v981_v0  ;;  %v1827_v7 = vstv %s4167_s3  ;;  %v5689_v53 = vld [vmem:[#allocation19_spill] sm:$0xff]  ;;  %s4618_s3 = sld [smem:[#allocation2 + $0xb3]] }
  0xe7   :  { %5682 = vst [vmem:[#allocation16_spill] sm:$0xff] %v4249_v32  ;;  %5684 = vst [vmem:[#allocation115_spill] sm:$0xff] %v4255_v61  ;;  %v4267_v30 = vmul.f32 %v3965_v62, %v1014_v2  ;;  %1374 = vrot.lane.b32.xlu1 %v5689_v53, %s5558_s4  ;;  %v4275_v46 = vmul.f32 %v4003_v24, %v1047_v60  ;;  %v954_v61 = vstv %s4194_s21  ;;  %s4626_s21 = sld [smem:[#allocation2 + $0xf]] }
  0xe8   :  { %5683 = vst [vmem:[#allocation114_spill] sm:$0xff] %v4252_v29  ;;  %5685 = vst [vmem:[#allocation116_spill] sm:$0xff] %v4258_v3  ;;  %v5690_v29 = vld [vmem:[#allocation20_spill] sm:$0xff]  ;;  %v5695_v3 = vld [vmem:[#allocation18_spill] sm:$0xff] }
  0xe9   :  { %5686 = vst [vmem:[#allocation117_spill] sm:$0xff] %v4261_v11  ;;  %5687 = vst [vmem:[#allocation118_spill] sm:$0xff] %v4264_v47  ;;  %1372 = vrot.lane.b32.xlu0 %v5690_v29, %s5558_s4  ;;  %v4278_v11 = vmul.f32 %v3970_v63, %v948_v28  ;;  %v4281_v47 = vmul.f32 %v3987_v31, %v981_v0  ;;  %v488_v53 = vadd.f32 %v5695_v3, %v3995_v16  ;;  %v4289_v29 = vpop.permute.xlu1 %652  ;;  %v4291_v37 = vpop.permute.xlu0 %650 }
  0xea   :  { %5688 = vst [vmem:[#allocation119_spill] sm:$0xff] %v4267_v30  ;;  %5691 = vst [vmem:[#allocation19_spill] sm:$0xff] %v4275_v46  ;;  %v5694_v30 = vld [vmem:[#allocation17_spill] sm:$0xff]  ;;  %v4294_v46 = vmul.f32 %v4029_v51, %v1014_v2  ;;  %v4297_v28 = vmul.f32 %v4047_v40, %v1047_v60  ;;  %v4300_v0 = vmul.f32 %v4139_v25, %v1827_v7  ;;  %v1020_v3 = vstv %s4220_s16  ;;  %v5701_v2 = vld [vmem:[#allocation22_spill] sm:$0xff]  ;;  %s4633_s16 = sld [smem:[#allocation2 + $0x21]] }
  0xeb   :  { %5692 = vst [vmem:[#allocation20_spill] sm:$0xff] %v4278_v11  ;;  %5693 = vst [vmem:[#allocation120_spill] sm:$0xff] %v4281_v47  ;;  %v489_v32 = vadd.f32 %v5694_v30, %v3991_v57  ;;  %v987_v47 = vstv %s4212_s13  ;;  %v5698_v57 = vld [vmem:[#allocation48_spill] sm:$0xff]  ;;  %v5699_v11 = vld [vmem:[#allocation49_spill] sm:$0xff]  ;;  %1388 = vrot.lane.b32.xlu1 %v5700_v50, %s5558_s4  ;;  %v4312_v60 = vmul.f32 %v4145_v41, %v1827_v7  ;;  %s4628_s13 = sld [smem:[#allocation2 + $0x18]] }
  0xec   :  { %5696 = vst [vmem:[#allocation17_spill] sm:$0xff] %v4294_v46  ;;  %5697 = vst [vmem:[#allocation18_spill] sm:$0xff] %v4297_v28  ;;  %v531_v30 = vadd.f32 %v5698_v57, %v461_v26  ;;  %v530_v16 = vadd.f32 %v5699_v11, %v460_v33  ;;  %v4315_v28 = vmul.f32 %v3917_v35, %v921_v14  ;;  %v5703_v26 = vld [vmem:[#allocation24_spill] sm:$0xff]  ;;  %v5704_v11 = vld [vmem:[#allocation25_spill] sm:$0xff] }
  0xed   :  { %1386 = vrot.lane.b32.xlu0 %v5701_v2, %s5558_s4  ;;  %5702 = vst [vmem:[#allocation48_spill] sm:$0xff] %v4312_v60  ;;  %v4318_v40 = vmul.f32 %v3945_v12, %v954_v61  ;;  %v503_v33 = vadd.f32 %v5703_v26, %v4068_v1  ;;  %v502_v57 = vadd.f32 %v5704_v11, %v4072_v19  ;;  %v667_v2 = vpop.permute.xlu1 %666  ;;  %v665_v46 = vpop.permute.xlu0 %664  ;;  %v5705_v12 = vstv %s4222_s18  ;;  %v5712_v11 = vld [vmem:[#allocation26_spill] sm:$0xff] }
  0xee   :  { %v601_v50 = vadd.f32 %v4078_v5, %v531_v30  ;;  %v600_v34 = vadd.f32 %v4080_v44, %v530_v16  ;;  %v4327_v7 = vmul.f32 %v3950_v54, %v987_v47  ;;  %v4330_v35 = vmul.f32 %v3965_v62, %v1020_v3  ;;  %v5706_v16 = vld [vmem:[#allocation37_spill] sm:$0xff]  ;;  %v5707_v54 = vld [vmem:[#allocation38_spill] sm:$0xff] }
  0xef   :  { %v4335_v60 = vmul.f32 %v4003_v24, %v5705_v12  ;;  %v4338_v1 = vmul.f32 %v3922_v58, %v921_v14  ;;  %v545_v19 = vadd.f32 %v3802_v8, %v475_v48  ;;  %v544_v5 = vadd.f32 %v3804_v49, %v474_v9  ;;  %1402 = vrot.lane.b32.xlu1 %v5706_v16, %s5558_s4  ;;  %v5709_v48 = vld [vmem:[#allocation28_spill] sm:$0xff] }
  0xf0   :  { %v671_v44 = vadd.f32 %v667_v2, %v601_v50  ;;  %v670_v30 = vadd.f32 %v665_v46, %v600_v34  ;;  %v4347_v62 = vmul.f32 %v3970_v63, %v954_v61  ;;  %v4350_v24 = vmul.f32 %v3987_v31, %v987_v47  ;;  %v5708_v34 = vld [vmem:[#allocation23_spill] sm:$0xff]  ;;  %v5711_v63 = vld [vmem:[#allocation36_spill] sm:$0xff] }
  0xf1   :  { %1400 = vrot.lane.b32.xlu0 %v5707_v54, %s5558_s4  ;;  %v4353_v58 = vmul.f32 %v4029_v51, %v1020_v3  ;;  %v615_v8 = vadd.f32 %v4149_v27, %v545_v19  ;;  %v614_v49 = vadd.f32 %v4151_v17, %v544_v5  ;;  %v5710_v46 = vld [vmem:[#allocation35_spill] sm:$0xff]  ;;  %v516_v61 = vadd.f32 %v5711_v63, %v4114_v21  ;;  %v681_v51 = vpop.permute.xlu1 %680  ;;  %v679_v3 = vpop.permute.xlu0 %678  ;;  %v5719_v54 = vld [vmem:[#allocation44_spill] sm:$0xff]  ;;  %v5723_v63 = vld [vmem:[#allocation45_spill] sm:$0xff] }
  0xf2   :  { %v736_v9 = vadd.f32 %v5708_v34, %v671_v44  ;;  %v735_v14 = vadd.f32 %v5709_v48, %v670_v30  ;;  %v517_v26 = vadd.f32 %v5710_v46, %v4110_v36  ;;  %v559_v31 = vadd.f32 %v3863_v4, %v489_v32  ;;  %v5713_v50 = vld [vmem:[#allocation31_spill] sm:$0xff]  ;;  %v5715_v4 = vld [vmem:[#allocation52_spill] sm:$0xff]  ;;  %v5720_v34 = vld [vmem:[#allocation29_spill] sm:$0xff] }
  0xf3   :  { %v558_v47 = vadd.f32 %v3865_v23, %v488_v53  ;;  %v685_v2 = vadd.f32 %v681_v51, %v615_v8  ;;  %v684_v12 = vadd.f32 %v679_v3, %v614_v49  ;;  %v573_v19 = vadd.f32 %v3926_v43, %v503_v33  ;;  %v5714_v21 = vld [vmem:[#allocation51_spill] sm:$0xff]  ;;  %v5717_v53 = vld [vmem:[#allocation32_spill] sm:$0xff]  ;;  %v5721_v48 = vld [vmem:[#allocation33_spill] sm:$0xff] }
  0xf4   :  { %v769_v27 = vadd.f32 %v5712_v11, %v736_v9  ;;  %v768_v17 = vadd.f32 %v5713_v50, %v735_v14  ;;  %v572_v5 = vadd.f32 %v3928_v13, %v502_v57  ;;  %v587_v36 = vadd.f32 %v4010_v42, %v517_v26  ;;  %1736 = vrot.lane.b32.xlu1 %v5714_v21, %s5558_s4  ;;  %v5716_v23 = vld [vmem:[#allocation27_spill] sm:$0xff]  ;;  %v5722_v46 = vld [vmem:[#allocation40_spill] sm:$0xff] }
  0xf5   :  { %1734 = vrot.lane.b32.xlu0 %v5715_v4, %s5558_s4  ;;  %v5718_v30 = vld [vmem:[#allocation39_spill] sm:$0xff]  ;;  %v741_v43 = vadd.f32 %v5719_v54, %v684_v12  ;;  %v586_v13 = vadd.f32 %v4012_v18, %v516_v61  ;;  %v629_v42 = vadd.f32 %v4196_v52, %v559_v31  ;;  %v628_v33 = vadd.f32 %v4198_v56, %v558_v47  ;;  %v695_v8 = vpop.permute.xlu1 %694  ;;  %v693_v49 = vpop.permute.xlu0 %692  ;;  %v5724_v56 = vld [vmem:[#allocation30_spill] sm:$0xff]  ;;  %v5726_v31 = vld [vmem:[#allocation41_spill] sm:$0xff] }
  0xf6   :  { %v802_v32 = vadd.f32 %v5716_v23, %v769_v27  ;;  %v801_v44 = vadd.f32 %v5717_v53, %v768_v17  ;;  %v742_v16 = vadd.f32 %v5718_v30, %v685_v2  ;;  %v643_v57 = vadd.f32 %v4244_v15, %v573_v19  ;;  %v5725_v15 = vld [vmem:[#allocation34_spill] sm:$0xff]  ;;  %v5728_v2 = vld [vmem:[#allocation53_spill] sm:$0xff]  ;;  %v5731_v23 = vld [vmem:[#allocation47_spill] sm:$0xff] }
  0xf7   :  { %v774_v51 = vadd.f32 %v5723_v63, %v741_v43  ;;  %v642_v3 = vadd.f32 %v4246_v39, %v572_v5  ;;  %v699_v11 = vadd.f32 %v695_v8, %v629_v42  ;;  %v698_v18 = vadd.f32 %v693_v49, %v628_v33  ;;  %v5727_v27 = vld [vmem:[#allocation46_spill] sm:$0xff]  ;;  %v5729_v19 = vld [vmem:[#allocation57_spill] sm:$0xff]  ;;  %v5736_v49 = vld [vmem:[#allocation55_spill] sm:$0xff] }
  0xf8   :  { %v835_v9 = vadd.f32 %v5720_v34, %v802_v32  ;;  %v834_v14 = vadd.f32 %v5721_v48, %v801_v44  ;;  %v775_v26 = vadd.f32 %v5722_v46, %v742_v16  ;;  %1750 = vrot.lane.b32.xlu1 %v3817_v55, %s5558_s4  ;;  %v657_v17 = vadd.f32 %v4289_v29, %v587_v36  ;;  %v5732_v30 = vld [vmem:[#allocation54_spill] sm:$0xff]  ;;  %v5733_v36 = vld [vmem:[#allocation43_spill] sm:$0xff] }
  0xf9   :  { %1748 = vrot.lane.b32.xlu0 %v3820_v10, %s5558_s4  ;;  %v807_v50 = vadd.f32 %v5727_v27, %v774_v51  ;;  %v656_v39 = vadd.f32 %v4291_v37, %v586_v13  ;;  %v748_v12 = vadd.f32 %v5728_v2, %v699_v11  ;;  %v747_v55 = vadd.f32 %v5729_v19, %v698_v18  ;;  %v709_v5 = vpop.permute.xlu1 %708  ;;  %v707_v21 = vpop.permute.xlu0 %706  ;;  %v5730_v10 = vld [vmem:[#allocation42_spill] sm:$0xff]  ;;  %v5740_v63 = vld [vmem:[#allocation67_spill] sm:$0xff]  ;;  %v5741_v18 = vld [vmem:[#allocation56_spill] sm:$0xff] }
  0xfa   :  { %v868_v52 = vadd.f32 %v5724_v56, %v835_v9  ;;  %v867_v61 = vadd.f32 %v5725_v15, %v834_v14  ;;  %v808_v47 = vadd.f32 %v5726_v31, %v775_v26  ;;  %v713_v53 = vadd.f32 %v709_v5, %v643_v57  ;;  %v5734_v13 = vld [vmem:[#allocation50_spill] sm:$0xff]  ;;  %v5742_v56 = vld [vmem:[#allocation60_spill] sm:$0xff]  ;;  %v5743_v15 = vld [vmem:[#allocation81_spill] sm:$0xff] }
  0xfb   :  { %v840_v32 = vadd.f32 %v5731_v23, %v807_v50  ;;  %v712_v44 = vadd.f32 %v707_v21, %v642_v3  ;;  %v781_v16 = vadd.f32 %v5732_v30, %v748_v12  ;;  %v780_v54 = vadd.f32 %v3796_v6, %v747_v55  ;;  %v5735_v57 = vld [vmem:[#allocation66_spill] sm:$0xff]  ;;  %v5737_v6 = vld [vmem:[#allocation59_spill] sm:$0xff]  ;;  %v5747_v50 = vld [vmem:[#allocation68_spill] sm:$0xff] }
  0xfc   :  { %v841_v4 = vadd.f32 %v5730_v10, %v808_v47  ;;  %1764 = vrot.lane.b32.xlu1 %v3891_v22, %s5558_s4  ;;  %v901_v37 = vadd.f32 %v4021_v45, %v868_v52  ;;  %v1841_v29 = vstv %s4374_s20  ;;  %v754_v33 = vadd.f32 %v3823_v38, %v713_v53  ;;  %v5739_v45 = vld [vmem:[#allocation62_spill] sm:$0xff]  ;;  %v5745_v47 = vld [vmem:[#allocation84_spill] sm:$0xff]  ;;  %v5746_v27 = vld [vmem:[#allocation63_spill] sm:$0xff]  ;;  %s4641_s20 = sld [smem:[#allocation2 + $0xe0]] }
  0xfd   :  { %1762 = vrot.lane.b32.xlu0 %v3894_v59, %s5558_s4  ;;  %v873_v42 = vadd.f32 %v5734_v13, %v840_v32  ;;  %v753_v8 = vadd.f32 %v5735_v57, %v712_v44  ;;  %v814_v34 = vadd.f32 %v5736_v49, %v781_v16  ;;  %v813_v9 = vadd.f32 %v5737_v6, %v780_v54  ;;  %v723_v48 = vpop.permute.xlu1 %722  ;;  %v721_v22 = vpop.permute.xlu0 %720  ;;  %v5738_v59 = vld [vmem:[#allocation83_spill] sm:$0xff]  ;;  %v5744_v31 = vld [vmem:[#allocation82_spill] sm:$0xff]  ;;  %v5751_v21 = vld [vmem:[#allocation61_spill] sm:$0xff] }
  0xfe   :  { %v874_v43 = vadd.f32 %v5733_v36, %v841_v4  ;;  %v934_v14 = vadd.f32 %v4036_v20, %v901_v37  ;;  %v900_v46 = vadd.f32 %v5738_v59, %v867_v61  ;;  %v787_v26 = vadd.f32 %v5739_v45, %v754_v33  ;;  %v5748_v12 = vld [vmem:[#allocation71_spill] sm:$0xff]  ;;  %v5750_v55 = vld [vmem:[#allocation58_spill] sm:$0xff]  ;;  %v5752_v32 = vld [vmem:[#allocation88_spill] sm:$0xff] }
  0xff   :  { %v786_v51 = vadd.f32 %v5740_v63, %v753_v8  ;;  %v727_v3 = vadd.f32 %v723_v48, %v657_v17  ;;  %v726_v11 = vadd.f32 %v721_v22, %v656_v39  ;;  %v847_v38 = vadd.f32 %v5741_v18, %v814_v34  ;;  %v5749_v17 = vld [vmem:[#allocation76_spill] sm:$0xff]  ;;  %v5754_v54 = vld [vmem:[#allocation69_spill] sm:$0xff]  ;;  %v5761_v22 = vld [vmem:[#allocation94_spill] sm:$0xff] }
 0x100   :  { %v846_v52 = vadd.f32 %v5742_v56, %v813_v9  ;;  %1778 = vrot.lane.b32.xlu1 %v5743_v15, %s5558_s4  ;;  %v967_v20 = vadd.f32 %v5745_v47, %v934_v14  ;;  %v820_v61 = vadd.f32 %v5746_v27, %v787_v26  ;;  %v933_v53 = vadd.f32 %v5752_v32, %v900_v46  ;;  %v5753_v30 = vld [vmem:[#allocation64_spill] sm:$0xff]  ;;  %v5756_v33 = vld [vmem:[#allocation77_spill] sm:$0xff]  ;;  %v5763_v45 = vld [vmem:[#allocation70_spill] sm:$0xff] }
 0x101   :  { %1776 = vrot.lane.b32.xlu0 %v5744_v31, %s5558_s4  ;;  %v819_v2 = vadd.f32 %v5747_v50, %v786_v51  ;;  %v760_v19 = vadd.f32 %v5748_v12, %v727_v3  ;;  %v759_v39 = vadd.f32 %v5749_v17, %v726_v11  ;;  %v880_v5 = vadd.f32 %v5750_v55, %v847_v38  ;;  %v4434_v4 = vpop.permute.xlu1 %1066  ;;  %v4436_v23 = vpop.permute.xlu0 %1064  ;;  %v5755_v36 = vld [vmem:[#allocation72_spill] sm:$0xff]  ;;  %v5757_v8 = vld [vmem:[#allocation85_spill] sm:$0xff]  ;;  %v5765_v3 = vld [vmem:[#allocation78_spill] sm:$0xff] }
 0x102   :  { %v879_v10 = vadd.f32 %v5751_v21, %v846_v52  ;;  %v4440_v44 = vmul.f32 %v4139_v25, %v1841_v29  ;;  %v853_v16 = vadd.f32 %v5753_v30, %v820_v61  ;;  %v1000_v49 = vadd.f32 %v5757_v8, %v967_v20  ;;  %v5758_v34 = vld [vmem:[#allocation89_spill] sm:$0xff]  ;;  %v5759_v9 = vld [vmem:[#allocation92_spill] sm:$0xff]  ;;  %v5766_v18 = vld [vmem:[#allocation90_spill] sm:$0xff] }
 0x103   :  { %v852_v37 = vadd.f32 %v5754_v54, %v819_v2  ;;  %v793_v13 = vadd.f32 %v5755_v36, %v760_v19  ;;  %v792_v57 = vadd.f32 %v5756_v33, %v759_v39  ;;  %v966_v6 = vadd.f32 %v5758_v34, %v933_v53  ;;  %v5760_v48 = vld [vmem:[#allocation93_spill] sm:$0xff]  ;;  %v5767_v52 = vld [vmem:[#allocation95_spill] sm:$0xff]  ;;  %v5771_v12 = vld [vmem:[#allocation14_spill] sm:$0xff] }
 0x104   :  { %1792 = vrot.lane.b32.xlu1 %v5759_v9, %s5558_s4  ;;  %v907_v14 = vadd.f32 %v5761_v22, %v874_v43  ;;  %v5762_v59 = vld [vmem:[#allocation65_spill] sm:$0xff]  ;;  %v5768_v47 = vld [vmem:[#allocation99_spill] sm:$0xff]  ;;  %v4461_v27 = vmul.f32 %v4145_v41, %v1841_v29  ;;  %v5769_v43 = vld [vmem:[#allocation74_spill] sm:$0xff]  ;;  %v913_v19 = vadd.f32 %v5771_v12, %v880_v5 }
 0x105   :  { %1790 = vrot.lane.b32.xlu0 %v5760_v48, %s5558_s4  ;;  %v886_v46 = vadd.f32 %v5762_v59, %v853_v16  ;;  %v885_v26 = vadd.f32 %v5763_v45, %v852_v37  ;;  %v5764_v63 = vld [vmem:[#allocation73_spill] sm:$0xff]  ;;  %v825_v11 = vadd.f32 %v5765_v3, %v792_v57  ;;  %v999_v38 = vadd.f32 %v5766_v18, %v966_v6  ;;  %v1081_v56 = vpop.permute.xlu1 %1080  ;;  %v1079_v31 = vpop.permute.xlu0 %1078  ;;  %v5770_v50 = vld [vmem:[#allocation79_spill] sm:$0xff]  ;;  %v5772_v17 = vld [vmem:[#allocation110_spill] sm:$0xff] }
 0x106   :  { %v826_v51 = vadd.f32 %v5764_v63, %v793_v13  ;;  %v940_v15 = vadd.f32 %v5767_v52, %v907_v14  ;;  %v906_v20 = vadd.f32 %v5768_v47, %v873_v42  ;;  %v912_v39 = vadd.f32 %v5772_v17, %v879_v10  ;;  %v5773_v55 = vld [vmem:[#allocation87_spill] sm:$0xff]  ;;  %v5774_v32 = vld [vmem:[#allocation96_spill] sm:$0xff]  ;;  %v5777_v29 = vld [vmem:[#allocation105_spill] sm:$0xff] }
 0x107   :  { %v858_v2 = vadd.f32 %v5770_v50, %v825_v11  ;;  %v4468_v21 = vadd.f32 %v5773_v55, %v1000_v49  ;;  %v5775_v30 = vld [vmem:[#allocation100_spill] sm:$0xff]  ;;  %v5778_v54 = vld [vmem:[#allocation75_spill] sm:$0xff]  ;;  %v5780_v10 = vld [vmem:[#allocation106_spill] sm:$0xff] }
 0x108   :  { %v859_v61 = vadd.f32 %v5769_v43, %v826_v51  ;;  %v973_v53 = vadd.f32 %v5774_v32, %v940_v15  ;;  %v939_v16 = vadd.f32 %v5775_v30, %v906_v20  ;;  %v5776_v42 = vld [vmem:[#allocation104_spill] sm:$0xff]  ;;  %v946_v13 = vadd.f32 %v5780_v10, %v913_v19  ;;  %v5781_v33 = vld [vmem:[#allocation111_spill] sm:$0xff]  ;;  %v5783_v34 = vld [vmem:[#allocation97_spill] sm:$0xff] }
 0x109   :  { %1806 = vrot.lane.b32.xlu1 %v5776_v42, %s5558_s4  ;;  %1804 = vrot.lane.b32.xlu0 %v5777_v29, %s5558_s4  ;;  %v5779_v5 = vld [vmem:[#allocation80_spill] sm:$0xff]  ;;  %v945_v57 = vadd.f32 %v5781_v33, %v912_v39  ;;  %v5782_v8 = vld [vmem:[#allocation91_spill] sm:$0xff]  ;;  %v5784_v9 = vld [vmem:[#allocation101_spill] sm:$0xff]  ;;  %v1095_v22 = vpop.permute.xlu1 %1094  ;;  %v1093_v14 = vpop.permute.xlu0 %1092 }
 0x10a   :  { %v892_v37 = vadd.f32 %v5778_v54, %v859_v61  ;;  %v891_v36 = vadd.f32 %v5779_v5, %v858_v2  ;;  %v1032_v49 = vadd.f32 %v5782_v8, %v999_v38  ;;  %v1006_v6 = vadd.f32 %v5783_v34, %v973_v53  ;;  %v5785_v59 = vld [vmem:[#allocation115_spill] sm:$0xff]  ;;  %v5787_v3 = vld [vmem:[#allocation112_spill] sm:$0xff]  ;;  %v5789_v47 = vld [vmem:[#allocation98_spill] sm:$0xff] }
 0x10b   :  { %v972_v48 = vadd.f32 %v5784_v9, %v939_v16  ;;  %v919_v45 = vadd.f32 %v5785_v59, %v886_v46  ;;  %v5786_v63 = vld [vmem:[#allocation107_spill] sm:$0xff]  ;;  %v978_v11 = vadd.f32 %v5787_v3, %v945_v57  ;;  %v5788_v18 = vld [vmem:[#allocation116_spill] sm:$0xff]  ;;  %v5790_v43 = vld [vmem:[#allocation102_spill] sm:$0xff] }
 0x10c   :  { %v979_v51 = vadd.f32 %v5786_v63, %v946_v13  ;;  %v918_v52 = vadd.f32 %v5788_v18, %v885_v26  ;;  %v925_v15 = vadd.f32 %v4315_v28, %v892_v37  ;;  %v1039_v20 = vadd.f32 %v5789_v47, %v1006_v6  ;;  %v5791_v61 = vld [vmem:[#allocation16_spill] sm:$0xff]  ;;  %v5792_v50 = vld [vmem:[#allocation114_spill] sm:$0xff]  ;;  %v5793_v2 = vld [vmem:[#allocation117_spill] sm:$0xff] }
 0x10d   :  { %v1005_v38 = vadd.f32 %v5790_v43, %v972_v48  ;;  %1820 = vrot.lane.b32.xlu1 %v5791_v61, %s5558_s4  ;;  %1818 = vrot.lane.b32.xlu0 %v5792_v50, %s5558_s4  ;;  %v952_v46 = vadd.f32 %v5793_v2, %v919_v45  ;;  %v5794_v12 = vld [vmem:[#allocation108_spill] sm:$0xff]  ;;  %v5795_v17 = vld [vmem:[#allocation113_spill] sm:$0xff]  ;;  %v5797_v53 = vld [vmem:[#allocation103_spill] sm:$0xff]  ;;  %v1109_v16 = vpop.permute.xlu1 %1108  ;;  %v1107_v54 = vpop.permute.xlu0 %1106  ;;  %v924_v37 = vadd.f32 %v4338_v1, %v891_v36  ;;  %v1855_v36 = vstv %s4476_s29  ;;  %s4905_s29 = sld [smem:[#allocation2 + $0x10]] }
 0x10e   :  { %v1012_v19 = vadd.f32 %v5794_v12, %v979_v51  ;;  %v1011_v26 = vadd.f32 %v5795_v17, %v978_v11  ;;  %v5796_v39 = vld [vmem:[#allocation20_spill] sm:$0xff]  ;;  %v958_v55 = vadd.f32 %v4318_v40, %v925_v15  ;;  %v1085_v32 = vadd.f32 %v1081_v56, %v1039_v20  ;;  %v5798_v42 = vld [vmem:[#allocation118_spill] sm:$0xff]  ;;  %v5799_v5 = vld [vmem:[#allocation109_spill] sm:$0xff] }
 0x10f   :  { %v951_v28 = vadd.f32 %v5796_v39, %v918_v52  ;;  %v1038_v30 = vadd.f32 %v5797_v53, %v1005_v38  ;;  %v985_v29 = vadd.f32 %v5798_v42, %v952_v46  ;;  %v5800_v13 = vld [vmem:[#allocation15_spill] sm:$0xff]  ;;  %v5801_v57 = vld [vmem:[#allocation120_spill] sm:$0xff]  ;;  %v957_v1 = vadd.f32 %v4347_v62, %v924_v37  ;;  %v5804_v45 = vld [vmem:[#allocation17_spill] sm:$0xff] }
 0x110   :  { %v1045_v10 = vadd.f32 %v5799_v5, %v1012_v19  ;;  %v1044_v33 = vadd.f32 %v5800_v13, %v1011_v26  ;;  %v991_v34 = vadd.f32 %v4327_v7, %v958_v55  ;;  %v5802_v6 = vld [vmem:[#allocation119_spill] sm:$0xff]  ;;  %v5803_v9 = vld [vmem:[#allocation48_spill] sm:$0xff]  ;;  %v5806_v11 = vstv %s4222_s18  ;;  %v5808_v62 = vld [vmem:[#allocation18_spill] sm:$0xff]  ;;  %s4635_s18 = sld [smem:[#allocation2 + $0x2a]] }
 0x111   :  { %v984_v8 = vadd.f32 %v5801_v57, %v951_v28  ;;  %v1084_v40 = vadd.f32 %v1079_v31, %v1038_v30  ;;  %v1018_v56 = vadd.f32 %v5802_v6, %v985_v29  ;;  %1834 = vrot.lane.b32.xlu1 %v4300_v0, %s5558_s4  ;;  %1832 = vrot.lane.b32.xlu0 %v5803_v9, %s5558_s4  ;;  %v5805_v7 = vld [vmem:[#allocation19_spill] sm:$0xff]  ;;  %v1123_v3 = vpop.permute.xlu1 %1122  ;;  %v5807_v0 = vld [vmem:[#allocation86_spill] sm:$0xff]  ;;  %v1121_v52 = vpop.permute.xlu0 %1120  ;;  %v1869_v38 = vstv %s4497_s10  ;;  %s4919_s10 = sld [smem:[#allocation2 + $0x19]] }
 0x112   :  { %v1099_v48 = vadd.f32 %v1095_v22, %v1045_v10  ;;  %v1098_v59 = vadd.f32 %v1093_v14, %v1044_v33  ;;  %v1024_v51 = vadd.f32 %v4330_v35, %v991_v34  ;;  %v1054_v18 = vmul.f32 %v5807_v0, %v5806_v11  ;;  %v4604_v57 = vld [vmem:[%s5531_s0 + $0x101] sm:$0x7f] }
 0x113   :  { %v1017_v63 = vadd.f32 %v5804_v45, %v984_v8  ;;  %v1051_v31 = vadd.f32 %v5805_v7, %v1018_v56  ;;  %v990_v15 = vadd.f32 %v4350_v24, %v957_v1  ;;  %v1857_v14 = vmul.f32 %v4139_v25, %v1855_v36  ;;  %v4616_v6 = vld [vmem:[%s5531_s0 + $0x61] sm:$0x7f] }
 0x114   :  { %v1057_v22 = vadd.f32 %v4335_v60, %v1024_v51  ;;  %v1856_v43 = vmul.f32 %v4145_v41, %v1855_v36  ;;  %v1071_v24 = vadd.f32 %v4434_v4, %v4468_v21  ;;  %v1070_v61 = vadd.f32 %v4436_v23, %v1032_v49 }
 0x115   :  { %v1050_v47 = vadd.f32 %v5808_v62, %v1017_v63  ;;  %v1113_v20 = vadd.f32 %v1109_v16, %v1051_v31  ;;  %v1023_v35 = vadd.f32 %v4353_v58, %v990_v15  ;;  %1848 = vrot.lane.b32.xlu1 %v4440_v44, %s5558_s4  ;;  %1846 = vrot.lane.b32.xlu0 %v4461_v27, %s5558_s4  ;;  %v4544_v58 = vld [vmem:[%s5531_s0 + $0xe1] sm:$0x7f]  ;;  %v1137_v4 = vpop.permute.xlu1 %1136  ;;  %v1135_v21 = vpop.permute.xlu0 %1134  ;;  %v1883_v19 = vstv %s4519_s25  ;;  %s4921_s25 = sld [smem:[#allocation2 + $0x22]] }
 0x116   :  { %v4539_v50 = vadd.f32 %v1123_v3, %v1057_v22  ;;  %v4549_v44 = vld [vmem:[%s5531_s0 + $0x41] sm:$0x7f]  ;;  %v4553_v23 = vadd.f32 %v1137_v4, %v1071_v24  ;;  %v4555_v49 = vadd.f32 %v1135_v21, %v1070_v61  ;;  %v1871_v46 = vmul.f32 %v4544_v58, %v1869_v38 }
 0x117   :  { %v1112_v60 = vadd.f32 %v1107_v54, %v1050_v47  ;;  %v1056_v27 = vadd.f32 %v1054_v18, %v1023_v35  ;;  %v1870_v12 = vmul.f32 %v4549_v44, %v1869_v38  ;;  %v1885_v55 = vmul.f32 %v4544_v58, %v1883_v19  ;;  %v4653_v18 = vld [vmem:[%s5531_s0 + $0x121] sm:$0x7f] }
 0x118   :  { %v1884_v53 = vmul.f32 %v4549_v44, %v1883_v19  ;;  %v1897_v30 = vstv %s4551_s26  ;;  %v1911_v5 = vstv %s4564_s8  ;;  %v1925_v33 = vstv %s4566_s19  ;;  %v4670_v22 = vld [vmem:[%s5531_s0 + $0x81] sm:$0x7f]  ;;  %s4708_s26 = sld [smem:[#allocation2 + $0x60]]  ;;  %s4720_s8 = sld [smem:[#allocation2 + $0x4e]] }
 0x119   :  { %v4557_v2 = vadd.f32 %v1121_v52, %v1056_v27  ;;  %1862 = vrot.lane.b32.xlu1 %v1857_v14, %s5558_s4  ;;  %1860 = vrot.lane.b32.xlu0 %v1856_v43, %s5558_s4  ;;  %v1151_v17 = vpop.permute.xlu1 %1150  ;;  %v1149_v26 = vpop.permute.xlu0 %1148  ;;  %v1899_v54 = vmul.f32 %v4544_v58, %v1897_v30  ;;  %v1898_v37 = vmul.f32 %v4549_v44, %v1897_v30  ;;  %v1953_v36 = vstv %s4579_s2  ;;  %s4728_s19 = sld [smem:[#allocation2 + $0x57]] }
 0x11a   :  { %v4568_v39 = vadd.f32 %v1151_v17, %v1085_v32  ;;  %v4570_v28 = vadd.f32 %v1149_v26, %v1084_v40  ;;  %v1939_v40 = vstv %s4572_s14  ;;  %v1913_v56 = vmul.f32 %v4544_v58, %v1911_v5  ;;  %s4740_s14 = sld [smem:[#allocation2 + $0x69]] }
 0x11b   :  { %v1912_v9 = vmul.f32 %v4549_v44, %v1911_v5  ;;  %v1927_v1 = vmul.f32 %v4544_v58, %v1925_v33  ;;  %v1926_v63 = vmul.f32 %v4549_v44, %v1925_v33  ;;  %v1941_v51 = vmul.f32 %v4604_v57, %v1939_v40  ;;  %v4751_v33 = vld [vmem:[%s5531_s0 + $0xa1] sm:$0x7f] }
 0x11c   :  { %v1940_v7 = vmul.f32 %v4616_v6, %v1939_v40  ;;  %v1981_v31 = vstv %s4583_s30  ;;  %v1995_v0 = vstv %s4589_s7  ;;  %v2009_v52 = vstv %s4591_s24  ;;  %s4759_s30 = sld [smem:[#allocation2 + $0x72]]  ;;  %s4772_s7 = sld [smem:[#allocation2 + $0x7b]] }
 0x11d   :  { %1876 = vrot.lane.b32.xlu1 %v1871_v46, %s5558_s4  ;;  %1874 = vrot.lane.b32.xlu0 %v1870_v12, %s5558_s4  ;;  %v1165_v32 = vpop.permute.xlu1 %1164  ;;  %v1163_v16 = vpop.permute.xlu0 %1162  ;;  %v4659_v15 = vmul.f32 %v4604_v57, %v1953_v36  ;;  %v4662_v62 = vmul.f32 %v4616_v6, %v1953_v36  ;;  %v4679_v35 = vmul.f32 %v4616_v6, %v1981_v31  ;;  %v2023_v43 = vstv %s4598_s6  ;;  %s4774_s24 = sld [smem:[#allocation2 + $0x84]]  ;;  %s5128_s6 = sld [smem:[#allocation2 + $0x97]] }
 0x11e   :  { %v4585_v42 = vadd.f32 %v1165_v32, %v1099_v48  ;;  %v4587_v29 = vadd.f32 %v1163_v16, %v1098_v59  ;;  %v1967_v48 = vstv %s4581_s22  ;;  %v4685_v61 = vmul.f32 %v4604_v57, %v1995_v0  ;;  %s5004_s22 = sld [smem:[#allocation2 + $0x58]] }
 0x11f   :  { %v4665_v47 = vmul.f32 %v4604_v57, %v1967_v48  ;;  %v4673_v14 = vmul.f32 %v4616_v6, %v1967_v48  ;;  %v2037_v27 = vstv %s4606_s28  ;;  %v2051_v46 = vstv %s4618_s3  ;;  %s4801_s28 = sld [smem:[#allocation2 + $0x96]]  ;;  %s4841_s3 = sld [smem:[#allocation2 + $0xba]] }
 0x120   :  { %v4713_v12 = vmul.f32 %v4653_v18, %v2023_v43  ;;  %v1411_v19 = vstv %s4620_s11  ;;  %v4723_v17 = vmul.f32 %v4653_v18, %v2037_v27  ;;  %v1475_v26 = vstv %s4628_s13  ;;  %s4853_s11 = sld [smem:[#allocation2 + $0xb1]]  ;;  %s4867_s13 = sld [smem:[#allocation2 + $0xcc]] }
 0x121   :  { %1890 = vrot.lane.b32.xlu1 %v1885_v55, %s5558_s4  ;;  %1888 = vrot.lane.b32.xlu0 %v1884_v53, %s5558_s4  ;;  %v1179_v10 = vpop.permute.xlu1 %1178  ;;  %v1177_v13 = vpop.permute.xlu0 %1176  ;;  %v1507_v55 = vstv %s4633_s16  ;;  %v1539_v53 = vstv %s4635_s18  ;;  %v4731_v16 = vmul.f32 %v4670_v22, %v2037_v27  ;;  %v4754_v40 = vmul.f32 %v4751_v33, %v1411_v19  ;;  %s4881_s16 = sld [smem:[#allocation2 + $0x7]]  ;;  %s4893_s18 = sld [smem:[#allocation2 + $0xd5]] }
 0x122   :  { %v4608_v8 = vadd.f32 %v1179_v10, %v1113_v20  ;;  %v4610_v34 = vadd.f32 %v1177_v13, %v1112_v60  ;;  %v4676_v20 = vmul.f32 %v4604_v57, %v1981_v31  ;;  %v4688_v60 = vmul.f32 %v4616_v6, %v1995_v0 }
 0x123   :  { %v2065_v5 = vstv %s4641_s20  ;;  %v4797_v31 = vmul.f32 %v4549_v44, %v1475_v26  ;;  %v1449_v0 = vstv %s4694_s5  ;;  %v1423_v27 = vstv %s4708_s26  ;;  %s4895_s20 = sld [smem:[#allocation2 + $0xde]]  ;;  %s4966_s5 = sld [smem:[#allocation2 + $0x3d]] }
 0x124   :  { %v4785_v48 = vmul.f32 %v4653_v18, %v2065_v5 }
 0x125   :  { %1904 = vrot.lane.b32.xlu1 %v1899_v54, %s5558_s4  ;;  %1902 = vrot.lane.b32.xlu0 %v1898_v37, %s5558_s4  ;;  %v1193_v59 = vpop.permute.xlu1 %1192  ;;  %v1191_v45 = vpop.permute.xlu0 %1190  ;;  %v4734_v54 = vmul.f32 %v4653_v18, %v2051_v46  ;;  %v4737_v37 = vmul.f32 %v4670_v22, %v2051_v46  ;;  %v4820_v46 = vmul.f32 %v4670_v22, %v1539_v53 }
 0x126   :  { %v4644_v3 = vadd.f32 %v1193_v59, %v4539_v50  ;;  %v4647_v11 = vadd.f32 %v1191_v45, %v4557_v2  ;;  %v4691_v50 = vmul.f32 %v4653_v18, %v2009_v52  ;;  %v4705_v2 = vmul.f32 %v4670_v22, %v2009_v52 }
 0x127   :  { %v4788_v59 = vmul.f32 %v4670_v22, %v2065_v5  ;;  %v1417_v45 = vstv %s4682_s27  ;;  %v1481_v52 = vstv %s4696_s12  ;;  %v1455_v5 = vstv %s4740_s14  ;;  %s4964_s27 = sld [smem:[#allocation2 + $0x34]]  ;;  %s5092_s12 = sld [smem:[#allocation2 + $0x85]] }
 0x129   :  { %1918 = vrot.lane.b32.xlu1 %v1913_v56, %s5558_s4  ;;  %1916 = vrot.lane.b32.xlu0 %v1912_v9, %s5558_s4  ;;  %v1207_v38 = vpop.permute.xlu1 %1206  ;;  %v1205_v24 = vpop.permute.xlu0 %1204  ;;  %v4770_v9 = vmul.f32 %v4653_v18, %v1539_v53 }
 0x12a   :  { %v4699_v4 = vadd.f32 %v1207_v38, %v4553_v23  ;;  %v4702_v21 = vadd.f32 %v1205_v24, %v4555_v49  ;;  %v4716_v23 = vmul.f32 %v4670_v22, %v2023_v43  ;;  %v1443_v49 = vstv %s4626_s21  ;;  %s4865_s21 = sld [smem:[#allocation2 + $0xc3]] }
 0x12b   :  { %v4757_v56 = vmul.f32 %v4139_v25, %v1443_v49  ;;  %v4812_v24 = vmul.f32 %v4616_v6, %v1507_v55 }
 0x12d   :  { %1932 = vrot.lane.b32.xlu1 %v1927_v1, %s5558_s4  ;;  %1930 = vrot.lane.b32.xlu0 %v1926_v63, %s5558_s4  ;;  %v1221_v30 = vpop.permute.xlu1 %1220  ;;  %v1219_v32 = vpop.permute.xlu0 %1218  ;;  %v4779_v1 = vld [vmem:[%s5531_s0 + $0x1] sm:$0x7f] }
 0x12e   :  { %v4743_v10 = vadd.f32 %v1221_v30, %v4568_v39  ;;  %v4746_v13 = vadd.f32 %v1219_v32, %v4570_v28  ;;  %v4764_v39 = vmul.f32 %v4544_v58, %v1475_v26  ;;  %v4767_v28 = vmul.f32 %v4604_v57, %v1507_v55 }
 0x12f   :  { %v4782_v36 = vmul.f32 %v4779_v1, %v1411_v19  ;;  %v1513_v19 = vstv %s4720_s8  ;;  %v1545_v26 = vstv %s4728_s19  ;;  %v4844_v30 = vmul.f32 %v4549_v44, %v1481_v52  ;;  %s4987_s8 = sld [smem:[#allocation2 + $0x46]]  ;;  %s4989_s19 = sld [smem:[#allocation2 + $0x4f]] }
 0x130   :  { %v4847_v32 = vmul.f32 %v4751_v33, %v1423_v27 }
 0x131   :  { %1946 = vrot.lane.b32.xlu1 %v1941_v51, %s5558_s4  ;;  %1944 = vrot.lane.b32.xlu0 %v1940_v7, %s5558_s4  ;;  %v1235_v63 = vpop.permute.xlu1 %1234  ;;  %v1233_v51 = vpop.permute.xlu0 %1232  ;;  %v4794_v7 = vmul.f32 %v4145_v41, %v1443_v49  ;;  %v4830_v49 = vmul.f32 %v4139_v25, %v1449_v0 }
 0x132   :  { %v4806_v43 = vadd.f32 %v1235_v63, %v4585_v42  ;;  %v4809_v38 = vadd.f32 %v1233_v51, %v4587_v29  ;;  %v4823_v42 = vmul.f32 %v4751_v33, %v1417_v45  ;;  %v4827_v29 = vmul.f32 %v4779_v1, %v1417_v45 }
 0x133   :  { %v4851_v45 = vmul.f32 %v4779_v1, %v1423_v27  ;;  %v1519_v27 = vstv %s4772_s7 }
 0x135   :  { %1960 = vrot.lane.b32.xlu1 %v4659_v15, %s5558_s4  ;;  %1958 = vrot.lane.b32.xlu0 %v4662_v62, %s5558_s4  ;;  %v4833_v15 = vmul.f32 %v4544_v58, %v1481_v52  ;;  %v4837_v62 = vmul.f32 %v4145_v41, %v1449_v0  ;;  %v1249_v55 = vpop.permute.xlu1 %1248  ;;  %v1247_v53 = vpop.permute.xlu0 %1246  ;;  %5809 = vst [vmem:[#allocation49_spill] sm:$0xff] %v4851_v45  ;;  %v1487_v52 = vstv %s4759_s30  ;;  %s5006_s30 = sld [smem:[#allocation2 + $0x61]] }
 0x136   :  { %v4856_v63 = vadd.f32 %v1249_v55, %v4608_v8  ;;  %v4859_v51 = vadd.f32 %v1247_v53, %v4610_v34  ;;  %v4862_v0 = vmul.f32 %v4604_v57, %v1513_v19  ;;  %v4874_v8 = vmul.f32 %v4653_v18, %v1545_v26 }
 0x137   :  { %v4877_v34 = vmul.f32 %v4616_v6, %v1513_v19  ;;  %v1551_v55 = vstv %s4774_s24  ;;  %v4884_v53 = vmul.f32 %v4670_v22, %v1545_v26  ;;  %v4901_v45 = vmul.f32 %v4549_v44, %v1487_v52  ;;  %s5126_s24 = sld [smem:[#allocation2 + $0x8e]] }
 0x138   :  { %5810 = vst [vmem:[#allocation21_spill] sm:$0xff] %v4862_v0  ;;  %5811 = vst [vmem:[#allocation22_spill] sm:$0xff] %v4874_v8  ;;  %v1429_v0 = vstv %s4791_s1  ;;  %v1461_v26 = vstv %s4801_s28  ;;  %s5025_s1 = sld [smem:[#allocation2 + $0x6a]]  ;;  %s5027_s28 = sld [smem:[#allocation2 + $0x73]] }
 0x139   :  { %1974 = vrot.lane.b32.xlu1 %v4665_v47, %s5558_s4  ;;  %1972 = vrot.lane.b32.xlu0 %v4673_v14, %s5558_s4  ;;  %5812 = vst [vmem:[#allocation24_spill] sm:$0xff] %v4877_v34  ;;  %5813 = vst [vmem:[#allocation25_spill] sm:$0xff] %v4884_v53  ;;  %v4887_v47 = vmul.f32 %v4139_v25, %v1455_v5  ;;  %v4890_v14 = vmul.f32 %v4145_v41, %v1455_v5  ;;  %v1263_v19 = vpop.permute.xlu1 %1262  ;;  %v1261_v8 = vpop.permute.xlu0 %1260  ;;  %v1493_v53 = vstv %s4803_s9 }
 0x13a   :  { %v4898_v34 = vmul.f32 %v4544_v58, %v1487_v52  ;;  %5817 = vst [vmem:[#allocation28_spill] sm:$0xff] %v4901_v45  ;;  %v4908_v5 = vadd.f32 %v1263_v19, %v4644_v3  ;;  %v4928_v3 = vmul.f32 %v4616_v6, %v1519_v27  ;;  %v4934_v52 = vmul.f32 %v4751_v33, %v1429_v0 }
 0x13b   :  { %5814 = vst [vmem:[#allocation37_spill] sm:$0xff] %v4887_v47  ;;  %5815 = vst [vmem:[#allocation38_spill] sm:$0xff] %v4890_v14  ;;  %v4911_v14 = vadd.f32 %v1261_v8, %v4647_v11  ;;  %v4914_v47 = vmul.f32 %v4604_v57, %v1519_v27  ;;  %v4931_v11 = vmul.f32 %v4670_v22, %v1551_v55  ;;  %v1435_v19 = vstv %s4841_s3 }
 0x13c   :  { %5816 = vst [vmem:[#allocation23_spill] sm:$0xff] %v4898_v34  ;;  %v4917_v34 = vmul.f32 %v4653_v18, %v1551_v55  ;;  %5820 = vst [vmem:[#allocation26_spill] sm:$0xff] %v4928_v3  ;;  %v4939_v8 = vmul.f32 %v4139_v25, %v1461_v26  ;;  %v1557_v3 = vstv %s4853_s11  ;;  %v4948_v55 = vmul.f32 %v4779_v1, %v1429_v0  ;;  %v4984_v0 = vld [vmem:[%s5531_s0 + $0xa9] sm:$0x7f] }
 0x13d   :  { %5818 = vst [vmem:[#allocation35_spill] sm:$0xff] %v4914_v47  ;;  %1988 = vrot.lane.b32.xlu1 %v4676_v20, %s5558_s4  ;;  %1986 = vrot.lane.b32.xlu0 %v4679_v35, %s5558_s4  ;;  %5821 = vst [vmem:[#allocation31_spill] sm:$0xff] %v4931_v11  ;;  %v4942_v20 = vmul.f32 %v4544_v58, %v1493_v53  ;;  %v1525_v35 = vstv %s4839_s15  ;;  %v1277_v27 = vpop.permute.xlu1 %1276  ;;  %v4951_v11 = vmul.f32 %v4145_v41, %v1461_v26  ;;  %v5002_v26 = vld [vmem:[%s5531_s0 + $0x9] sm:$0x7f] }
 0x13e   :  { %5819 = vst [vmem:[#allocation36_spill] sm:$0xff] %v4917_v34  ;;  %5822 = vst [vmem:[#allocation51_spill] sm:$0xff] %v4939_v8  ;;  %v1275_v34 = vpop.permute.xlu0 %1274  ;;  %v4954_v47 = vmul.f32 %v4549_v44, %v1493_v53  ;;  %v4957_v25 = vadd.f32 %v1277_v27, %v4699_v4  ;;  %v1467_v8 = vstv %s4865_s21  ;;  %v1499_v45 = vstv %s4867_s13 }
 0x13f   :  { %5823 = vst [vmem:[#allocation52_spill] sm:$0xff] %v4942_v20  ;;  %5824 = vst [vmem:[#allocation27_spill] sm:$0xff] %v4951_v11  ;;  %v4960_v20 = vadd.f32 %v1275_v34, %v4702_v21  ;;  %v4973_v41 = vmul.f32 %v4604_v57, %v1525_v35  ;;  %v4976_v4 = vmul.f32 %v4616_v6, %v1525_v35  ;;  %v1571_v34 = vstv %s4881_s16 }
 0x140   :  { %5825 = vst [vmem:[#allocation32_spill] sm:$0xff] %v4954_v47  ;;  %v4979_v21 = vmul.f32 %v4751_v33, %v1435_v19  ;;  %v1531_v53 = vstv %s4893_s18  ;;  %v1563_v33 = vstv %s4895_s20  ;;  %s5068_s20 = sld [smem:[#allocation2 + $0x7c]] }
 0x141   :  { %2002 = vrot.lane.b32.xlu1 %v4685_v61, %s5558_s4  ;;  %2000 = vrot.lane.b32.xlu0 %v4688_v60, %s5558_s4  ;;  %5826 = vst [vmem:[#allocation39_spill] sm:$0xff] %v4973_v41  ;;  %5827 = vst [vmem:[#allocation44_spill] sm:$0xff] %v4976_v4  ;;  %v4992_v61 = vmul.f32 %v4653_v18, %v1557_v3  ;;  %v4995_v60 = vmul.f32 %v4670_v22, %v1557_v3  ;;  %v1291_v35 = vpop.permute.xlu1 %1290  ;;  %v2516_v3 = vld [vmem:[%s5531_s0 + $0xc1] sm:$0x7f]  ;;  %v5022_v41 = vld [vmem:[%s5531_s0 + $0xc9] sm:$0x7f] }
 0x142   :  { %5828 = vst [vmem:[#allocation29_spill] sm:$0xff] %v4979_v21  ;;  %v1289_v27 = vpop.permute.xlu0 %1288  ;;  %v5017_v4 = vmul.f32 %v4779_v1, %v1435_v19  ;;  %v1603_v21 = vstv %s4905_s29  ;;  %v5038_v1 = vld [vmem:[%s5531_s0 + $0xe9] sm:$0x7f]  ;;  %v1635_v19 = vstv %s4919_s10 }
 0x143   :  { %5829 = vst [vmem:[#allocation33_spill] sm:$0xff] %v4992_v61  ;;  %5830 = vst [vmem:[#allocation40_spill] sm:$0xff] %v4995_v60  ;;  %v5011_v60 = vmul.f32 %v2516_v3, %v1467_v8  ;;  %v5014_v61 = vmul.f32 %v4544_v58, %v1499_v45  ;;  %v5030_v3 = vadd.f32 %v1291_v35, %v4743_v10  ;;  %v2517_v35 = vld [vmem:[%s5531_s0 + $0x21] sm:$0x7f] }
 0x144   :  { %5833 = vst [vmem:[#allocation34_spill] sm:$0xff] %v5017_v4  ;;  %v5033_v58 = vadd.f32 %v1289_v27, %v4746_v13  ;;  %v5052_v10 = vmul.f32 %v4604_v57, %v1531_v53  ;;  %v5055_v13 = vmul.f32 %v4653_v18, %v1563_v33  ;;  %v5060_v27 = vmul.f32 %v2517_v35, %v1467_v8  ;;  %v5065_v4 = vld [vmem:[%s5531_s0 + $0x129] sm:$0x7f] }
 0x145   :  { %5831 = vst [vmem:[#allocation45_spill] sm:$0xff] %v5011_v60  ;;  %5832 = vst [vmem:[#allocation30_spill] sm:$0xff] %v5014_v61  ;;  %v5044_v61 = vld [vmem:[%s5531_s0 + $0x109] sm:$0x7f]  ;;  %v1667_v60 = vstv %s4921_s25  ;;  %2016 = vrot.lane.b32.xlu1 %v4691_v50, %s5558_s4  ;;  %2014 = vrot.lane.b32.xlu0 %v4705_v2, %s5558_s4  ;;  %v5071_v57 = vmul.f32 %v4549_v44, %v1499_v45  ;;  %v5074_v18 = vmul.f32 %v4616_v6, %v1531_v53  ;;  %v1305_v6 = vpop.permute.xlu1 %1304 }
 0x146   :  { %5834 = vst [vmem:[#allocation41_spill] sm:$0xff] %v5052_v10  ;;  %5835 = vst [vmem:[#allocation46_spill] sm:$0xff] %v5055_v13  ;;  %v1699_v50 = vstv %s4936_s23  ;;  %v5077_v2 = vmul.f32 %v4670_v22, %v1563_v33  ;;  %v5080_v8 = vmul.f32 %v4984_v0, %v1571_v34  ;;  %v5085_v35 = vld [vmem:[%s5531_s0 + $0x29] sm:$0x7f]  ;;  %v1303_v45 = vpop.permute.xlu0 %1302  ;;  %v5095_v22 = vmul.f32 %v5022_v41, %v1603_v21 }
 0x147   :  { %5836 = vst [vmem:[#allocation53_spill] sm:$0xff] %v5060_v27  ;;  %5837 = vst [vmem:[#allocation57_spill] sm:$0xff] %v5071_v57  ;;  %v5090_v44 = vld [vmem:[%s5531_s0 + $0x49] sm:$0x7f]  ;;  %v5098_v53 = vmul.f32 %v5038_v1, %v1635_v19  ;;  %v5101_v33 = vmul.f32 %v5044_v61, %v1667_v60  ;;  %v5117_v10 = vadd.f32 %v1305_v6, %v4806_v43  ;;  %v1577_v27 = vstv %s4964_s27  ;;  %s5152_s27 = sld [smem:[#allocation2 + $0xa9]] }
 0x148   :  { %5838 = vst [vmem:[#allocation42_spill] sm:$0xff] %v5074_v18  ;;  %5839 = vst [vmem:[#allocation47_spill] sm:$0xff] %v5077_v2  ;;  %v5104_v2 = vmul.f32 %v5002_v26, %v1571_v34  ;;  %v5109_v13 = vld [vmem:[%s5531_s0 + $0x69] sm:$0x7f]  ;;  %v5120_v57 = vadd.f32 %v1303_v45, %v4809_v38  ;;  %v5123_v34 = vmul.f32 %v5065_v4, %v1699_v50  ;;  %v1609_v6 = vstv %s4966_s5  ;;  %s5198_s5 = sld [smem:[#allocation2 + $0xbb]] }
 0x149   :  { %5840 = vst [vmem:[#allocation54_spill] sm:$0xff] %v5098_v53  ;;  %5841 = vst [vmem:[#allocation43_spill] sm:$0xff] %v5101_v33  ;;  %v5114_v18 = vld [vmem:[%s5531_s0 + $0x89] sm:$0x7f]  ;;  %2030 = vrot.lane.b32.xlu1 %v4713_v12, %s5558_s4  ;;  %2028 = vrot.lane.b32.xlu0 %v4716_v23, %s5558_s4  ;;  %v5135_v43 = vmul.f32 %v5085_v35, %v1603_v21  ;;  %v5138_v38 = vmul.f32 %v5090_v44, %v1635_v19  ;;  %v1641_v45 = vstv %s4987_s8  ;;  %s5142_s0 = sld [smem:[#allocation2 + $0xa0]]  ;;  %v1319_v21 = vpop.permute.xlu1 %1318  ;;  %s5200_s8 = sld [smem:[#allocation2 + $0xc4]] }
 0x14a   :  { %5842 = vst [vmem:[#allocation50_spill] sm:$0xff] %v5123_v34  ;;  %v5145_v34 = vmul.f32 %v5109_v13, %v1667_v60  ;;  %v5148_v12 = vmul.f32 %v5114_v18, %v1699_v50  ;;  %v1673_v33 = vstv %s4989_s19  ;;  %v1705_v23 = vstv %s5004_s22  ;;  %v1317_v19 = vpop.permute.xlu0 %1316  ;;  %s5214_s19 = sld [smem:[#allocation2 + $0xcd]]  ;;  %s5216_s22 = sld [smem:[#allocation2 + $0xd6]] }
 0x14b   :  { %5843 = vst [vmem:[#allocation66_spill] sm:$0xff] %v5138_v38  ;;  %v5157_v47 = vmul.f32 %v4984_v0, %v1577_v27  ;;  %v1583_v38 = vstv %s5006_s30  ;;  %v1615_v53 = vstv %s5025_s1  ;;  %v1647_v60 = vstv %s5027_s28  ;;  %s5240_s30 = sld [smem:[#allocation2 + $0xdf]] }
 0x14c   :  { %5844 = vst [vmem:[#allocation55_spill] sm:$0xff] %v5145_v34  ;;  %5845 = vst [vmem:[#allocation59_spill] sm:$0xff] %v5148_v12  ;;  %v5163_v34 = vadd.f32 %v1319_v21, %v4856_v63  ;;  %v5166_v50 = vadd.f32 %v1317_v19, %v4859_v51  ;;  %v5169_v12 = vmul.f32 %v5022_v41, %v1609_v6  ;;  %v1679_v21 = vstv %s5068_s20  ;;  %s5927_s28 = sld [smem:[#allocation121_spill]] }
 0x14d   :  { %5846 = vst [vmem:[#allocation83_spill] sm:$0xff] %v5157_v47  ;;  %v5172_v11 = vmul.f32 %v5038_v1, %v1641_v45  ;;  %2044 = vrot.lane.b32.xlu1 %v4723_v17, %s5558_s4  ;;  %2042 = vrot.lane.b32.xlu0 %v4731_v16, %s5558_s4  ;;  %v5179_v47 = vmul.f32 %v5044_v61, %v1673_v33  ;;  %v1711_v16 = vstv %s5092_s12 }
 0x14e   :  { %v5182_v63 = vmul.f32 %v5065_v4, %v1705_v23  ;;  %v5185_v51 = vmul.f32 %v5002_v26, %v1577_v27  ;;  %v5189_v19 = vmul.f32 %v5085_v35, %v1609_v6  ;;  %v5195_v17 = vmul.f32 %v5109_v13, %v1673_v33  ;;  %v1331_v27 = vpop.permute.xlu0 %1330 }
 0x14f   :  { %5847 = vst [vmem:[#allocation62_spill] sm:$0xff] %v5172_v11  ;;  %5848 = vst [vmem:[#allocation67_spill] sm:$0xff] %v5179_v47  ;;  %v5192_v11 = vmul.f32 %v5090_v44, %v1641_v45  ;;  %v5203_v47 = vmul.f32 %v5114_v18, %v1705_v23  ;;  %v5206_v6 = vmul.f32 %v4984_v0, %v1583_v38 }
 0x150   :  { %5849 = vst [vmem:[#allocation56_spill] sm:$0xff] %v5182_v63  ;;  %5850 = vst [vmem:[#allocation60_spill] sm:$0xff] %v5189_v19  ;;  %v1333_v63 = vpop.permute.xlu1 %1332  ;;  %v5209_v45 = vmul.f32 %v5022_v41, %v1615_v53  ;;  %v5212_v33 = vmul.f32 %v5038_v1, %v1647_v60  ;;  %v5222_v23 = vadd.f32 %v1331_v27, %v4911_v14  ;;  %v1685_v27 = vstv %s5152_s27 }
 0x151   :  { %5851 = vst [vmem:[#allocation81_spill] sm:$0xff] %v5192_v11  ;;  %5852 = vst [vmem:[#allocation82_spill] sm:$0xff] %v5195_v17  ;;  %v5219_v17 = vadd.f32 %v1333_v63, %v4908_v5  ;;  %v1621_v11 = vstv %s5128_s6  ;;  %2058 = vrot.lane.b32.xlu1 %v4734_v54, %s5558_s4  ;;  %2056 = vrot.lane.b32.xlu0 %v4737_v37, %s5558_s4  ;;  %v5237_v5 = vmul.f32 %v5002_v26, %v1583_v38 }
 0x152   :  { %5853 = vst [vmem:[#allocation84_spill] sm:$0xff] %v5203_v47  ;;  %5854 = vst [vmem:[#allocation63_spill] sm:$0xff] %v5206_v6  ;;  %v1589_v47 = vstv %s5126_s24  ;;  %v1653_v63 = vstv %s5142_s0  ;;  %v5243_v14 = vmul.f32 %v5085_v35, %v1615_v53  ;;  %v5246_v54 = vmul.f32 %v5090_v44, %v1647_v60  ;;  %v1345_v19 = vpop.permute.xlu0 %1344 }
 0x153   :  { %5855 = vst [vmem:[#allocation68_spill] sm:$0xff] %v5209_v45  ;;  %5856 = vst [vmem:[#allocation71_spill] sm:$0xff] %v5212_v33  ;;  %v5231_v33 = vmul.f32 %v5044_v61, %v1679_v21  ;;  %v5234_v45 = vmul.f32 %v5065_v4, %v1711_v16  ;;  %v1717_v37 = vstv %s5154_s17  ;;  %v5254_v38 = vmul.f32 %v5114_v18, %v1711_v16 }
 0x154   :  { %5859 = vst [vmem:[#allocation61_spill] sm:$0xff] %v5243_v14  ;;  %5860 = vst [vmem:[#allocation88_spill] sm:$0xff] %v5246_v54  ;;  %v1347_v6 = vpop.permute.xlu1 %1346  ;;  %v5260_v53 = vmul.f32 %v5022_v41, %v1621_v11  ;;  %v1350_v54 = vadd.f32 %v1345_v19, %v4960_v20  ;;  %v5265_v14 = vmul.f32 %v5038_v1, %v1653_v63 }
 0x155   :  { %5857 = vst [vmem:[#allocation76_spill] sm:$0xff] %v5231_v33  ;;  %5858 = vst [vmem:[#allocation58_spill] sm:$0xff] %v5234_v45  ;;  %v5251_v33 = vmul.f32 %v5109_v13, %v1679_v21  ;;  %v5257_v45 = vmul.f32 %v4984_v0, %v1589_v47  ;;  %v1351_v60 = vadd.f32 %v1347_v6, %v4957_v25  ;;  %2072 = vrot.lane.b32.xlu1 %v4785_v48, %s5558_s4 }
 0x156   :  { %5862 = vst [vmem:[#allocation69_spill] sm:$0xff] %v5254_v38  ;;  %5863 = vst [vmem:[#allocation72_spill] sm:$0xff] %v5265_v14  ;;  %v5268_v21 = vmul.f32 %v5002_v26, %v1589_v47  ;;  %2070 = vrot.lane.b32.xlu0 %v4788_v59, %s5558_s4  ;;  %v5275_v16 = vmul.f32 %v5044_v61, %v1685_v27  ;;  %v5278_v25 = vmul.f32 %v5065_v4, %v1717_v37 }
 0x157   :  { %5861 = vst [vmem:[#allocation64_spill] sm:$0xff] %v5251_v33  ;;  %v5281_v20 = vmul.f32 %v5085_v35, %v1621_v11  ;;  %v1415_v19 = vadd.f32 %v4754_v40, %v1351_v60  ;;  %v1414_v47 = vadd.f32 %v4782_v36, %v1350_v54  ;;  %v1595_v6 = vstv %s5198_s5  ;;  %v1359_v33 = vpop.permute.xlu0 %1358 }
 0x158   :  { %5864 = vst [vmem:[#allocation77_spill] sm:$0xff] %v5275_v16  ;;  %5865 = vst [vmem:[#allocation85_spill] sm:$0xff] %v5278_v25  ;;  %v1627_v38 = vstv %s5200_s8  ;;  %v1361_v48 = vpop.permute.xlu1 %1360  ;;  %v5288_v59 = vmul.f32 %v5090_v44, %v1653_v63  ;;  %v5291_v16 = vmul.f32 %v5109_v13, %v1685_v27  ;;  %v1659_v14 = vstv %s5214_s19 }
 0x159   :  { %5866 = vst [vmem:[#allocation89_spill] sm:$0xff] %v5281_v20  ;;  %v1691_v25 = vstv %s5216_s22  ;;  %v1447_v11 = vadd.f32 %v4757_v56, %v1415_v19  ;;  %v1446_v20 = vadd.f32 %v4794_v7, %v1414_v47  ;;  %v1365_v40 = vadd.f32 %v1361_v48, %v5030_v3  ;;  %v5870_v47 = vld [vmem:[#allocation24_spill] sm:$0xff]  ;;  %v5872_v48 = vld [vmem:[#allocation38_spill] sm:$0xff] }
 0x15a   :  { %5867 = vst [vmem:[#allocation92_spill] sm:$0xff] %v5291_v16  ;;  %v1364_v36 = vadd.f32 %v1359_v33, %v5033_v58  ;;  %v5300_v54 = vmul.f32 %v5114_v18, %v1717_v37  ;;  %v5303_v60 = vmul.f32 %v4984_v0, %v1595_v6  ;;  %v5306_v63 = vmul.f32 %v5022_v41, %v1627_v38 }
 0x15b   :  { %v1723_v27 = vstv %s5240_s30  ;;  %v1479_v16 = vadd.f32 %v4764_v39, %v1447_v11  ;;  %v1478_v56 = vadd.f32 %v4797_v31, %v1446_v20  ;;  %v1421_v7 = vadd.f32 %v4823_v42, %v1365_v40  ;;  %v1373_v58 = vpop.permute.xlu0 %1372 }
 0x15c   :  { %v1420_v3 = vadd.f32 %v4827_v29, %v1364_v36  ;;  %v1375_v19 = vpop.permute.xlu1 %1374  ;;  %v5314_v33 = vmul.f32 %v5038_v1, %v1659_v14  ;;  %v5317_v0 = vmul.f32 %v5044_v61, %v1691_v25  ;;  %v5320_v41 = vmul.f32 %v5002_v26, %v1595_v6  ;;  %v5871_v6 = vld [vmem:[#allocation37_spill] sm:$0xff] }
 0x15d   :  { %v5323_v37 = vmul.f32 %v5085_v35, %v1627_v38  ;;  %v1511_v39 = vadd.f32 %v4767_v28, %v1479_v16  ;;  %v1510_v31 = vadd.f32 %v4812_v24, %v1478_v56  ;;  %v1453_v42 = vadd.f32 %v4830_v49, %v1421_v7  ;;  %v5868_v38 = vld [vmem:[#allocation49_spill] sm:$0xff] }
 0x15e   :  { %v1452_v29 = vadd.f32 %v4837_v62, %v1420_v3  ;;  %v1379_v1 = vadd.f32 %v1375_v19, %v5117_v10  ;;  %v1378_v20 = vadd.f32 %v1373_v58, %v5120_v57  ;;  %v5332_v61 = vmul.f32 %v5065_v4, %v1723_v27  ;;  %v5875_v3 = vld [vmem:[#allocation23_spill] sm:$0xff]  ;;  %v5876_v19 = vld [vmem:[#allocation28_spill] sm:$0xff] }
 0x15f   :  { %v5335_v26 = vmul.f32 %v5090_v44, %v1659_v14  ;;  %v1543_v35 = vadd.f32 %v4770_v9, %v1511_v39  ;;  %v1542_v28 = vadd.f32 %v4820_v46, %v1510_v31  ;;  %v1485_v24 = vadd.f32 %v4833_v15, %v1453_v42  ;;  %v1387_v57 = vpop.permute.xlu0 %1386  ;;  %v5869_v14 = vld [vmem:[#allocation21_spill] sm:$0xff]  ;;  %v5877_v42 = vld [vmem:[#allocation51_spill] sm:$0xff] }
 0x160   :  { %v1484_v49 = vadd.f32 %v4844_v30, %v1452_v29  ;;  %v1427_v62 = vadd.f32 %v4847_v32, %v1379_v1  ;;  %v1426_v10 = vadd.f32 %v5868_v38, %v1378_v20  ;;  %v1389_v16 = vpop.permute.xlu1 %1388  ;;  %v5344_v4 = vmul.f32 %v5109_v13, %v1691_v25  ;;  %v5873_v25 = vld [vmem:[#allocation22_spill] sm:$0xff]  ;;  %v5878_v29 = vld [vmem:[#allocation27_spill] sm:$0xff] }
 0x161   :  { %v5347_v44 = vmul.f32 %v5114_v18, %v1723_v27  ;;  %v1517_v9 = vadd.f32 %v5869_v14, %v1485_v24  ;;  %v1393_v15 = vadd.f32 %v1389_v16, %v5163_v34  ;;  %v1392_v30 = vadd.f32 %v1387_v57, %v5166_v50  ;;  %v5874_v18 = vld [vmem:[#allocation25_spill] sm:$0xff]  ;;  %v5882_v38 = vld [vmem:[#allocation66_spill] sm:$0xff]  ;;  %v5883_v16 = vld [vmem:[#allocation52_spill] sm:$0xff] }
 0x162   :  { %v1516_v46 = vadd.f32 %v5870_v47, %v1484_v49  ;;  %v1459_v32 = vadd.f32 %v5871_v6, %v1427_v62  ;;  %v1458_v11 = vadd.f32 %v5872_v48, %v1426_v10  ;;  %v1575_v40 = vadd.f32 %v5080_v8, %v1543_v35  ;;  %v5879_v35 = vld [vmem:[#allocation35_spill] sm:$0xff]  ;;  %v5881_v49 = vld [vmem:[#allocation54_spill] sm:$0xff]  ;;  %v5884_v57 = vld [vmem:[#allocation32_spill] sm:$0xff] }
 0x163   :  { %v1574_v13 = vadd.f32 %v5104_v2, %v1542_v28  ;;  %v1549_v36 = vadd.f32 %v5873_v25, %v1517_v9  ;;  %v1433_v56 = vadd.f32 %v4934_v52, %v1393_v15  ;;  %v1432_v7 = vadd.f32 %v4948_v55, %v1392_v30  ;;  %v1401_v39 = vpop.permute.xlu0 %1400  ;;  %v5880_v28 = vld [vmem:[#allocation26_spill] sm:$0xff]  ;;  %v5885_v14 = vld [vmem:[#allocation29_spill] sm:$0xff]  ;;  %v5887_v15 = vld [vmem:[#allocation36_spill] sm:$0xff] }
 0x164   :  { %v1548_v27 = vadd.f32 %v5874_v18, %v1516_v46  ;;  %v1491_v34 = vadd.f32 %v5875_v3, %v1459_v32  ;;  %v1490_v50 = vadd.f32 %v5876_v19, %v1458_v11  ;;  %v1403_v58 = vpop.permute.xlu1 %1402  ;;  %v1607_v31 = vadd.f32 %v5095_v22, %v1575_v40  ;;  %v5886_v47 = vld [vmem:[#allocation34_spill] sm:$0xff]  ;;  %v5888_v30 = vld [vmem:[#allocation31_spill] sm:$0xff]  ;;  %v5893_v3 = vld [vmem:[#allocation45_spill] sm:$0xff] }
 0x165   :  { %v1606_v8 = vadd.f32 %v5135_v43, %v1574_v13  ;;  %v1465_v2 = vadd.f32 %v5877_v42, %v1433_v56  ;;  %v1464_v1 = vadd.f32 %v5878_v29, %v1432_v7  ;;  %v1407_v20 = vadd.f32 %v1403_v58, %v5219_v17  ;;  %v5889_v32 = vld [vmem:[#allocation43_spill] sm:$0xff]  ;;  %v5892_v56 = vld [vmem:[#allocation44_spill] sm:$0xff]  ;;  %v5894_v19 = vld [vmem:[#allocation53_spill] sm:$0xff] }
 0x166   :  { %v1406_v52 = vadd.f32 %v1401_v39, %v5222_v23  ;;  %v1523_v55 = vadd.f32 %v5879_v35, %v1491_v34  ;;  %v1522_v24 = vadd.f32 %v5880_v28, %v1490_v50  ;;  %v1639_v62 = vadd.f32 %v5881_v49, %v1607_v31  ;;  %v5890_v40 = vld [vmem:[#allocation55_spill] sm:$0xff]  ;;  %v5895_v58 = vld [vmem:[#allocation50_spill] sm:$0xff] }
 0x167   :  { %v1638_v10 = vadd.f32 %v5882_v38, %v1606_v8  ;;  %v1497_v22 = vadd.f32 %v5883_v16, %v1465_v2  ;;  %v1496_v43 = vadd.f32 %v5884_v57, %v1464_v1  ;;  %v1439_v9 = vadd.f32 %v5885_v14, %v1407_v20  ;;  %v1735_v11 = vpop.permute.xlu0 %1734  ;;  %v5891_v25 = vld [vmem:[#allocation39_spill] sm:$0xff]  ;;  %v5898_v1 = vld [vmem:[#allocation33_spill] sm:$0xff]  ;;  %v5902_v57 = vld [vmem:[#allocation60_spill] sm:$0xff] }
 0x168   :  { %v1438_v46 = vadd.f32 %v5886_v47, %v1406_v52  ;;  %v1555_v17 = vadd.f32 %v5887_v15, %v1523_v55  ;;  %v1554_v23 = vadd.f32 %v5888_v30, %v1522_v24  ;;  %v1737_v6 = vpop.permute.xlu1 %1736  ;;  %v1671_v48 = vadd.f32 %v5889_v32, %v1639_v62  ;;  %v5896_v31 = vld [vmem:[#allocation59_spill] sm:$0xff]  ;;  %v5899_v52 = vld [vmem:[#allocation40_spill] sm:$0xff]  ;;  %v5900_v55 = vld [vmem:[#allocation30_spill] sm:$0xff] }
 0x169   :  { %v1670_v13 = vadd.f32 %v5890_v40, %v1638_v10  ;;  %v1529_v18 = vadd.f32 %v5891_v25, %v1497_v22  ;;  %v1528_v7 = vadd.f32 %v5892_v56, %v1496_v43  ;;  %v1471_v34 = vadd.f32 %v5893_v3, %v1439_v9  ;;  %v5897_v42 = vld [vmem:[#allocation83_spill] sm:$0xff]  ;;  %v5901_v24 = vld [vmem:[#allocation57_spill] sm:$0xff]  ;;  %v5906_v15 = vld [vmem:[#allocation62_spill] sm:$0xff] }
 0x16a   :  { %v1470_v50 = vadd.f32 %v5894_v19, %v1438_v46  ;;  %v1703_v39 = vadd.f32 %v5895_v58, %v1671_v48  ;;  %v1581_v2 = vadd.f32 %v5897_v42, %v1549_v36  ;;  %v1580_v29 = vadd.f32 %v5185_v51, %v1548_v27  ;;  %v5903_v43 = vld [vmem:[#allocation41_spill] sm:$0xff]  ;;  %v5904_v27 = vld [vmem:[#allocation42_spill] sm:$0xff]  ;;  %v5905_v9 = vld [vmem:[#allocation63_spill] sm:$0xff] }
 0x16b   :  { %v1702_v8 = vadd.f32 %v5896_v31, %v1670_v13  ;;  %v1561_v20 = vadd.f32 %v5898_v1, %v1529_v18  ;;  %v1560_v35 = vadd.f32 %v5899_v52, %v1528_v7  ;;  %v1503_v28 = vadd.f32 %v5900_v55, %v1471_v34  ;;  %v1749_v22 = vpop.permute.xlu0 %1748  ;;  %v5909_v13 = vld [vmem:[#allocation47_spill] sm:$0xff]  ;;  %v5910_v18 = vld [vmem:[#allocation68_spill] sm:$0xff]  ;;  %v5911_v7 = vld [vmem:[#allocation61_spill] sm:$0xff] }
 0x16c   :  { %v1502_v49 = vadd.f32 %v5901_v24, %v1470_v50  ;;  %v5393_v62 = vadd.f32 %v1737_v6, %v1703_v39  ;;  %v1751_v10 = vpop.permute.xlu1 %1750  ;;  %v1613_v16 = vadd.f32 %v5169_v12, %v1581_v2  ;;  %v1612_v36 = vadd.f32 %v5902_v57, %v1580_v29  ;;  %v5907_v6 = vld [vmem:[#allocation81_spill] sm:$0xff]  ;;  %v5908_v12 = vld [vmem:[#allocation46_spill] sm:$0xff]  ;;  %v5912_v34 = vld [vmem:[#allocation67_spill] sm:$0xff] }
 0x16d   :  { %v5395_v38 = vadd.f32 %v1735_v11, %v1702_v8  ;;  %v1535_v51 = vadd.f32 %v5903_v43, %v1503_v28  ;;  %v1587_v47 = vadd.f32 %v5905_v9, %v1555_v17  ;;  %v1586_v46 = vadd.f32 %v5237_v5, %v1554_v23  ;;  %v5913_v19 = vld [vmem:[#allocation82_spill] sm:$0xff]  ;;  %v5914_v39 = vld [vmem:[#allocation89_spill] sm:$0xff]  ;;  %v5915_v31 = vld [vmem:[#allocation71_spill] sm:$0xff] }
 0x16e   :  { %v1534_v14 = vadd.f32 %v5904_v27, %v1502_v49  ;;  %v1645_v30 = vadd.f32 %v5906_v15, %v1613_v16  ;;  %v1644_v32 = vadd.f32 %v5907_v6, %v1612_v36  ;;  %v1593_v48 = vadd.f32 %v5257_v45, %v1561_v20  ;;  %v5916_v8 = vld [vmem:[#allocation88_spill] sm:$0xff]  ;;  %v5924_v15 = vld [vmem:[#allocation58_spill] sm:$0xff]  ;;  %v5925_v6 = vld [vmem:[#allocation69_spill] sm:$0xff] }
 0x16f   :  { %v1592_v11 = vadd.f32 %v5268_v21, %v1560_v35  ;;  %v1567_v40 = vadd.f32 %v5908_v12, %v1535_v51  ;;  %v1619_v56 = vadd.f32 %v5910_v18, %v1587_v47  ;;  %v1618_v3 = vadd.f32 %v5911_v7, %v1586_v46  ;;  %v1763_v50 = vpop.permute.xlu0 %1762  ;;  %v5917_v1 = vld [vmem:[#allocation56_spill] sm:$0xff] }
 0x170   :  { %v1566_v25 = vadd.f32 %v5909_v13, %v1534_v14  ;;  %v1677_v17 = vadd.f32 %v5912_v34, %v1645_v30  ;;  %v1676_v5 = vadd.f32 %v5913_v19, %v1644_v32  ;;  %v1765_v23 = vpop.permute.xlu1 %1764  ;;  %v1625_v58 = vadd.f32 %v5260_v53, %v1593_v48  ;;  %v5918_v52 = vld [vmem:[#allocation84_spill] sm:$0xff] }
 0x171   :  { %v1624_v45 = vadd.f32 %v5914_v39, %v1592_v11  ;;  %v1651_v21 = vadd.f32 %v5915_v31, %v1619_v56  ;;  %v1650_v42 = vadd.f32 %v5916_v8, %v1618_v3  ;;  %v1599_v2 = vadd.f32 %v5303_v60, %v1567_v40  ;;  %v5919_v55 = vld [vmem:[#allocation72_spill] sm:$0xff]  ;;  %v5926_v11 = vld [vmem:[#allocation85_spill] sm:$0xff] }
 0x172   :  { %v1598_v29 = vadd.f32 %v5320_v41, %v1566_v25  ;;  %v1709_v20 = vadd.f32 %v5917_v1, %v1677_v17  ;;  %v1708_v35 = vadd.f32 %v5918_v52, %v1676_v5  ;;  %v1657_v28 = vadd.f32 %v5919_v55, %v1625_v58  ;;  %v5920_v49 = vld [vmem:[#allocation76_spill] sm:$0xff]  ;;  %v5922_v41 = vld [vmem:[#allocation77_spill] sm:$0xff] }
 0x173   :  { %v1656_v24 = vadd.f32 %v5288_v59, %v1624_v45  ;;  %v1683_v53 = vadd.f32 %v5920_v49, %v1651_v21  ;;  %v5921_v16 = vld [vmem:[#allocation64_spill] sm:$0xff]  ;;  %v1631_v36 = vadd.f32 %v5306_v63, %v1599_v2  ;;  %v1777_v9 = vpop.permute.xlu0 %1776 }
 0x174   :  { %v1682_v57 = vadd.f32 %v5921_v16, %v1650_v42  ;;  %v1630_v43 = vadd.f32 %v5323_v37, %v1598_v29  ;;  %v1755_v51 = vadd.f32 %v1751_v10, %v1709_v20  ;;  %v1754_v60 = vadd.f32 %v1749_v22, %v1708_v35  ;;  %v1779_v27 = vpop.permute.xlu1 %1778  ;;  %v5923_v47 = vld [vmem:[#allocation92_spill] sm:$0xff] }
 0x175   :  { %v1689_v14 = vadd.f32 %v5922_v41, %v1657_v28  ;;  %v1688_v46 = vadd.f32 %v5923_v47, %v1656_v24  ;;  %v1715_v30 = vadd.f32 %v5924_v15, %v1683_v53  ;;  %v1663_v32 = vadd.f32 %v5314_v33, %v1631_v36 }
 0x176   :  { %v1714_v59 = vadd.f32 %v5925_v6, %v1682_v57  ;;  %v1662_v48 = vadd.f32 %v5335_v26, %v1630_v43 }
 0x177   :  { %v1721_v63 = vadd.f32 %v5926_v11, %v1689_v14  ;;  %v1720_v37 = vadd.f32 %v5300_v54, %v1688_v46  ;;  %v1769_v10 = vadd.f32 %v1765_v23, %v1715_v30  ;;  %v1695_v12 = vadd.f32 %v5317_v0, %v1663_v32  ;;  %v1791_v56 = vpop.permute.xlu0 %1790 }
 0x178   :  { %v1768_v22 = vadd.f32 %v1763_v50, %v1714_v59  ;;  %v1694_v40 = vadd.f32 %v5344_v4, %v1662_v48  ;;  %v1793_v18 = vpop.permute.xlu1 %1792 }
 0x179   :  { %v5437_v13 = vadd.f32 %v1779_v27, %v1721_v63  ;;  %v5439_v25 = vadd.f32 %v1777_v9, %v1720_v37  ;;  %v1727_v33 = vadd.f32 %v5332_v61, %v1695_v12 }
 0x17a   :  { %v1726_v26 = vadd.f32 %v5347_v44, %v1694_v40 }
 0x17b   :  { %v5443_v7 = vadd.f32 %v1793_v18, %v1727_v33  ;;  %v1805_v34 = vpop.permute.xlu0 %1804 }
 0x17c   :  { %v5445_v3 = vadd.f32 %v1791_v56, %v1726_v26  ;;  %v1807_v54 = vpop.permute.xlu1 %1806  ;;  %v1810_v16 = vadd.f32 %v1805_v34, %v5395_v38 }
 0x17d   :  { %v1811_v53 = vadd.f32 %v1807_v54, %v5393_v62 }
 0x17f   :  { %v1819_v0 = vpop.permute.xlu0 %1818 }
 0x180   :  { %v1821_v17 = vpop.permute.xlu1 %1820  ;;  %v1824_v14 = vadd.f32 %v1819_v0, %v1754_v60 }
 0x181   :  { %v1825_v41 = vadd.f32 %v1821_v17, %v1755_v51 }
 0x183   :  { %v1833_v4 = vpop.permute.xlu0 %1832 }
 0x184   :  { %v1835_v19 = vpop.permute.xlu1 %1834  ;;  %v1838_v62 = vadd.f32 %v1833_v4, %v1768_v22 }
 0x185   :  { %v1839_v48 = vadd.f32 %v1835_v19, %v1769_v10 }
 0x187   :  { %v1847_v23 = vpop.permute.xlu0 %1846 }
 0x188   :  { %v1849_v5 = vpop.permute.xlu1 %1848  ;;  %v1852_v10 = vadd.f32 %v1847_v23, %v5439_v25 }
 0x189   :  { %v1853_v33 = vadd.f32 %v1849_v5, %v5437_v13 }
 0x18b   :  { %v5449_v58 = vpop.permute.xlu0 %1860 }
 0x18c   :  { %v5447_v50 = vpop.permute.xlu1 %1862  ;;  %v1866_v25 = vadd.f32 %v5449_v58, %v5445_v3 }
 0x18d   :  { %v1867_v13 = vadd.f32 %v5447_v50, %v5443_v7 }
 0x18f   :  { %v1875_v61 = vpop.permute.xlu0 %1874 }
 0x190   :  { %v1877_v39 = vpop.permute.xlu1 %1876  ;;  %v1880_v27 = vadd.f32 %v1875_v61, %v1810_v16 }
 0x191   :  { %v1881_v43 = vadd.f32 %v1877_v39, %v1811_v53 }
 0x193   :  { %v1889_v44 = vpop.permute.xlu0 %1888 }
 0x194   :  { %v1891_v45 = vpop.permute.xlu1 %1890  ;;  %v1894_v6 = vadd.f32 %v1889_v44, %v1824_v14 }
 0x195   :  { %v1895_v30 = vadd.f32 %v1891_v45, %v1825_v41 }
 0x197   :  { %v1903_v21 = vpop.permute.xlu0 %1902 }
 0x198   :  { %v1905_v31 = vpop.permute.xlu1 %1904  ;;  %v1908_v40 = vadd.f32 %v1903_v21, %v1838_v62 }
 0x199   :  { %v1909_v51 = vadd.f32 %v1905_v31, %v1839_v48 }
 0x19b   :  { %v1917_v42 = vpop.permute.xlu0 %1916 }
 0x19c   :  { %v1919_v8 = vpop.permute.xlu1 %1918  ;;  %v1922_v4 = vadd.f32 %v1917_v42, %v1852_v10 }
 0x19d   :  { %v1923_v17 = vadd.f32 %v1919_v8, %v1853_v33 }
 0x19f   :  { %v1931_v29 = vpop.permute.xlu0 %1930 }
 0x1a0   :  { %v1933_v2 = vpop.permute.xlu1 %1932  ;;  %v1936_v42 = vadd.f32 %v1931_v29, %v1866_v25 }
 0x1a1   :  { %v1937_v31 = vadd.f32 %v1933_v2, %v1867_v13 }
 0x1a3   :  { %v1945_v20 = vpop.permute.xlu0 %1944 }
 0x1a4   :  { %v1947_v1 = vpop.permute.xlu1 %1946  ;;  %v1950_v47 = vadd.f32 %v1945_v20, %v1880_v27 }
 0x1a5   :  { %v1951_v9 = vadd.f32 %v1947_v1, %v1881_v43 }
 0x1a7   :  { %v1959_v35 = vpop.permute.xlu0 %1958 }
 0x1a8   :  { %v1961_v52 = vpop.permute.xlu1 %1960  ;;  %v1964_v38 = vadd.f32 %v1959_v35, %v1894_v6 }
 0x1a9   :  { %v1965_v11 = vadd.f32 %v1961_v52, %v1895_v30 }
 0x1ab   :  { %v1973_v28 = vpop.permute.xlu0 %1972 }
 0x1ac   :  { %v1975_v55 = vpop.permute.xlu1 %1974  ;;  %v1978_v26 = vadd.f32 %v1973_v28, %v1908_v40 }
 0x1ad   :  { %v1979_v22 = vadd.f32 %v1975_v55, %v1909_v51 }
 0x1af   :  { %v1987_v49 = vpop.permute.xlu0 %1986 }
 0x1b0   :  { %v1989_v24 = vpop.permute.xlu1 %1988  ;;  %v1992_v23 = vadd.f32 %v1987_v49, %v1922_v4 }
 0x1b1   :  { %v1993_v5 = vadd.f32 %v1989_v24, %v1923_v17 }
 0x1b3   :  { %v2001_v36 = vpop.permute.xlu0 %2000 }
 0x1b4   :  { %v2003_v57 = vpop.permute.xlu1 %2002  ;;  %v2006_v3 = vadd.f32 %v2001_v36, %v1936_v42 }
 0x1b5   :  { %v2007_v50 = vadd.f32 %v2003_v57, %v1937_v31 }
 0x1b7   :  { %v2015_v15 = vpop.permute.xlu0 %2014 }
 0x1b8   :  { %v2017_v46 = vpop.permute.xlu1 %2016  ;;  %v5455_v32 = vadd.f32 %v2015_v15, %v1950_v47 }
 0x1b9   :  { %v5453_v59 = vadd.f32 %v2017_v46, %v1951_v9 }
 0x1ba   :  { %v2453_v37 = vmul.f32 -1.442695, %v5455_v32 }
 0x1bb   :  { %v2454_v63 = vmul.f32 -1.442695, %v5453_v59  ;;  %v2029_v12 = vpop.permute.xlu0 %2028 }
 0x1bc   :  { %v2031_v60 = vpop.permute.xlu1 %2030  ;;  %v5461_v56 = vadd.f32 %v2029_v12, %v1964_v38 }
 0x1bd   :  { %2474 = vpow2.f32 %v2454_v63  ;;  %v5459_v18 = vadd.f32 %v2031_v60, %v1965_v11 }
 0x1be   :  { %2476 = vpow2.f32 %v2453_v37  ;;  %v2455_v34 = vmul.f32 -1.442695, %v5461_v56 }
 0x1bf   :  { %v2456_v54 = vmul.f32 -1.442695, %v5459_v18  ;;  %v2043_v19 = vpop.permute.xlu0 %2042 }
 0x1c0   :  { %v2045_v0 = vpop.permute.xlu1 %2044  ;;  %v5469_v61 = vadd.f32 %v2043_v19, %v1978_v26 }
 0x1c1   :  { %2478 = vpow2.f32 %v2456_v54  ;;  %v5467_v39 = vadd.f32 %v2045_v0, %v1979_v22 }
 0x1c2   :  { %2480 = vpow2.f32 %v2455_v34  ;;  %v2459_v44 = vmul.f32 -1.442695, %v5469_v61 }
 0x1c3   :  { %v2460_v45 = vmul.f32 -1.442695, %v5467_v39  ;;  %v2057_v8 = vpop.permute.xlu0 %2056 }
 0x1c4   :  { %v2059_v21 = vpop.permute.xlu1 %2058  ;;  %v5479_v20 = vadd.f32 %v2057_v8, %v1992_v23 }
 0x1c5   :  { %2482 = vpow2.f32 %v2460_v45  ;;  %v5477_v1 = vadd.f32 %v2059_v21, %v1993_v5 }
 0x1c6   :  { %2484 = vpow2.f32 %v2459_v44  ;;  %v2463_v55 = vmul.f32 -1.442695, %v5479_v20 }
 0x1c7   :  { %v2475_v7 = vpop.eup %2474  ;;  %v2464_v58 = vmul.f32 -1.442695, %v5477_v1 }
 0x1c8   :  { %v2477_v52 = vpop.eup %2476  ;;  %v2085_v35 = vadd.f32 1.0, %v2475_v7  ;;  %v2073_v28 = vpop.permute.xlu1 %2072 }
 0x1c9   :  { %v2071_v2 = vpop.permute.xlu0 %2070  ;;  %v2084_v24 = vadd.f32 1.0, %v2477_v52  ;;  %2486 = vpow2.f32 %v2464_v58  ;;  %v2077_v29 = vadd.f32 %v2073_v28, %v2007_v50 }
 0x1ca   :  { %v2076_v49 = vadd.f32 %v2071_v2, %v2006_v3  ;;  %2488 = vrcp.f32 %v2085_v35 }
 0x1cb   :  { %v2479_v53 = vpop.eup %2478  ;;  %2490 = vrcp.f32 %v2084_v24  ;;  %v2468_v16 = vmul.f32 -1.442695, %v2077_v29 }
 0x1cc   :  { %v2481_v43 = vpop.eup %2480  ;;  %v2102_v27 = vadd.f32 1.0, %v2479_v53  ;;  %2492 = vpow2.f32 %v2463_v55  ;;  %v2467_v57 = vmul.f32 -1.442695, %v2076_v49 }
 0x1cd   :  { %v2101_v36 = vadd.f32 1.0, %v2481_v43  ;;  %2494 = vpow2.f32 %v2468_v16 }
 0x1ce   :  { %2496 = vrcp.f32 %v2102_v27 }
 0x1cf   :  { %v2483_v41 = vpop.eup %2482  ;;  %2498 = vrcp.f32 %v2101_v36 }
 0x1d0   :  { %v2485_v14 = vpop.eup %2484  ;;  %v2119_v9 = vadd.f32 1.0, %v2483_v41  ;;  %2500 = vpow2.f32 %v2467_v57 }
 0x1d1   :  { %v2118_v47 = vadd.f32 1.0, %v2485_v14 }
 0x1d2   :  { %2502 = vrcp.f32 %v2119_v9 }
 0x1d3   :  { %v2487_v46 = vpop.eup %2486  ;;  %2504 = vrcp.f32 %v2118_v47 }
 0x1d4   :  { %v2489_v15 = vpop.eup %2488  ;;  %v2136_v30 = vadd.f32 1.0, %v2487_v46 }
 0x1d5   :  { %v2491_v6 = vpop.eup %2490  ;;  %v2091_v48 = vmul.f32 %v2489_v15, %v5453_v59 }
 0x1d6   :  { %v2493_v62 = vpop.eup %2492  ;;  %v2090_v11 = vmul.f32 %v2491_v6, %v5455_v32  ;;  %2506 = vrcp.f32 %v2136_v30 }
 0x1d7   :  { %v2495_v38 = vpop.eup %2494  ;;  %2094 = vst.msk [vmem:[%s5927_s28 + $0x28] sm:$0x7f] %vm2092_vm0, %v2091_v48  ;;  %v2135_v63 = vadd.f32 1.0, %v2493_v62 }
 0x1d8   :  { %v2497_v37 = vpop.eup %2496  ;;  %2093 = vst.msk [vmem:[%s5927_s28] sm:$0x7f] %vm2092_vm0, %v2090_v11  ;;  %v2153_v51 = vadd.f32 1.0, %v2495_v38 }
 0x1d9   :  { %v2499_v60 = vpop.eup %2498  ;;  %v2108_v59 = vmul.f32 %v2497_v37, %v5459_v18  ;;  %2508 = vrcp.f32 %v2135_v63 }
 0x1da   :  { %v2501_v32 = vpop.eup %2500  ;;  %v2107_v12 = vmul.f32 %v2499_v60, %v5461_v56  ;;  %2510 = vrcp.f32 %v2153_v51 }
 0x1db   :  { %2458 = vst.msk [vmem:[%s5927_s28 + $0x30] sm:$0x7f] %vm2092_vm0, %v2108_v59  ;;  %v2152_v40 = vadd.f32 1.0, %v2501_v32 }
 0x1dc   :  { %v2503_v33 = vpop.eup %2502  ;;  %2457 = vst.msk [vmem:[%s5927_s28 + $0x8] sm:$0x7f] %vm2092_vm0, %v2107_v12 }
 0x1dd   :  { %v2505_v10 = vpop.eup %2504  ;;  %v2125_v18 = vmul.f32 %v2503_v33, %v5467_v39  ;;  %2512 = vrcp.f32 %v2152_v40 }
 0x1de   :  { %v2124_v22 = vmul.f32 %v2505_v10, %v5469_v61 }
 0x1df   :  { %2462 = vst.msk [vmem:[%s5927_s28 + $0x38] sm:$0x7f] %vm2092_vm0, %v2125_v18 }
 0x1e0   :  { %v2507_v56 = vpop.eup %2506  ;;  %2461 = vst.msk [vmem:[%s5927_s28 + $0x10] sm:$0x7f] %vm2092_vm0, %v2124_v22 }
 0x1e1   :  { %v2142_v26 = vmul.f32 %v2507_v56, %v5477_v1 }
 0x1e3   :  { %v2509_v54 = vpop.eup %2508  ;;  %2466 = vst.msk [vmem:[%s5927_s28 + $0x40] sm:$0x7f] %vm2092_vm0, %v2142_v26 }
 0x1e4   :  { %v2511_v34 = vpop.eup %2510  ;;  %v2141_v17 = vmul.f32 %v2509_v54, %v5479_v20 }
 0x1e5   :  { %v2159_v0 = vmul.f32 %v2511_v34, %v2077_v29 }
 0x1e6   :  { %2465 = vst.msk [vmem:[%s5927_s28 + $0x18] sm:$0x7f] %vm2092_vm0, %v2141_v17 }
 0x1e7   :  { %v2513_v19 = vpop.eup %2512  ;;  %2470 = vst.msk [vmem:[%s5927_s28 + $0x48] sm:$0x7f] %vm2092_vm0, %v2159_v0 }
 0x1e8   :  { %v2158_v4 = vmul.f32 %v2513_v19, %v2076_v49 }
 0x1ea   :  { %2469 = vst.msk [vmem:[%s5927_s28 + $0x20] sm:$0x7f] %vm2092_vm0, %v2158_v4 }
 0x1eb   :  { %2167 = vsyncpa [#allocation3], 1 }
 0x1ec   :  { %2168 = vsyncpa [#allocation5], 1 }

</bundles_post_ra>
